<compile_context>
chip_gen: v7x
topology: tpu7x:2x2x1
jax: 0.10.0
libtpu: 0.0.40
codegen_flags: <defaults>
</compile_context>

<pallas_src>
import numpy as np
import jax
import jax.numpy as jnp
from jax.experimental import pallas as pl
from jax.experimental.pallas import tpu as pltpu

C1 = 20                 # conv1 output channels
C1L = 256               # pooled1 lane width: lane = q*20 + c1 (240 used, padded to 256)
C2P = 64                # conv2 output channels padded 50 -> 64
C2L = 4 * C2P           # conv2/pooled2 lane width: lane = v*64 + oc  (256)
NH = 512                # fc1 hidden padded 500 -> 512
NC = 10                 # real classes
NCP = 128               # class lanes padded 10 -> 128
K1 = 12 * 25            # conv1 patch width: col = q*25 + di*5 + dj  (300)
B_TILE = 8              # images per grid step


# ----------------------------- fused kernel --------------------------------

def net_kernel(p1_ref, w1_ref, b1_ref, t2_ref, b2_ref,
               wf1_ref, bf1_ref, wf2_ref, bf2_ref,
               out_ref, pl1_ref, p2_ref):
    Bt = out_ref.shape[0]
    blk = 12 * Bt                      # rows per conv1 pooling corner

    # ---- conv1 + relu + maxpool1: one pooling corner at a time -------------
    w1 = w1_ref[...]
    b1 = b1_ref[...]
    m = None
    for a in range(4):
        h = jnp.dot(p1_ref[pl.ds(a * blk, blk), :], w1,
                    preferred_element_type=jnp.float32)
        h = jnp.maximum(h + b1, 0.0)
        m = h if m is None else jnp.maximum(m, h)
    # pooled1 rows: par*(6*Bt) + t*Bt + b  (H index p = 2*t + par), lanes (q, c1)
    pl1_ref[...] = m.astype(jnp.bfloat16)

    # ---- conv2 + relu + maxpool2: 20 batched dots, M = 4*Bt -----------------
    b2 = b2_ref[...]
    p2 = None
    for si in range(2):
        acc0 = None
        acc1 = None
        for di in range(5):
            s = si + di
            start = (s % 2) * (6 * Bt) + (s // 2) * Bt
            x = pl1_ref[pl.ds(start, 4 * Bt), :]      # [4Bt, 256] bf16, rows (u, b)
            ca = jnp.dot(x, t2_ref[di], preferred_element_type=jnp.float32)
            cb = jnp.dot(x, t2_ref[5 + di], preferred_element_type=jnp.float32)
            acc0 = ca if acc0 is None else acc0 + ca
            acc1 = cb if acc1 is None else acc1 + cb
        h_si = jnp.maximum(jnp.maximum(acc0 + b2, 0.0),
                           jnp.maximum(acc1 + b2, 0.0))
        p2 = h_si if p2 is None else jnp.maximum(p2, h_si)
    # pooled2 rows: u*Bt + b, lanes (v, oc)
    p2_ref[...] = p2.astype(jnp.bfloat16)

    # ---- fc1 + relu: 4 accumulated dots of [Bt,256]x[256,512] ---------------
    z1 = bf1_ref[...]                                  # [1, 512]
    for u in range(4):
        xu = p2_ref[pl.ds(u * Bt, Bt), :]              # [Bt, 256] bf16
        z1 = z1 + jnp.dot(xu, wf1_ref[u], preferred_element_type=jnp.float32)
    h3 = jnp.maximum(z1, 0.0).astype(jnp.bfloat16)     # [Bt, 512]

    # ---- fc2 + log_softmax (pad-class bias = -1e30 -> exp == 0) -------------
    z2 = jnp.dot(h3, wf2_ref[...],
                 preferred_element_type=jnp.float32) + bf2_ref[...]
    mx = jnp.max(z2, axis=-1, keepdims=True)
    lse = jnp.log(jnp.sum(jnp.exp(z2 - mx), axis=-1, keepdims=True)) + mx
    out_ref[...] = z2 - lse                            # one lane-dense [Bt,128] store


# ------------------------ glue: conv1 patch indices -------------------------

def _p1_indices(b_pad, b_tile):
    # Row r = ((tile*4 + a)*2 + par)*(6*Bt) + t*Bt + b_local ; a = 2*ai + aj.
    # Column c = q*25 + di*5 + dj.  Patch value = x[b, 4t+2par+ai+di, 2q+aj+dj].
    nt = b_pad // b_tile
    tile = np.arange(nt); a = np.arange(4); par = np.arange(2)
    t = np.arange(6); bl = np.arange(b_tile)
    TI, A, P, T, BL = np.meshgrid(tile, a, par, t, bl, indexing="ij")
    b_row = (TI * b_tile + BL).ravel().astype(np.int32)
    i_row = (4 * T + 2 * P + A // 2).ravel().astype(np.int32)
    aj_row = (A % 2).ravel().astype(np.int32)
    q = np.arange(12); d = np.arange(5)
    Q, DI, DJ = np.meshgrid(q, d, d, indexing="ij")
    cq, cdi, cdj = Q.ravel(), DI.ravel(), DJ.ravel()
    i_idx = (i_row[:, None] + cdi[None, :]).astype(np.int32)
    j_idx = (2 * cq[None, :] + aj_row[:, None] + cdj[None, :]).astype(np.int32)
    b_idx = np.broadcast_to(b_row[:, None], i_idx.shape).astype(np.int32)
    return b_idx, i_idx, j_idx


def net_forward(x, prep):
    B = x.shape[0]
    b_pad = ((B + B_TILE - 1) // B_TILE) * B_TILE
    nt = b_pad // B_TILE

    xp = x[:, 0]                                          # [B, 28, 28]
    if b_pad != B:
        xp = jnp.pad(xp, ((0, b_pad - B), (0, 0), (0, 0)))
    b_idx, i_idx, j_idx = _p1_indices(b_pad, B_TILE)
    # conv1 patch gather (~14 KB/image) stays in XLA outside the kernel.
    p1 = xp[b_idx, i_idx, j_idx].astype(jnp.bfloat16)     # [nt*48*B_TILE, 300]

    const2 = lambda i: (0, 0)
    const3 = lambda i: (0, 0, 0)
    out = pl.pallas_call(
        net_kernel,
        out_shape=jax.ShapeDtypeStruct((b_pad, NCP), jnp.float32),
        grid_spec=pltpu.PrefetchScalarGridSpec(
            num_scalar_prefetch=0,
            grid=(nt,),
            in_specs=[
                pl.BlockSpec((48 * B_TILE, K1), lambda i: (i, 0)),   # conv1 patches
                pl.BlockSpec((K1, C1L), const2),                     # w1
                pl.BlockSpec((1, C1L), const2),                      # b1
                pl.BlockSpec((10, C1L, C2L), const3),                # t2
                pl.BlockSpec((1, C2L), const2),                      # b2
                pl.BlockSpec((4, C2L, NH), const3),                  # wf1
                pl.BlockSpec((1, NH), const2),                       # bf1
                pl.BlockSpec((NH, NCP), const2),                     # wf2
                pl.BlockSpec((1, NCP), const2),                      # bf2
            ],
            out_specs=pl.BlockSpec((B_TILE, NCP), lambda i: (i, 0)),
            scratch_shapes=[
                pltpu.VMEM((12 * B_TILE, C1L), jnp.bfloat16),        # pooled1
                pltpu.VMEM((4 * B_TILE, C2L), jnp.bfloat16),         # pooled2
            ]),
        compiler_params=pltpu.CompilerParams(
            dimension_semantics=("parallel",)),
    )(p1, prep["w1"], prep["b1"], prep["t2"], prep["b2"],
      prep["wf1"], prep["bf1"], prep["wf2"], prep["bf2"])
    return out[:B, :NC]


# -------------------- one-time weight packing (outside jit) -----------------

def prepare_params(params):
    w_c1, b_c1, w_c2, b_c2, w_f1, b_f1, w_f2, b_f2 = [
        np.asarray(p, np.float32) for p in params]

    # conv1: block-diagonal weight so one matmul yields lanes (q, c1)
    w1m = w_c1.reshape(C1, 25).T                            # [25, 20]
    w1 = np.zeros((K1, C1L), np.float32)
    for q in range(12):
        w1[q * 25:(q + 1) * 25, q * C1:(q + 1) * C1] = w1m
    b1 = np.zeros((1, C1L), np.float32)
    b1[0, :12 * C1] = np.tile(b_c1, 12)

    # conv2: Toeplitz-along-W weights, one per (j-corner sj, H-tap di)
    t2 = np.zeros((2, 5, C1L, C2L), np.float32)
    for sj in range(2):
        for di in range(5):
            for v in range(4):
                for dj in range(5):
                    q = 2 * v + sj + dj                      # always < 12
                    t2[sj, di, q * C1:(q + 1) * C1, v * C2P:v * C2P + 50] = \
                        w_c2[:, :, di, dj].T                 # [c1, oc]
    t2 = t2.reshape(10, C1L, C2L)
    b2 = np.zeros((1, C2L), np.float32)
    for v in range(4):
        b2[0, v * C2P:v * C2P + 50] = b_c2

    # fc1: per-pool2-row (u) slabs matching the (v, oc) lane layout;
    # torch flatten .view(-1, 800) -> feature index oc*16 + u*4 + v
    wf1 = np.zeros((4, C2L, NH), np.float32)
    wf1r = w_f1.reshape(500, 50, 4, 4)                      # [n, oc, u, v]
    for u in range(4):
        for v in range(4):
            wf1[u, v * C2P:v * C2P + 50, :500] = wf1r[:, :, u, v].T
    bf1 = np.zeros((1, NH), np.float32)
    bf1[0, :500] = b_f1

    # fc2: classes padded to 128 lanes; padded lanes get bias -1e30 so that
    # exp(z_pad - lse) == 0 and the log_softmax is over the 10 real classes.
    wf2 = np.zeros((NH, NCP), np.float32)
    wf2[:500, :NC] = w_f2.T
    bf2 = np.full((1, NCP), -1e30, np.float32)
    bf2[0, :NC] = b_f2

    bf16 = jnp.bfloat16
    return dict(w1=jnp.asarray(w1, bf16), b1=jnp.asarray(b1),
                t2=jnp.asarray(t2, bf16), b2=jnp.asarray(b2),
                wf1=jnp.asarray(wf1, bf16), bf1=jnp.asarray(bf1),
                wf2=jnp.asarray(wf2, bf16), bf2=jnp.asarray(bf2))


# ---------------------- plain-jnp reference (for checking) ------------------

def net_reference(x, params):
    w_c1, b_c1, w_c2, b_c2, w_f1, b_f1, w_f2, b_f2 = [
        jnp.asarray(p, jnp.float32) for p in params]

    def conv(y, w, b):
        out = jax.lax.conv_general_dilated(
            y, w, window_strides=(1, 1), padding="VALID",
            dimension_numbers=("NCHW", "OIHW", "NCHW"))
        return out + b[None, :, None, None]

    def pool(y):
        b, c, h, w = y.shape
        return y.reshape(b, c, h // 2, 2, w // 2, 2).max(axis=(3, 5))

    y = pool(jnp.maximum(conv(x, w_c1, b_c1), 0.0))
    y = pool(jnp.maximum(conv(y, w_c2, b_c2), 0.0))
    y = y.reshape(y.shape[0], -1)                         # oc*16 + u*4 + v
    y = jnp.maximum(y @ w_f1.T + b_f1, 0.0)
    z = y @ w_f2.T + b_f2
    m = jnp.max(z, axis=1, keepdims=True)
    lse = jnp.log(jnp.sum(jnp.exp(z - m), axis=1, keepdims=True)) + m
    return z - lse


# ------------------------------ params init ---------------------------------

def init_params(key):
    ks = jax.random.split(key, 8)

    def u(k, shape, fan_in):
        bound = 1.0 / float(fan_in) ** 0.5
        return jax.random.uniform(k, shape, jnp.float32, -bound, bound)

    w_c1 = u(ks[0], (20, 1, 5, 5), 25)      # torch conv weight [OC, IC, KH, KW]
    b_c1 = u(ks[1], (20,), 25)
    w_c2 = u(ks[2], (50, 20, 5, 5), 500)
    b_c2 = u(ks[3], (50,), 500)
    w_f1 = u(ks[4], (500, 800), 800)        # torch linear weight [out, in]
    b_f1 = u(ks[5], (500,), 800)
    w_f2 = u(ks[6], (10, 500), 500)
    b_f2 = u(ks[7], (10,), 500)
    return (w_c1, b_c1, w_c2, b_c2, w_f1, b_f1, w_f2, b_f2)


# --------------------------------- main --------------------------------------

if __name__ == "__main__":
    key = jax.random.PRNGKey(0)
    kx, kp = jax.random.split(key)

    x = jax.random.normal(kx, (2, 1, 28, 28), jnp.float32)
    params = init_params(kp)
    prep = prepare_params(params)           # weight re-packing, once, outside jit

    out = jax.jit(net_forward)(x, prep)
    out = jax.block_until_ready(out)
    assert out.shape == (2, 10), out.shape

    # numerical check against the plain-jnp reference Net (bf16 matmul operands)
    ref = net_reference(x, params)
    max_err = float(jnp.max(jnp.abs(out - ref)))
    assert max_err < 2e-2, f"max |kernel - reference| = {max_err}"

    # log_softmax rows must exponentiate-sum to 1
    row_sums = jnp.sum(jnp.exp(out), axis=1)
    assert bool(jnp.allclose(row_sums, 1.0, atol=1e-4)), row_sums

    print("KERNEL_OK")
</pallas_src>

<mosaic_0001>
module attributes {stable_mosaic.version = 11 : i64} {
  func.func @net_kernel(%arg0: i32, %arg1: memref<384x300xbf16, #tpu.memory_space<vmem>>, %arg2: memref<300x256xbf16, #tpu.memory_space<vmem>>, %arg3: memref<1x256xf32, #tpu.memory_space<vmem>>, %arg4: memref<10x256x256xbf16, #tpu.memory_space<vmem>>, %arg5: memref<1x256xf32, #tpu.memory_space<vmem>>, %arg6: memref<4x256x512xbf16, #tpu.memory_space<vmem>>, %arg7: memref<1x512xf32, #tpu.memory_space<vmem>>, %arg8: memref<512x128xbf16, #tpu.memory_space<vmem>>, %arg9: memref<1x128xf32, #tpu.memory_space<vmem>>, %arg10: memref<8x128xf32, #tpu.memory_space<vmem>>, %arg11: memref<96x256xbf16, #tpu.memory_space<vmem>>, %arg12: memref<32x256xbf16, #tpu.memory_space<vmem>>) attributes {dimension_semantics = [#tpu.dimension_semantics<parallel>], iteration_bounds = array<i64: 1>, scalar_prefetch = 0 : i64, scratch_operands = 2 : i64, tpu.core_type = #tpu.core_type<tc>, window_params = [{transform_indices = @transform_0, window_bounds = array<i64: 384, 300>}, {pipeline_mode = #tpu.pipeline_mode<synchronous>, transform_indices = @transform_1, window_bounds = array<i64: 300, 256>}, {pipeline_mode = #tpu.pipeline_mode<synchronous>, transform_indices = @transform_2, window_bounds = array<i64: 1, 256>}, {pipeline_mode = #tpu.pipeline_mode<synchronous>, transform_indices = @transform_3, window_bounds = array<i64: 10, 256, 256>}, {pipeline_mode = #tpu.pipeline_mode<synchronous>, transform_indices = @transform_4, window_bounds = array<i64: 1, 256>}, {pipeline_mode = #tpu.pipeline_mode<synchronous>, transform_indices = @transform_5, window_bounds = array<i64: 4, 256, 512>}, {pipeline_mode = #tpu.pipeline_mode<synchronous>, transform_indices = @transform_6, window_bounds = array<i64: 1, 512>}, {pipeline_mode = #tpu.pipeline_mode<synchronous>, transform_indices = @transform_7, window_bounds = array<i64: 512, 128>}, {pipeline_mode = #tpu.pipeline_mode<synchronous>, transform_indices = @transform_8, window_bounds = array<i64: 1, 128>}, {transform_indices = @transform_9, window_bounds = array<i64: 8, 128>}]} {
    %c0 = arith.constant 0 : index
    %c0_0 = arith.constant 0 : index
    %0 = vector.load %arg2[%c0, %c0_0] : memref<300x256xbf16, #tpu.memory_space<vmem>>, vector<300x256xbf16>
    %c0_1 = arith.constant 0 : index
    %c0_2 = arith.constant 0 : index
    %1 = vector.load %arg3[%c0_1, %c0_2] : memref<1x256xf32, #tpu.memory_space<vmem>>, vector<1x256xf32>
    %c0_3 = arith.constant 0 : index
    %c0_4 = arith.constant 0 : index
    %2 = vector.load %arg1[%c0_3, %c0_4] : memref<384x300xbf16, #tpu.memory_space<vmem>>, vector<96x300xbf16>
    %cst = arith.constant dense<0.000000e+00> : vector<96x256xf32>
    %3 = tpu.matmul %2, %0, %cst {dimension_numbers = #tpu.dot_dimension_numbers<[1], [0], [0], [1], [0, 0, 1, 1], [], []>} : vector<96x300xbf16>, vector<300x256xbf16>, vector<96x256xf32> -> vector<96x256xf32>
    %4 = vector.broadcast %1 : vector<1x256xf32> to vector<96x256xf32>
    %5 = arith.addf %3, %4 : vector<96x256xf32>
    %cst_5 = arith.constant 0.000000e+00 : f32
    %6 = vector.broadcast %cst_5 : f32 to vector<96x256xf32>
    %7 = arith.maximumf %5, %6 : vector<96x256xf32>
    %c96 = arith.constant 96 : index
    %c0_6 = arith.constant 0 : index
    %8 = vector.load %arg1[%c96, %c0_6] : memref<384x300xbf16, #tpu.memory_space<vmem>>, vector<96x300xbf16>
    %cst_7 = arith.constant dense<0.000000e+00> : vector<96x256xf32>
    %9 = tpu.matmul %8, %0, %cst_7 {dimension_numbers = #tpu.dot_dimension_numbers<[1], [0], [0], [1], [0, 0, 1, 1], [], []>} : vector<96x300xbf16>, vector<300x256xbf16>, vector<96x256xf32> -> vector<96x256xf32>
    %10 = vector.broadcast %1 : vector<1x256xf32> to vector<96x256xf32>
    %11 = arith.addf %9, %10 : vector<96x256xf32>
    %cst_8 = arith.constant 0.000000e+00 : f32
    %12 = vector.broadcast %cst_8 : f32 to vector<96x256xf32>
    %13 = arith.maximumf %11, %12 : vector<96x256xf32>
    %14 = arith.maximumf %7, %13 : vector<96x256xf32>
    %c192 = arith.constant 192 : index
    %c0_9 = arith.constant 0 : index
    %15 = vector.load %arg1[%c192, %c0_9] : memref<384x300xbf16, #tpu.memory_space<vmem>>, vector<96x300xbf16>
    %cst_10 = arith.constant dense<0.000000e+00> : vector<96x256xf32>
    %16 = tpu.matmul %15, %0, %cst_10 {dimension_numbers = #tpu.dot_dimension_numbers<[1], [0], [0], [1], [0, 0, 1, 1], [], []>} : vector<96x300xbf16>, vector<300x256xbf16>, vector<96x256xf32> -> vector<96x256xf32>
    %17 = vector.broadcast %1 : vector<1x256xf32> to vector<96x256xf32>
    %18 = arith.addf %16, %17 : vector<96x256xf32>
    %cst_11 = arith.constant 0.000000e+00 : f32
    %19 = vector.broadcast %cst_11 : f32 to vector<96x256xf32>
    %20 = arith.maximumf %18, %19 : vector<96x256xf32>
    %21 = arith.maximumf %14, %20 : vector<96x256xf32>
    %c288 = arith.constant 288 : index
    %c0_12 = arith.constant 0 : index
    %22 = vector.load %arg1[%c288, %c0_12] : memref<384x300xbf16, #tpu.memory_space<vmem>>, vector<96x300xbf16>
    %cst_13 = arith.constant dense<0.000000e+00> : vector<96x256xf32>
    %23 = tpu.matmul %22, %0, %cst_13 {dimension_numbers = #tpu.dot_dimension_numbers<[1], [0], [0], [1], [0, 0, 1, 1], [], []>} : vector<96x300xbf16>, vector<300x256xbf16>, vector<96x256xf32> -> vector<96x256xf32>
    %24 = vector.broadcast %1 : vector<1x256xf32> to vector<96x256xf32>
    %25 = arith.addf %23, %24 : vector<96x256xf32>
    %cst_14 = arith.constant 0.000000e+00 : f32
    %26 = vector.broadcast %cst_14 : f32 to vector<96x256xf32>
    %27 = arith.maximumf %25, %26 : vector<96x256xf32>
    %28 = arith.maximumf %21, %27 : vector<96x256xf32>
    %29 = arith.truncf %28 : vector<96x256xf32> to vector<96x256xbf16>
    %c0_15 = arith.constant 0 : index
    %c0_16 = arith.constant 0 : index
    %30 = vector.load %arg11[%c0_15, %c0_16] : memref<96x256xbf16, #tpu.memory_space<vmem>>, vector<96x256xbf16>
    tpu.vector_store %arg11[%c0_15, %c0_16], %29 {strides = array<i32>} : memref<96x256xbf16, #tpu.memory_space<vmem>>, vector<96x256xbf16>,
    %c0_17 = arith.constant 0 : index
    %c0_18 = arith.constant 0 : index
    %31 = vector.load %arg5[%c0_17, %c0_18] : memref<1x256xf32, #tpu.memory_space<vmem>>, vector<1x256xf32>
    %c0_19 = arith.constant 0 : index
    %c0_20 = arith.constant 0 : index
    %32 = vector.load %arg11[%c0_19, %c0_20] : memref<96x256xbf16, #tpu.memory_space<vmem>>, vector<32x256xbf16>
    %c0_21 = arith.constant 0 : index
    %c0_22 = arith.constant 0 : index
    %c0_23 = arith.constant 0 : index
    %33 = vector.load %arg4[%c0_21, %c0_22, %c0_23] : memref<10x256x256xbf16, #tpu.memory_space<vmem>>, vector<1x256x256xbf16>
    %34 = vector.shape_cast %33 : vector<1x256x256xbf16> to vector<256x256xbf16>
    %cst_24 = arith.constant dense<0.000000e+00> : vector<32x256xf32>
    %35 = tpu.matmul %32, %34, %cst_24 {dimension_numbers = #tpu.dot_dimension_numbers<[1], [0], [0], [1], [0, 0, 1, 1], [], []>} : vector<32x256xbf16>, vector<256x256xbf16>, vector<32x256xf32> -> vector<32x256xf32>
    %c5 = arith.constant 5 : index
    %c0_25 = arith.constant 0 : index
    %c0_26 = arith.constant 0 : index
    %36 = vector.load %arg4[%c5, %c0_25, %c0_26] : memref<10x256x256xbf16, #tpu.memory_space<vmem>>, vector<1x256x256xbf16>
    %37 = vector.shape_cast %36 : vector<1x256x256xbf16> to vector<256x256xbf16>
    %cst_27 = arith.constant dense<0.000000e+00> : vector<32x256xf32>
    %38 = tpu.matmul %32, %37, %cst_27 {dimension_numbers = #tpu.dot_dimension_numbers<[1], [0], [0], [1], [0, 0, 1, 1], [], []>} : vector<32x256xbf16>, vector<256x256xbf16>, vector<32x256xf32> -> vector<32x256xf32>
    %c48 = arith.constant 48 : index
    %c0_28 = arith.constant 0 : index
    %39 = vector.load %arg11[%c48, %c0_28] : memref<96x256xbf16, #tpu.memory_space<vmem>>, vector<32x256xbf16>
    %c1 = arith.constant 1 : index
    %c0_29 = arith.constant 0 : index
    %c0_30 = arith.constant 0 : index
    %40 = vector.load %arg4[%c1, %c0_29, %c0_30] : memref<10x256x256xbf16, #tpu.memory_space<vmem>>, vector<1x256x256xbf16>
    %41 = vector.shape_cast %40 : vector<1x256x256xbf16> to vector<256x256xbf16>
    %cst_31 = arith.constant dense<0.000000e+00> : vector<32x256xf32>
    %42 = tpu.matmul %39, %41, %cst_31 {dimension_numbers = #tpu.dot_dimension_numbers<[1], [0], [0], [1], [0, 0, 1, 1], [], []>} : vector<32x256xbf16>, vector<256x256xbf16>, vector<32x256xf32> -> vector<32x256xf32>
    %c6 = arith.constant 6 : index
    %c0_32 = arith.constant 0 : index
    %c0_33 = arith.constant 0 : index
    %43 = vector.load %arg4[%c6, %c0_32, %c0_33] : memref<10x256x256xbf16, #tpu.memory_space<vmem>>, vector<1x256x256xbf16>
    %44 = vector.shape_cast %43 : vector<1x256x256xbf16> to vector<256x256xbf16>
    %cst_34 = arith.constant dense<0.000000e+00> : vector<32x256xf32>
    %45 = tpu.matmul %39, %44, %cst_34 {dimension_numbers = #tpu.dot_dimension_numbers<[1], [0], [0], [1], [0, 0, 1, 1], [], []>} : vector<32x256xbf16>, vector<256x256xbf16>, vector<32x256xf32> -> vector<32x256xf32>
    %46 = arith.addf %35, %42 : vector<32x256xf32>
    %47 = arith.addf %38, %45 : vector<32x256xf32>
    %c8 = arith.constant 8 : index
    %c0_35 = arith.constant 0 : index
    %48 = vector.load %arg11[%c8, %c0_35] : memref<96x256xbf16, #tpu.memory_space<vmem>>, vector<32x256xbf16>
    %c2 = arith.constant 2 : index
    %c0_36 = arith.constant 0 : index
    %c0_37 = arith.constant 0 : index
    %49 = vector.load %arg4[%c2, %c0_36, %c0_37] : memref<10x256x256xbf16, #tpu.memory_space<vmem>>, vector<1x256x256xbf16>
    %50 = vector.shape_cast %49 : vector<1x256x256xbf16> to vector<256x256xbf16>
    %cst_38 = arith.constant dense<0.000000e+00> : vector<32x256xf32>
    %51 = tpu.matmul %48, %50, %cst_38 {dimension_numbers = #tpu.dot_dimension_numbers<[1], [0], [0], [1], [0, 0, 1, 1], [], []>} : vector<32x256xbf16>, vector<256x256xbf16>, vector<32x256xf32> -> vector<32x256xf32>
    %c7 = arith.constant 7 : index
    %c0_39 = arith.constant 0 : index
    %c0_40 = arith.constant 0 : index
    %52 = vector.load %arg4[%c7, %c0_39, %c0_40] : memref<10x256x256xbf16, #tpu.memory_space<vmem>>, vector<1x256x256xbf16>
    %53 = vector.shape_cast %52 : vector<1x256x256xbf16> to vector<256x256xbf16>
    %cst_41 = arith.constant dense<0.000000e+00> : vector<32x256xf32>
    %54 = tpu.matmul %48, %53, %cst_41 {dimension_numbers = #tpu.dot_dimension_numbers<[1], [0], [0], [1], [0, 0, 1, 1], [], []>} : vector<32x256xbf16>, vector<256x256xbf16>, vector<32x256xf32> -> vector<32x256xf32>
    %55 = arith.addf %46, %51 : vector<32x256xf32>
    %56 = arith.addf %47, %54 : vector<32x256xf32>
    %c56 = arith.constant 56 : index
    %c0_42 = arith.constant 0 : index
    %57 = vector.load %arg11[%c56, %c0_42] : memref<96x256xbf16, #tpu.memory_space<vmem>>, vector<32x256xbf16>
    %c3 = arith.constant 3 : index
    %c0_43 = arith.constant 0 : index
    %c0_44 = arith.constant 0 : index
    %58 = vector.load %arg4[%c3, %c0_43, %c0_44] : memref<10x256x256xbf16, #tpu.memory_space<vmem>>, vector<1x256x256xbf16>
    %59 = vector.shape_cast %58 : vector<1x256x256xbf16> to vector<256x256xbf16>
    %cst_45 = arith.constant dense<0.000000e+00> : vector<32x256xf32>
    %60 = tpu.matmul %57, %59, %cst_45 {dimension_numbers = #tpu.dot_dimension_numbers<[1], [0], [0], [1], [0, 0, 1, 1], [], []>} : vector<32x256xbf16>, vector<256x256xbf16>, vector<32x256xf32> -> vector<32x256xf32>
    %c8_46 = arith.constant 8 : index
    %c0_47 = arith.constant 0 : index
    %c0_48 = arith.constant 0 : index
    %61 = vector.load %arg4[%c8_46, %c0_47, %c0_48] : memref<10x256x256xbf16, #tpu.memory_space<vmem>>, vector<1x256x256xbf16>
    %62 = vector.shape_cast %61 : vector<1x256x256xbf16> to vector<256x256xbf16>
    %cst_49 = arith.constant dense<0.000000e+00> : vector<32x256xf32>
    %63 = tpu.matmul %57, %62, %cst_49 {dimension_numbers = #tpu.dot_dimension_numbers<[1], [0], [0], [1], [0, 0, 1, 1], [], []>} : vector<32x256xbf16>, vector<256x256xbf16>, vector<32x256xf32> -> vector<32x256xf32>
    %64 = arith.addf %55, %60 : vector<32x256xf32>
    %65 = arith.addf %56, %63 : vector<32x256xf32>
    %c16 = arith.constant 16 : index
    %c0_50 = arith.constant 0 : index
    %66 = vector.load %arg11[%c16, %c0_50] : memref<96x256xbf16, #tpu.memory_space<vmem>>, vector<32x256xbf16>
    %c4 = arith.constant 4 : index
    %c0_51 = arith.constant 0 : index
    %c0_52 = arith.constant 0 : index
    %67 = vector.load %arg4[%c4, %c0_51, %c0_52] : memref<10x256x256xbf16, #tpu.memory_space<vmem>>, vector<1x256x256xbf16>
    %68 = vector.shape_cast %67 : vector<1x256x256xbf16> to vector<256x256xbf16>
    %cst_53 = arith.constant dense<0.000000e+00> : vector<32x256xf32>
    %69 = tpu.matmul %66, %68, %cst_53 {dimension_numbers = #tpu.dot_dimension_numbers<[1], [0], [0], [1], [0, 0, 1, 1], [], []>} : vector<32x256xbf16>, vector<256x256xbf16>, vector<32x256xf32> -> vector<32x256xf32>
    %c9 = arith.constant 9 : index
    %c0_54 = arith.constant 0 : index
    %c0_55 = arith.constant 0 : index
    %70 = vector.load %arg4[%c9, %c0_54, %c0_55] : memref<10x256x256xbf16, #tpu.memory_space<vmem>>, vector<1x256x256xbf16>
    %71 = vector.shape_cast %70 : vector<1x256x256xbf16> to vector<256x256xbf16>
    %cst_56 = arith.constant dense<0.000000e+00> : vector<32x256xf32>
    %72 = tpu.matmul %66, %71, %cst_56 {dimension_numbers = #tpu.dot_dimension_numbers<[1], [0], [0], [1], [0, 0, 1, 1], [], []>} : vector<32x256xbf16>, vector<256x256xbf16>, vector<32x256xf32> -> vector<32x256xf32>
    %73 = arith.addf %64, %69 : vector<32x256xf32>
    %74 = arith.addf %65, %72 : vector<32x256xf32>
    %75 = vector.broadcast %31 : vector<1x256xf32> to vector<32x256xf32>
    %76 = arith.addf %73, %75 : vector<32x256xf32>
    %cst_57 = arith.constant 0.000000e+00 : f32
    %77 = vector.broadcast %cst_57 : f32 to vector<32x256xf32>
    %78 = arith.maximumf %76, %77 : vector<32x256xf32>
    %79 = vector.broadcast %31 : vector<1x256xf32> to vector<32x256xf32>
    %80 = arith.addf %74, %79 : vector<32x256xf32>
    %cst_58 = arith.constant 0.000000e+00 : f32
    %81 = vector.broadcast %cst_58 : f32 to vector<32x256xf32>
    %82 = arith.maximumf %80, %81 : vector<32x256xf32>
    %83 = arith.maximumf %78, %82 : vector<32x256xf32>
    %c48_59 = arith.constant 48 : index
    %c0_60 = arith.constant 0 : index
    %84 = vector.load %arg11[%c48_59, %c0_60] : memref<96x256xbf16, #tpu.memory_space<vmem>>, vector<32x256xbf16>
    %c0_61 = arith.constant 0 : index
    %c0_62 = arith.constant 0 : index
    %c0_63 = arith.constant 0 : index
    %85 = vector.load %arg4[%c0_61, %c0_62, %c0_63] : memref<10x256x256xbf16, #tpu.memory_space<vmem>>, vector<1x256x256xbf16>
    %86 = vector.shape_cast %85 : vector<1x256x256xbf16> to vector<256x256xbf16>
    %cst_64 = arith.constant dense<0.000000e+00> : vector<32x256xf32>
    %87 = tpu.matmul %84, %86, %cst_64 {dimension_numbers = #tpu.dot_dimension_numbers<[1], [0], [0], [1], [0, 0, 1, 1], [], []>} : vector<32x256xbf16>, vector<256x256xbf16>, vector<32x256xf32> -> vector<32x256xf32>
    %c5_65 = arith.constant 5 : index
    %c0_66 = arith.constant 0 : index
    %c0_67 = arith.constant 0 : index
    %88 = vector.load %arg4[%c5_65, %c0_66, %c0_67] : memref<10x256x256xbf16, #tpu.memory_space<vmem>>, vector<1x256x256xbf16>
    %89 = vector.shape_cast %88 : vector<1x256x256xbf16> to vector<256x256xbf16>
    %cst_68 = arith.constant dense<0.000000e+00> : vector<32x256xf32>
    %90 = tpu.matmul %84, %89, %cst_68 {dimension_numbers = #tpu.dot_dimension_numbers<[1], [0], [0], [1], [0, 0, 1, 1], [], []>} : vector<32x256xbf16>, vector<256x256xbf16>, vector<32x256xf32> -> vector<32x256xf32>
    %c8_69 = arith.constant 8 : index
    %c0_70 = arith.constant 0 : index
    %91 = vector.load %arg11[%c8_69, %c0_70] : memref<96x256xbf16, #tpu.memory_space<vmem>>, vector<32x256xbf16>
    %c1_71 = arith.constant 1 : index
    %c0_72 = arith.constant 0 : index
    %c0_73 = arith.constant 0 : index
    %92 = vector.load %arg4[%c1_71, %c0_72, %c0_73] : memref<10x256x256xbf16, #tpu.memory_space<vmem>>, vector<1x256x256xbf16>
    %93 = vector.shape_cast %92 : vector<1x256x256xbf16> to vector<256x256xbf16>
    %cst_74 = arith.constant dense<0.000000e+00> : vector<32x256xf32>
    %94 = tpu.matmul %91, %93, %cst_74 {dimension_numbers = #tpu.dot_dimension_numbers<[1], [0], [0], [1], [0, 0, 1, 1], [], []>} : vector<32x256xbf16>, vector<256x256xbf16>, vector<32x256xf32> -> vector<32x256xf32>
    %c6_75 = arith.constant 6 : index
    %c0_76 = arith.constant 0 : index
    %c0_77 = arith.constant 0 : index
    %95 = vector.load %arg4[%c6_75, %c0_76, %c0_77] : memref<10x256x256xbf16, #tpu.memory_space<vmem>>, vector<1x256x256xbf16>
    %96 = vector.shape_cast %95 : vector<1x256x256xbf16> to vector<256x256xbf16>
    %cst_78 = arith.constant dense<0.000000e+00> : vector<32x256xf32>
    %97 = tpu.matmul %91, %96, %cst_78 {dimension_numbers = #tpu.dot_dimension_numbers<[1], [0], [0], [1], [0, 0, 1, 1], [], []>} : vector<32x256xbf16>, vector<256x256xbf16>, vector<32x256xf32> -> vector<32x256xf32>
    %98 = arith.addf %87, %94 : vector<32x256xf32>
    %99 = arith.addf %90, %97 : vector<32x256xf32>
    %c56_79 = arith.constant 56 : index
    %c0_80 = arith.constant 0 : index
    %100 = vector.load %arg11[%c56_79, %c0_80] : memref<96x256xbf16, #tpu.memory_space<vmem>>, vector<32x256xbf16>
    %c2_81 = arith.constant 2 : index
    %c0_82 = arith.constant 0 : index
    %c0_83 = arith.constant 0 : index
    %101 = vector.load %arg4[%c2_81, %c0_82, %c0_83] : memref<10x256x256xbf16, #tpu.memory_space<vmem>>, vector<1x256x256xbf16>
    %102 = vector.shape_cast %101 : vector<1x256x256xbf16> to vector<256x256xbf16>
    %cst_84 = arith.constant dense<0.000000e+00> : vector<32x256xf32>
    %103 = tpu.matmul %100, %102, %cst_84 {dimension_numbers = #tpu.dot_dimension_numbers<[1], [0], [0], [1], [0, 0, 1, 1], [], []>} : vector<32x256xbf16>, vector<256x256xbf16>, vector<32x256xf32> -> vector<32x256xf32>
    %c7_85 = arith.constant 7 : index
    %c0_86 = arith.constant 0 : index
    %c0_87 = arith.constant 0 : index
    %104 = vector.load %arg4[%c7_85, %c0_86, %c0_87] : memref<10x256x256xbf16, #tpu.memory_space<vmem>>, vector<1x256x256xbf16>
    %105 = vector.shape_cast %104 : vector<1x256x256xbf16> to vector<256x256xbf16>
    %cst_88 = arith.constant dense<0.000000e+00> : vector<32x256xf32>
    %106 = tpu.matmul %100, %105, %cst_88 {dimension_numbers = #tpu.dot_dimension_numbers<[1], [0], [0], [1], [0, 0, 1, 1], [], []>} : vector<32x256xbf16>, vector<256x256xbf16>, vector<32x256xf32> -> vector<32x256xf32>
    %107 = arith.addf %98, %103 : vector<32x256xf32>
    %108 = arith.addf %99, %106 : vector<32x256xf32>
    %c16_89 = arith.constant 16 : index
    %c0_90 = arith.constant 0 : index
    %109 = vector.load %arg11[%c16_89, %c0_90] : memref<96x256xbf16, #tpu.memory_space<vmem>>, vector<32x256xbf16>
    %c3_91 = arith.constant 3 : index
    %c0_92 = arith.constant 0 : index
    %c0_93 = arith.constant 0 : index
    %110 = vector.load %arg4[%c3_91, %c0_92, %c0_93] : memref<10x256x256xbf16, #tpu.memory_space<vmem>>, vector<1x256x256xbf16>
    %111 = vector.shape_cast %110 : vector<1x256x256xbf16> to vector<256x256xbf16>
    %cst_94 = arith.constant dense<0.000000e+00> : vector<32x256xf32>
    %112 = tpu.matmul %109, %111, %cst_94 {dimension_numbers = #tpu.dot_dimension_numbers<[1], [0], [0], [1], [0, 0, 1, 1], [], []>} : vector<32x256xbf16>, vector<256x256xbf16>, vector<32x256xf32> -> vector<32x256xf32>
    %c8_95 = arith.constant 8 : index
    %c0_96 = arith.constant 0 : index
    %c0_97 = arith.constant 0 : index
    %113 = vector.load %arg4[%c8_95, %c0_96, %c0_97] : memref<10x256x256xbf16, #tpu.memory_space<vmem>>, vector<1x256x256xbf16>
    %114 = vector.shape_cast %113 : vector<1x256x256xbf16> to vector<256x256xbf16>
    %cst_98 = arith.constant dense<0.000000e+00> : vector<32x256xf32>
    %115 = tpu.matmul %109, %114, %cst_98 {dimension_numbers = #tpu.dot_dimension_numbers<[1], [0], [0], [1], [0, 0, 1, 1], [], []>} : vector<32x256xbf16>, vector<256x256xbf16>, vector<32x256xf32> -> vector<32x256xf32>
    %116 = arith.addf %107, %112 : vector<32x256xf32>
    %117 = arith.addf %108, %115 : vector<32x256xf32>
    %c64 = arith.constant 64 : index
    %c0_99 = arith.constant 0 : index
    %118 = vector.load %arg11[%c64, %c0_99] : memref<96x256xbf16, #tpu.memory_space<vmem>>, vector<32x256xbf16>
    %c4_100 = arith.constant 4 : index
    %c0_101 = arith.constant 0 : index
    %c0_102 = arith.constant 0 : index
    %119 = vector.load %arg4[%c4_100, %c0_101, %c0_102] : memref<10x256x256xbf16, #tpu.memory_space<vmem>>, vector<1x256x256xbf16>
    %120 = vector.shape_cast %119 : vector<1x256x256xbf16> to vector<256x256xbf16>
    %cst_103 = arith.constant dense<0.000000e+00> : vector<32x256xf32>
    %121 = tpu.matmul %118, %120, %cst_103 {dimension_numbers = #tpu.dot_dimension_numbers<[1], [0], [0], [1], [0, 0, 1, 1], [], []>} : vector<32x256xbf16>, vector<256x256xbf16>, vector<32x256xf32> -> vector<32x256xf32>
    %c9_104 = arith.constant 9 : index
    %c0_105 = arith.constant 0 : index
    %c0_106 = arith.constant 0 : index
    %122 = vector.load %arg4[%c9_104, %c0_105, %c0_106] : memref<10x256x256xbf16, #tpu.memory_space<vmem>>, vector<1x256x256xbf16>
    %123 = vector.shape_cast %122 : vector<1x256x256xbf16> to vector<256x256xbf16>
    %cst_107 = arith.constant dense<0.000000e+00> : vector<32x256xf32>
    %124 = tpu.matmul %118, %123, %cst_107 {dimension_numbers = #tpu.dot_dimension_numbers<[1], [0], [0], [1], [0, 0, 1, 1], [], []>} : vector<32x256xbf16>, vector<256x256xbf16>, vector<32x256xf32> -> vector<32x256xf32>
    %125 = arith.addf %116, %121 : vector<32x256xf32>
    %126 = arith.addf %117, %124 : vector<32x256xf32>
    %127 = vector.broadcast %31 : vector<1x256xf32> to vector<32x256xf32>
    %128 = arith.addf %125, %127 : vector<32x256xf32>
    %cst_108 = arith.constant 0.000000e+00 : f32
    %129 = vector.broadcast %cst_108 : f32 to vector<32x256xf32>
    %130 = arith.maximumf %128, %129 : vector<32x256xf32>
    %131 = vector.broadcast %31 : vector<1x256xf32> to vector<32x256xf32>
    %132 = arith.addf %126, %131 : vector<32x256xf32>
    %cst_109 = arith.constant 0.000000e+00 : f32
    %133 = vector.broadcast %cst_109 : f32 to vector<32x256xf32>
    %134 = arith.maximumf %132, %133 : vector<32x256xf32>
    %135 = arith.maximumf %130, %134 : vector<32x256xf32>
    %136 = arith.maximumf %83, %135 : vector<32x256xf32>
    %137 = arith.truncf %136 : vector<32x256xf32> to vector<32x256xbf16>
    %c0_110 = arith.constant 0 : index
    %c0_111 = arith.constant 0 : index
    %138 = vector.load %arg12[%c0_110, %c0_111] : memref<32x256xbf16, #tpu.memory_space<vmem>>, vector<32x256xbf16>
    tpu.vector_store %arg12[%c0_110, %c0_111], %137 {strides = array<i32>} : memref<32x256xbf16, #tpu.memory_space<vmem>>, vector<32x256xbf16>,
    %c0_112 = arith.constant 0 : index
    %c0_113 = arith.constant 0 : index
    %139 = vector.load %arg7[%c0_112, %c0_113] : memref<1x512xf32, #tpu.memory_space<vmem>>, vector<1x512xf32>
    %c0_114 = arith.constant 0 : index
    %c0_115 = arith.constant 0 : index
    %140 = vector.load %arg12[%c0_114, %c0_115] : memref<32x256xbf16, #tpu.memory_space<vmem>>, vector<8x256xbf16>
    %c0_116 = arith.constant 0 : index
    %c0_117 = arith.constant 0 : index
    %c0_118 = arith.constant 0 : index
    %141 = vector.load %arg6[%c0_116, %c0_117, %c0_118] : memref<4x256x512xbf16, #tpu.memory_space<vmem>>, vector<1x256x512xbf16>
    %142 = vector.shape_cast %141 : vector<1x256x512xbf16> to vector<256x512xbf16>
    %cst_119 = arith.constant dense<0.000000e+00> : vector<8x512xf32>
    %143 = tpu.matmul %140, %142, %cst_119 {dimension_numbers = #tpu.dot_dimension_numbers<[1], [0], [0], [1], [0, 0, 1, 1], [], []>} : vector<8x256xbf16>, vector<256x512xbf16>, vector<8x512xf32> -> vector<8x512xf32>
    %144 = vector.broadcast %139 : vector<1x512xf32> to vector<8x512xf32>
    %145 = arith.addf %144, %143 : vector<8x512xf32>
    %c8_120 = arith.constant 8 : index
    %c0_121 = arith.constant 0 : index
    %146 = vector.load %arg12[%c8_120, %c0_121] : memref<32x256xbf16, #tpu.memory_space<vmem>>, vector<8x256xbf16>
    %c1_122 = arith.constant 1 : index
    %c0_123 = arith.constant 0 : index
    %c0_124 = arith.constant 0 : index
    %147 = vector.load %arg6[%c1_122, %c0_123, %c0_124] : memref<4x256x512xbf16, #tpu.memory_space<vmem>>, vector<1x256x512xbf16>
    %148 = vector.shape_cast %147 : vector<1x256x512xbf16> to vector<256x512xbf16>
    %cst_125 = arith.constant dense<0.000000e+00> : vector<8x512xf32>
    %149 = tpu.matmul %146, %148, %cst_125 {dimension_numbers = #tpu.dot_dimension_numbers<[1], [0], [0], [1], [0, 0, 1, 1], [], []>} : vector<8x256xbf16>, vector<256x512xbf16>, vector<8x512xf32> -> vector<8x512xf32>
    %150 = arith.addf %145, %149 : vector<8x512xf32>
    %c16_126 = arith.constant 16 : index
    %c0_127 = arith.constant 0 : index
    %151 = vector.load %arg12[%c16_126, %c0_127] : memref<32x256xbf16, #tpu.memory_space<vmem>>, vector<8x256xbf16>
    %c2_128 = arith.constant 2 : index
    %c0_129 = arith.constant 0 : index
    %c0_130 = arith.constant 0 : index
    %152 = vector.load %arg6[%c2_128, %c0_129, %c0_130] : memref<4x256x512xbf16, #tpu.memory_space<vmem>>, vector<1x256x512xbf16>
    %153 = vector.shape_cast %152 : vector<1x256x512xbf16> to vector<256x512xbf16>
    %cst_131 = arith.constant dense<0.000000e+00> : vector<8x512xf32>
    %154 = tpu.matmul %151, %153, %cst_131 {dimension_numbers = #tpu.dot_dimension_numbers<[1], [0], [0], [1], [0, 0, 1, 1], [], []>} : vector<8x256xbf16>, vector<256x512xbf16>, vector<8x512xf32> -> vector<8x512xf32>
    %155 = arith.addf %150, %154 : vector<8x512xf32>
    %c24 = arith.constant 24 : index
    %c0_132 = arith.constant 0 : index
    %156 = vector.load %arg12[%c24, %c0_132] : memref<32x256xbf16, #tpu.memory_space<vmem>>, vector<8x256xbf16>
    %c3_133 = arith.constant 3 : index
    %c0_134 = arith.constant 0 : index
    %c0_135 = arith.constant 0 : index
    %157 = vector.load %arg6[%c3_133, %c0_134, %c0_135] : memref<4x256x512xbf16, #tpu.memory_space<vmem>>, vector<1x256x512xbf16>
    %158 = vector.shape_cast %157 : vector<1x256x512xbf16> to vector<256x512xbf16>
    %cst_136 = arith.constant dense<0.000000e+00> : vector<8x512xf32>
    %159 = tpu.matmul %156, %158, %cst_136 {dimension_numbers = #tpu.dot_dimension_numbers<[1], [0], [0], [1], [0, 0, 1, 1], [], []>} : vector<8x256xbf16>, vector<256x512xbf16>, vector<8x512xf32> -> vector<8x512xf32>
    %160 = arith.addf %155, %159 : vector<8x512xf32>
    %cst_137 = arith.constant 0.000000e+00 : f32
    %161 = vector.broadcast %cst_137 : f32 to vector<8x512xf32>
    %162 = arith.maximumf %160, %161 : vector<8x512xf32>
    %163 = arith.truncf %162 : vector<8x512xf32> to vector<8x512xbf16>
    %c0_138 = arith.constant 0 : index
    %c0_139 = arith.constant 0 : index
    %164 = vector.load %arg8[%c0_138, %c0_139] : memref<512x128xbf16, #tpu.memory_space<vmem>>, vector<512x128xbf16>
    %cst_140 = arith.constant dense<0.000000e+00> : vector<8x128xf32>
    %165 = tpu.matmul %163, %164, %cst_140 {dimension_numbers = #tpu.dot_dimension_numbers<[1], [0], [0], [1], [0, 0, 1, 1], [], []>} : vector<8x512xbf16>, vector<512x128xbf16>, vector<8x128xf32> -> vector<8x128xf32>
    %c0_141 = arith.constant 0 : index
    %c0_142 = arith.constant 0 : index
    %166 = vector.load %arg9[%c0_141, %c0_142] : memref<1x128xf32, #tpu.memory_space<vmem>>, vector<1x128xf32>
    %167 = vector.broadcast %166 : vector<1x128xf32> to vector<8x128xf32>
    %168 = arith.addf %165, %167 : vector<8x128xf32>
    %cst_143 = arith.constant dense<0xFF800000> : vector<8xf32>
    %169 = vector.multi_reduction <maximumf>, %168, %cst_143 [1] : vector<8x128xf32> to vector<8xf32>
    %170 = vector.shape_cast %169 : vector<8xf32> to vector<8x1xf32>
    %171 = vector.broadcast %170 : vector<8x1xf32> to vector<8x128xf32>
    %172 = arith.subf %168, %171 : vector<8x128xf32>
    %173 = math.exp %172 : vector<8x128xf32>
    %cst_144 = arith.constant dense<0.000000e+00> : vector<8xf32>
    %174 = vector.multi_reduction <add>, %173, %cst_144 [1] : vector<8x128xf32> to vector<8xf32>
    %175 = vector.shape_cast %174 : vector<8xf32> to vector<8x1xf32>
    %176 = math.log %175 : vector<8x1xf32>
    %177 = arith.addf %176, %170 : vector<8x1xf32>
    %178 = vector.broadcast %177 : vector<8x1xf32> to vector<8x128xf32>
    %179 = arith.subf %168, %178 : vector<8x128xf32>
    %c0_145 = arith.constant 0 : index
    %c0_146 = arith.constant 0 : index
    %180 = vector.load %arg10[%c0_145, %c0_146] : memref<8x128xf32, #tpu.memory_space<vmem>>, vector<8x128xf32>
    tpu.vector_store %arg10[%c0_145, %c0_146], %179 {strides = array<i32>} : memref<8x128xf32, #tpu.memory_space<vmem>>, vector<8x128xf32>,
    return
  }
  func.func @transform_0(%arg0: i32) -> (i32, i32) {
    %c0_i32 = arith.constant 0 : i32
    %c0_i32_0 = arith.constant 0 : i32
    return %arg0, %c0_i32 : i32, i32
  }
  func.func @transform_1(%arg0: i32) -> (i32, i32) {
    %c0_i32 = arith.constant 0 : i32
    %c0_i32_0 = arith.constant 0 : i32
    %c0_i32_1 = arith.constant 0 : i32
    return %c0_i32, %c0_i32_0 : i32, i32
  }
  func.func @transform_2(%arg0: i32) -> (i32, i32) {
    %c0_i32 = arith.constant 0 : i32
    %c0_i32_0 = arith.constant 0 : i32
    %c0_i32_1 = arith.constant 0 : i32
    return %c0_i32, %c0_i32_0 : i32, i32
  }
  func.func @transform_3(%arg0: i32) -> (i32, i32, i32) {
    %c0_i32 = arith.constant 0 : i32
    %c0_i32_0 = arith.constant 0 : i32
    %c0_i32_1 = arith.constant 0 : i32
    %c0_i32_2 = arith.constant 0 : i32
    return %c0_i32, %c0_i32_0, %c0_i32_1 : i32, i32, i32
  }
  func.func @transform_4(%arg0: i32) -> (i32, i32) {
    %c0_i32 = arith.constant 0 : i32
    %c0_i32_0 = arith.constant 0 : i32
    %c0_i32_1 = arith.constant 0 : i32
    return %c0_i32, %c0_i32_0 : i32, i32
  }
  func.func @transform_5(%arg0: i32) -> (i32, i32, i32) {
    %c0_i32 = arith.constant 0 : i32
    %c0_i32_0 = arith.constant 0 : i32
    %c0_i32_1 = arith.constant 0 : i32
    %c0_i32_2 = arith.constant 0 : i32
    return %c0_i32, %c0_i32_0, %c0_i32_1 : i32, i32, i32
  }
  func.func @transform_6(%arg0: i32) -> (i32, i32) {
    %c0_i32 = arith.constant 0 : i32
    %c0_i32_0 = arith.constant 0 : i32
    %c0_i32_1 = arith.constant 0 : i32
    return %c0_i32, %c0_i32_0 : i32, i32
  }
  func.func @transform_7(%arg0: i32) -> (i32, i32) {
    %c0_i32 = arith.constant 0 : i32
    %c0_i32_0 = arith.constant 0 : i32
    %c0_i32_1 = arith.constant 0 : i32
    return %c0_i32, %c0_i32_0 : i32, i32
  }
  func.func @transform_8(%arg0: i32) -> (i32, i32) {
    %c0_i32 = arith.constant 0 : i32
    %c0_i32_0 = arith.constant 0 : i32
    %c0_i32_1 = arith.constant 0 : i32
    return %c0_i32, %c0_i32_0 : i32, i32
  }
  func.func @transform_9(%arg0: i32) -> (i32, i32) {
    %c0_i32 = arith.constant 0 : i32
    %c0_i32_0 = arith.constant 0 : i32
    return %arg0, %c0_i32 : i32, i32
  }
}

</mosaic_0001>

<bundles_post_ra>
// kernel: net_forward.1
= control target key start
LH: loop header
LB: loop body
LE: loop exit
PB: predicated region body
PF: predicated region fallthrough
CT: control target
= control target key end

     0   :  { %vm404_vm0 = vcmask 1045504   ;;  %v10280_v63 = vmov 0   ;;  %vm385_vm1 = vcmask 359424   ;;  %vm2780_vm2 = vcmask 1043456   ;;  %s14109_s1 = inlined_call_operand.vmem [shape: bf16[300,256], index: 1, kind: input, shape index: {}]   ;;  %s14110_s0 = inlined_call_operand.vmem [shape: bf16[384,300], index: 0, kind: input, shape index: {}]   ;;  %s14111_s3 = inlined_call_operand.vmem [shape: bf16[10,256,256], index: 3, kind: input, shape index: {}]   ;;  %s14112_s2 = inlined_call_operand.vmem [shape: f32[1,256], index: 2, kind: input, shape index: {}]   ;;  %s14113_s4 = inlined_call_operand.vmem [shape: f32[1,256], index: 4, kind: input, shape index: {}]   ;;  %s14114_s5 = inlined_call_operand.vmem [shape: bf16[4,256,512], index: 5, kind: input, shape index: {}]   ;;  %s14115_s7 = inlined_call_operand.vmem [shape: bf16[512,128], index: 7, kind: input, shape index: {}]   ;;  %s14116_s6 = inlined_call_operand.vmem [shape: f32[1,512], index: 6, kind: input, shape index: {}]   ;;  %s14117_s8 = inlined_call_operand.vmem [shape: f32[1,128], index: 8, kind: input, shape index: {}]   ;;  %s14118_s9 = inlined_call_operand.vmem [shape: f32[8,128], index: 9, kind: output, shape index: {}]  }
   0x1   :  { %v10334_v0 = vld [vmem:[%s14109_s1 + $0x4] ss:$8 sps:$4 sm:$0xff]   ;;  %v10339_v1 = vld [vmem:[%s14109_s1] ss:$8 sps:$4 sm:$0xff]   ;;  %v10346_v2 = vld [vmem:[%s14109_s1 + $0x14] ss:$8 sps:$4 sm:$0xff]  }
   0x2   :  { %411 = vmatprep.subr.bf16.mxu0 %v10334_v0  ;;  %753 = vmatprep.subr.bf16.mxu1 %v10334_v0  ;;  %v10353_v3 = vld [vmem:[%s14109_s1 + $0x10] ss:$8 sps:$4 sm:$0xff]   ;;  %v10360_v4 = vld [vmem:[%s14109_s1 + $0x24] ss:$8 sps:$4 sm:$0xff]   ;;  %v10367_v5 = vld [vmem:[%s14109_s1 + $0x20] ss:$8 sps:$4 sm:$0xff]  }
   0x3   :  { %412 = vmatpush1.bf16.msra.mxu0 %v10339_v1  ;;  %754 = vmatpush1.bf16.msra.mxu1 %v10339_v1  ;;  %v10374_v6 = vld [vmem:[%s14109_s1 + $0x34] ss:$8 sps:$4 sm:$0xff]   ;;  %v10381_v7 = vld [vmem:[%s14109_s1 + $0x30] ss:$8 sps:$4 sm:$0xff]   ;;  %v10388_v8 = vld [vmem:[%s14109_s1 + $0x44] ss:$8 sps:$4 sm:$0xff]  }
   0x4   :  { %413 = vmatprep.subr.bf16.mxu0 %v10346_v2  ;;  %755 = vmatprep.subr.bf16.mxu1 %v10346_v2  ;;  %v10395_v9 = vld [vmem:[%s14109_s1 + $0x40] ss:$8 sps:$4 sm:$0xff]   ;;  %v10402_v10 = vld [vmem:[%s14109_s1 + $0x54] ss:$8 sps:$4 sm:$0xff]   ;;  %v10409_v11 = vld [vmem:[%s14109_s1 + $0x50] ss:$8 sps:$4 sm:$0xff]  }
   0x5   :  { %v10416_v12 = vld [vmem:[%s14109_s1 + $0x64] ss:$8 sps:$4 sm:$0xff]   ;;  %v10426_v14 = vld [vmem:[%s14109_s1 + $0x60] ss:$8 sps:$4 sm:$0xff]   ;;  %v10436_v16 = vld [vmem:[%s14109_s1 + $0x74] ss:$8 sps:$4 sm:$0xff]  }
   0x6   :  { %v8963_v13 = vld [vmem:[%s14110_s0 + $0x4] ss:$12 sps:$4 sm:$0xff]   ;;  %v8966_v15 = vld [vmem:[%s14110_s0 + $0x94] ss:$12 sps:$4 sm:$0xff]   ;;  %v8970_v38 = vld [vmem:[%s14110_s0 + $0x1c] ss:$12 sps:$4 sm:$0xff]  }
   0x7   :  { %414 = vmatpush1.bf16.msra.mxu0 %v10353_v3  ;;  %756 = vmatpush1.bf16.msra.mxu1 %v10353_v3  ;;  %v10443_v17 = vld [vmem:[%s14109_s1 + $0x70] ss:$8 sps:$4 sm:$0xff]   ;;  %v10450_v18 = vld [vmem:[%s14109_s1 + $0x84] ss:$8 sps:$4 sm:$0xff]   ;;  %v10457_v19 = vld [vmem:[%s14109_s1 + $0x80] ss:$8 sps:$4 sm:$0xff]  }
   0x8   :  { %415 = vmatprep.subr.bf16.mxu0 %v10360_v4  ;;  %757 = vmatprep.subr.bf16.mxu1 %v10360_v4  ;;  %v10464_v20 = vld [vmem:[%s14109_s1 + $0x94] ss:$8 sps:$4 sm:$0xff]   ;;  %v10471_v21 = vld [vmem:[%s14109_s1 + $0x90] ss:$8 sps:$4 sm:$0xff]   ;;  %v10478_v22 = vld [vmem:[%s14109_s1 + $0xa4] ss:$8 sps:$4 sm:$0xff]  }
   0x9   :  { %443 = vmatprep.mubr.bf16.mxu0 %v8963_v13  ;;  %785 = vmatprep.mubr.bf16.mxu1 %v8966_v15  ;;  %v10485_v23 = vld [vmem:[%s14109_s1 + $0xa0] ss:$8 sps:$4 sm:$0xff]   ;;  %v10492_v24 = vld [vmem:[%s14109_s1 + $0xb4] ss:$8 sps:$4 sm:$0xff]   ;;  %v10499_v25 = vld [vmem:[%s14109_s1 + $0xb0] ss:$8 sps:$4 sm:$0xff]  }
   0xa   :  { %v10506_v26 = vld [vmem:[%s14109_s1 + $0xc4] ss:$8 sps:$4 sm:$0xff]   ;;  %v10513_v27 = vld [vmem:[%s14109_s1 + $0xc0] ss:$8 sps:$4 sm:$0xff]   ;;  %v10520_v28 = vld [vmem:[%s14109_s1 + $0xd4] ss:$8 sps:$4 sm:$0xff]  }
   0xb   :  { %416 = vmatpush1.bf16.msra.mxu0 %v10367_v5  ;;  %758 = vmatpush1.bf16.msra.mxu1 %v10367_v5  ;;  %v10527_v29 = vld [vmem:[%s14109_s1 + $0xd0] ss:$8 sps:$4 sm:$0xff]   ;;  %v10534_v30 = vld [vmem:[%s14109_s1 + $0xe4] ss:$8 sps:$4 sm:$0xff]   ;;  %v10541_v31 = vld [vmem:[%s14109_s1 + $0xe0] ss:$8 sps:$4 sm:$0xff]  }
   0xc   :  { %417 = vmatprep.subr.bf16.mxu0 %v10374_v6  ;;  %759 = vmatprep.subr.bf16.mxu1 %v10374_v6  ;;  %v10548_v32 = vld [vmem:[%s14109_s1 + $0xf4] ss:$8 sps:$4 sm:$0xff]   ;;  %v10555_v33 = vld [vmem:[%s14109_s1 + $0xf0] ss:$8 sps:$4 sm:$0xff]   ;;  %v8961_v34 = vld [vmem:[%s14110_s0] ss:$12 sps:$4 sm:$0xff]  }
   0xd   :  { %v8964_v35 = vld [vmem:[%s14110_s0 + $0x90] ss:$12 sps:$4 sm:$0xff]   ;;  %v10568_v36 = vld [vmem:[%s14109_s1 + $0x104] ss:$8 sps:$4 sm:$0xff]   ;;  %v10573_v37 = vld [vmem:[%s14109_s1 + $0x100] ss:$8 sps:$4 sm:$0xff]  }
   0xe   :  { %v8972_v39 = vld [vmem:[%s14110_s0 + $0xac] ss:$12 sps:$4 sm:$0xff]   ;;  %v10588_v40 = vld [vmem:[%s14109_s1 + $0x114] ss:$8 sps:$4 sm:$0xff]   ;;  %v8978_v47 = vld [vmem:[%s14110_s0 + $0xc4] ss:$12 sps:$4 sm:$0xff]  }
   0xf   :  { %418 = vmatpush1.bf16.msra.mxu0 %v10381_v7  ;;  %760 = vmatpush1.bf16.msra.mxu1 %v10381_v7  ;;  %v10593_v41 = vld [vmem:[%s14109_s1 + $0x110] ss:$8 sps:$4 sm:$0xff]   ;;  %v10598_v42 = vld [vmem:[%s14109_s1 + $0x124] ss:$8 sps:$4 sm:$0x3f]  }
  0x10   :  { %419 = vmatprep.subr.bf16.mxu0 %v10388_v8  ;;  %761 = vmatprep.subr.bf16.mxu1 %v10388_v8  ;;  %v8999_v43 = vld [vmem:[%s14109_s1 + $0x120] ss:$8 sps:$4 sm:$0x3f]   ;;  %v8974_v44 = vld [vmem:[%s14110_s0 + $0x18] ss:$12 sps:$4 sm:$0xff]  }
  0x11   :  { %v8975_v45 = vld [vmem:[%s14110_s0 + $0xa8] ss:$12 sps:$4 sm:$0xff]   ;;  %v10624_v48 = vsel %vm404_vm0, %v8999_v43, 0  ;;  %v8980_v49 = vld [vmem:[%s14110_s0 + $0x30] ss:$12 sps:$4 sm:$0xff]  }
  0x12   :  { %v8976_v46 = vld [vmem:[%s14110_s0 + $0x34] ss:$12 sps:$4 sm:$0xff]   ;;  %v8985_v51 = vld [vmem:[%s14110_s0 + $0x4c] ss:$12 sps:$4 sm:$0xff]   ;;  %v8987_v52 = vld [vmem:[%s14110_s0 + $0xdc] ss:$12 sps:$4 sm:$0xff]  }
  0x13   :  { %420 = vmatpush1.bf16.msra.mxu0 %v10395_v9  ;;  %762 = vmatpush1.bf16.msra.mxu1 %v10395_v9  ;;  %v8983_v50 = vld [vmem:[%s14110_s0 + $0xc0] ss:$12 sps:$4 sm:$0xff]   ;;  %v8989_v53 = vld [vmem:[%s14110_s0 + $0x48] ss:$12 sps:$4 sm:$0xff]   ;;  %v8990_v54 = vld [vmem:[%s14110_s0 + $0xd8] ss:$12 sps:$4 sm:$0xff]  }
  0x14   :  { %421 = vmatprep.subr.bf16.mxu0 %v10402_v10  ;;  %763 = vmatprep.subr.bf16.mxu1 %v10402_v10  ;;  %v8991_v55 = vld [vmem:[%s14110_s0 + $0x64] ss:$12 sps:$4 sm:$0xff]   ;;  %v8993_v56 = vld [vmem:[%s14110_s0 + $0xf4] ss:$12 sps:$4 sm:$0xff]   ;;  %v9000_v59 = vld [vmem:[%s14110_s0 + $0x7c] ss:$12 sps:$4 sm:$0xff]  }
  0x15   :  { %v8995_v57 = vld [vmem:[%s14110_s0 + $0x60] ss:$12 sps:$4 sm:$0xff]   ;;  %v8998_v58 = vld [vmem:[%s14110_s0 + $0xf0] ss:$12 sps:$4 sm:$0xff]   ;;  %v9004_v61 = vld [vmem:[%s14110_s0 + $0x78] ss:$12 sps:$4 sm:$0xff]  }
  0x16   :  { %v9002_v60 = vld [vmem:[%s14110_s0 + $0x10c] ss:$12 sps:$4 sm:$0xff]   ;;  %v9005_v62 = vld [vmem:[%s14110_s0 + $0x108] ss:$12 sps:$4 sm:$0xff]  }
  0x17   :  { %422 = vmatpush1.bf16.msra.mxu0 %v10409_v11  ;;  %764 = vmatpush1.bf16.msra.mxu1 %v10409_v11  ;;  %v9007_v13 = vld [vmem:[%s14110_s0 + $0x98] ss:$12 sps:$4 sm:$0xff]   ;;  %v9008_v15 = vld [vmem:[%s14110_s0 + $0x20] ss:$12 sps:$4 sm:$0xff]  }
  0x18   :  { %423 = vmatprep.subr.bf16.mxu0 %v10416_v12  ;;  %765 = vmatprep.subr.bf16.mxu1 %v10416_v12  ;;  %v9061_v43 = vld [vmem:[%s14110_s0 + $0x200] ss:$12 sps:$4 sm:$0xff]  }
  0x1b   :  { %424 = vmatpush1.bf16.msra.mxu0 %v10426_v14  ;;  %766 = vmatpush1.bf16.msra.mxu1 %v10426_v14 }
  0x1c   :  { %425 = vmatprep.subr.bf16.mxu0 %v10436_v16  ;;  %767 = vmatprep.subr.bf16.mxu1 %v10436_v16 }
  0x1f   :  { %426 = vmatpush1.bf16.msra.mxu0 %v10443_v17  ;;  %768 = vmatpush1.bf16.msra.mxu1 %v10443_v17 }
  0x20   :  { %427 = vmatprep.subr.bf16.mxu0 %v10450_v18  ;;  %769 = vmatprep.subr.bf16.mxu1 %v10450_v18 }
  0x23   :  { %428 = vmatpush1.bf16.msra.mxu0 %v10457_v19  ;;  %770 = vmatpush1.bf16.msra.mxu1 %v10457_v19 }
  0x24   :  { %429 = vmatprep.subr.bf16.mxu0 %v10464_v20  ;;  %771 = vmatprep.subr.bf16.mxu1 %v10464_v20 }
  0x27   :  { %430 = vmatpush1.bf16.msra.mxu0 %v10471_v21  ;;  %772 = vmatpush1.bf16.msra.mxu1 %v10471_v21 }
  0x28   :  { %431 = vmatprep.subr.bf16.mxu0 %v10478_v22  ;;  %773 = vmatprep.subr.bf16.mxu1 %v10478_v22 }
  0x2b   :  { %432 = vmatpush1.bf16.msra.mxu0 %v10485_v23  ;;  %774 = vmatpush1.bf16.msra.mxu1 %v10485_v23 }
  0x2c   :  { %433 = vmatprep.subr.bf16.mxu0 %v10492_v24  ;;  %775 = vmatprep.subr.bf16.mxu1 %v10492_v24 }
  0x2f   :  { %434 = vmatpush1.bf16.msra.mxu0 %v10499_v25  ;;  %776 = vmatpush1.bf16.msra.mxu1 %v10499_v25 }
  0x30   :  { %435 = vmatprep.subr.bf16.mxu0 %v10506_v26  ;;  %777 = vmatprep.subr.bf16.mxu1 %v10506_v26 }
  0x33   :  { %436 = vmatpush1.bf16.msra.mxu0 %v10513_v27  ;;  %778 = vmatpush1.bf16.msra.mxu1 %v10513_v27 }
  0x34   :  { %437 = vmatprep.subr.bf16.mxu0 %v10520_v28  ;;  %779 = vmatprep.subr.bf16.mxu1 %v10520_v28 }
  0x37   :  { %438 = vmatpush1.bf16.msra.mxu0 %v10527_v29  ;;  %780 = vmatpush1.bf16.msra.mxu1 %v10527_v29 }
  0x38   :  { %439 = vmatprep.subr.bf16.mxu0 %v10534_v30  ;;  %781 = vmatprep.subr.bf16.mxu1 %v10534_v30 }
  0x3b   :  { %440 = vmatpush1.bf16.msra.mxu0 %v10541_v31  ;;  %782 = vmatpush1.bf16.msra.mxu1 %v10541_v31 }
  0x3c   :  { %441 = vmatprep.subr.bf16.mxu0 %v10548_v32  ;;  %783 = vmatprep.subr.bf16.mxu1 %v10548_v32 }
  0x3f   :  { %442 = vmatpush1.bf16.msra.mxu0 %v10555_v33  ;;  %784 = vmatpush1.bf16.msra.mxu1 %v10555_v33 }
  0x40   :  { %504 = vmatprep.subr.bf16.mxu0 %v10568_v36  ;;  %846 = vmatprep.subr.bf16.mxu1 %v10568_v36 }
  0x42   :  { %444 = vmatmul.mubr.bf16.vlgmr.msra.gmra.mrb[0].mxu0 %v8961_v34  ;;  %786 = vmatmul.mubr.bf16.vlgmr.msra.gmra.mrb[0].mxu1 %v8964_v35  ;;  %v9009_v34 = vld [vmem:[%s14110_s0 + $0xb0] ss:$12 sps:$4 sm:$0xff]   ;;  %v9053_v35 = vld [vmem:[%s14110_s0 + $0x228] ss:$12 sps:$4 sm:$0xff]  }
  0x43   :  { %505 = vmatpush1.bf16.msra.mxu0 %v10573_v37  ;;  %847 = vmatpush1.bf16.msra.mxu1 %v10573_v37 }
  0x44   :  { %453 = vmatprep.mubr.bf16.mxu0 %v8970_v38  ;;  %795 = vmatprep.mubr.bf16.mxu1 %v8972_v39  ;;  %v9056_v38 = vld [vmem:[%s14110_s0 + $0x140] ss:$12 sps:$4 sm:$0xff]   ;;  %v9057_v39 = vld [vmem:[%s14110_s0 + $0x1d0] ss:$12 sps:$4 sm:$0xff]  }
  0x45   :  { %506 = vmatprep.subr.bf16.mxu0 %v10588_v40  ;;  %848 = vmatprep.subr.bf16.mxu1 %v10588_v40 }
  0x47   :  { %507 = vmatpush1.bf16.msra.mxu0 %v10593_v41  ;;  %849 = vmatpush1.bf16.msra.mxu1 %v10593_v41 }
  0x48   :  { %7349 = vmatprep.subr.msk.bf16.mxu0 %vm404_vm0, %v10598_v42  ;;  %7374 = vmatprep.subr.msk.bf16.mxu1 %vm404_vm0, %v10598_v42 }
  0x4a   :  { %454 = vmatmul.mubr.bf16.gmra.mrb[4].mxu0 %v8974_v44  ;;  %796 = vmatmul.mubr.bf16.gmra.mrb[4].mxu1 %v8975_v45  ;;  %v9068_v44 = vld [vmem:[%s14111_s3 + $0x104] ss:$8 sps:$4 sm:$0xff]   ;;  %v9066_v45 = vld [vmem:[%s14111_s3 + $0x100] ss:$8 sps:$4 sm:$0xff]  }
  0x4b   :  { %463 = vmatprep.mubr.bf16.mxu0 %v8976_v46  ;;  %805 = vmatprep.mubr.bf16.mxu1 %v8978_v47  ;;  %v9071_v46 = vld [vmem:[%s14111_s3 + $0x604] ss:$8 sps:$4 sm:$0xff]   ;;  %v9069_v47 = vld [vmem:[%s14111_s3 + $0x600] ss:$8 sps:$4 sm:$0xff]  }
  0x4c   :  { %509 = vmatpush1.bf16.msra.mxu0 %v10624_v48  ;;  %851 = vmatpush1.bf16.msra.mxu1 %v10624_v48 }
  0x4d   :  { %1119 = vmatprep.subr.bf16.mxu0 %v10334_v0  ;;  %1485 = vmatprep.subr.bf16.mxu1 %v10334_v0  ;;  %v9006_v0 = vld [vmem:[%s14110_s0 + $0x8] ss:$12 sps:$4 sm:$0xff]  }
  0x52   :  { %464 = vmatmul.mubr.bf16.gmra.mrb[8].mxu0 %v8980_v49  ;;  %806 = vmatmul.mubr.bf16.gmra.mrb[8].mxu1 %v8983_v50  ;;  %v9077_v49 = vld [vmem:[%s14111_s3 + $0x614] ss:$8 sps:$4 sm:$0xff]  }
  0x53   :  { %473 = vmatprep.mubr.bf16.mxu0 %v8985_v51  ;;  %815 = vmatprep.mubr.bf16.mxu1 %v8987_v52  ;;  %v9062_v50 = vld [vmem:[%s14110_s0 + $0x188] ss:$12 sps:$4 sm:$0xff]   ;;  %v9072_v51 = vld [vmem:[%s14111_s3 + $0x110] ss:$8 sps:$4 sm:$0xff]  }
  0x54   :  { %v9075_v52 = vld [vmem:[%s14111_s3 + $0x610] ss:$8 sps:$4 sm:$0xff]  }
  0x5a   :  { %474 = vmatmul.mubr.bf16.gmra.mrb[12].mxu0 %v8989_v53  ;;  %816 = vmatmul.mubr.bf16.gmra.mrb[12].mxu1 %v8990_v54  ;;  %v9080_v53 = vld [vmem:[%s14111_s3 + $0x124] ss:$8 sps:$4 sm:$0xff]  }
  0x5b   :  { %483 = vmatprep.mubr.bf16.mxu0 %v8991_v55  ;;  %825 = vmatprep.mubr.bf16.mxu1 %v8993_v56  ;;  %v9063_v54 = vld [vmem:[%s14110_s0 + $0x218] ss:$12 sps:$4 sm:$0xff]   ;;  %v9078_v55 = vld [vmem:[%s14111_s3 + $0x120] ss:$8 sps:$4 sm:$0xff]  }
  0x5c   :  { %v9083_v56 = vld [vmem:[%s14111_s3 + $0x624] ss:$8 sps:$4 sm:$0xff]  }
  0x62   :  { %484 = vmatmul.mubr.bf16.gmra.mrb[16].mxu0 %v8995_v57  ;;  %826 = vmatmul.mubr.bf16.gmra.mrb[16].mxu1 %v8998_v58  ;;  %v9081_v57 = vld [vmem:[%s14111_s3 + $0x620] ss:$8 sps:$4 sm:$0xff]   ;;  %v9086_v58 = vld [vmem:[%s14111_s3 + $0x134] ss:$8 sps:$4 sm:$0xff]  }
  0x63   :  { %493 = vmatprep.mubr.bf16.mxu0 %v9000_v59  ;;  %835 = vmatprep.mubr.bf16.mxu1 %v9002_v60  ;;  %v9084_v59 = vld [vmem:[%s14111_s3 + $0x130] ss:$8 sps:$4 sm:$0xff]   ;;  %v9089_v60 = vld [vmem:[%s14111_s3 + $0x634] ss:$8 sps:$4 sm:$0xff]  }
  0x6a   :  { %494 = vmatmul.mubr.bf16.gmra.mrb[20].mxu0 %v9004_v61  ;;  %836 = vmatmul.mubr.bf16.gmra.mrb[20].mxu1 %v9005_v62  ;;  %v9087_v61 = vld [vmem:[%s14111_s3 + $0x630] ss:$8 sps:$4 sm:$0xff]   ;;  %v9092_v62 = vld [vmem:[%s14111_s3 + $0x144] ss:$8 sps:$4 sm:$0xff]  }
  0x6b   :  { %536 = vmatprep.mubr.bf16.mxu0 %v10280_v63  ;;  %878 = vmatprep.mubr.bf16.mxu1 %v10280_v63 }
  0x72   :  { %7350 = vmatmul.mubr.msk.bf16.vlgmr.msra.gmra.mrb[0].mxu0 %vm385_vm1, %v9006_v0  ;;  %7375 = vmatmul.mubr.msk.bf16.vlgmr.msra.gmra.mrb[0].mxu1 %vm385_vm1, %v9007_v13  ;;  %v9064_v0 = vld [vmem:[%s14110_s0 + $0x1a0] ss:$12 sps:$4 sm:$0xff]   ;;  %v9065_v13 = vld [vmem:[%s14110_s0 + $0x230] ss:$12 sps:$4 sm:$0xff]  }
  0x73   :  { %1120 = vmatpush1.bf16.msra.mxu0 %v10339_v1  ;;  %1486 = vmatpush1.bf16.msra.mxu1 %v10339_v1  ;;  %v9010_v1 = vld [vmem:[%s14110_s0 + $0x38] ss:$12 sps:$4 sm:$0xff]  }
  0x74   :  { %1121 = vmatprep.subr.bf16.mxu0 %v10346_v2  ;;  %1487 = vmatprep.subr.bf16.mxu1 %v10346_v2  ;;  %v9011_v2 = vld [vmem:[%s14110_s0 + $0xc8] ss:$12 sps:$4 sm:$0xff]  }
  0x75   :  { %546 = vmatprep.mubr.bf16.mxu0 %v10280_v63  ;;  %888 = vmatprep.mubr.bf16.mxu1 %v10280_v63 }
  0x77   :  { %1122 = vmatpush1.bf16.msra.mxu0 %v10353_v3  ;;  %1488 = vmatpush1.bf16.msra.mxu1 %v10353_v3  ;;  %v9012_v3 = vld [vmem:[%s14110_s0 + $0x50] ss:$12 sps:$4 sm:$0xff]  }
  0x78   :  { %1123 = vmatprep.subr.bf16.mxu0 %v10360_v4  ;;  %1489 = vmatprep.subr.bf16.mxu1 %v10360_v4  ;;  %v9013_v4 = vld [vmem:[%s14110_s0 + $0xe0] ss:$12 sps:$4 sm:$0xff]  }
  0x7a   :  { %7351 = vmatmul.mubr.msk.bf16.gmra.mrb[4].mxu0 %vm385_vm1, %v9008_v15  ;;  %7376 = vmatmul.mubr.msk.bf16.gmra.mrb[4].mxu1 %vm385_vm1, %v9009_v34  ;;  %v9090_v15 = vld [vmem:[%s14111_s3 + $0x140] ss:$8 sps:$4 sm:$0xff]  }
  0x7b   :  { %1124 = vmatpush1.bf16.msra.mxu0 %v10367_v5  ;;  %1490 = vmatpush1.bf16.msra.mxu1 %v10367_v5  ;;  %v9014_v5 = vld [vmem:[%s14110_s0 + $0x68] ss:$12 sps:$4 sm:$0xff]  }
  0x7c   :  { %1125 = vmatprep.subr.bf16.mxu0 %v10374_v6  ;;  %1491 = vmatprep.subr.bf16.mxu1 %v10374_v6  ;;  %v9015_v6 = vld [vmem:[%s14110_s0 + $0xf8] ss:$12 sps:$4 sm:$0xff]   ;;  %v9093_v34 = vld [vmem:[%s14111_s3 + $0x640] ss:$8 sps:$4 sm:$0xff]  }
  0x7d   :  { %556 = vmatprep.mubr.bf16.mxu0 %v10280_v63  ;;  %898 = vmatprep.mubr.bf16.mxu1 %v10280_v63 }
  0x7f   :  { %1126 = vmatpush1.bf16.msra.mxu0 %v10381_v7  ;;  %1492 = vmatpush1.bf16.msra.mxu1 %v10381_v7  ;;  %v9016_v7 = vld [vmem:[%s14110_s0 + $0x80] ss:$12 sps:$4 sm:$0xff]  }
  0x80   :  { %1127 = vmatprep.subr.bf16.mxu0 %v10388_v8  ;;  %1493 = vmatprep.subr.bf16.mxu1 %v10388_v8  ;;  %v9017_v8 = vld [vmem:[%s14110_s0 + $0x110] ss:$12 sps:$4 sm:$0xff]  }
  0x82   :  { %7352 = vmatmul.mubr.msk.bf16.gmra.mrb[8].mxu0 %vm385_vm1, %v9010_v1  ;;  %7377 = vmatmul.mubr.msk.bf16.gmra.mrb[8].mxu1 %vm385_vm1, %v9011_v2  ;;  %v9098_v1 = vld [vmem:[%s14111_s3 + $0x154] ss:$8 sps:$4 sm:$0xff]  }
  0x83   :  { %1128 = vmatpush1.bf16.msra.mxu0 %v10395_v9  ;;  %1494 = vmatpush1.bf16.msra.mxu1 %v10395_v9  ;;  %v9020_v9 = vld [vmem:[%s14110_s0 + $0x124] ss:$12 sps:$4 sm:$0xff]   ;;  %v9101_v2 = vld [vmem:[%s14111_s3 + $0x654] ss:$8 sps:$4 sm:$0xff]  }
  0x84   :  { %1129 = vmatprep.subr.bf16.mxu0 %v10402_v10  ;;  %1495 = vmatprep.subr.bf16.mxu1 %v10402_v10  ;;  %v9023_v10 = vld [vmem:[%s14110_s0 + $0x1b4] ss:$12 sps:$4 sm:$0xff]  }
  0x85   :  { %566 = vmatprep.mubr.bf16.mxu0 %v10280_v63  ;;  %908 = vmatprep.mubr.bf16.mxu1 %v10280_v63 }
  0x87   :  { %1130 = vmatpush1.bf16.msra.mxu0 %v10409_v11  ;;  %1496 = vmatpush1.bf16.msra.mxu1 %v10409_v11  ;;  %v9018_v11 = vld [vmem:[%s14110_s0 + $0x120] ss:$12 sps:$4 sm:$0xff]  }
  0x88   :  { %1131 = vmatprep.subr.bf16.mxu0 %v10416_v12  ;;  %1497 = vmatprep.subr.bf16.mxu1 %v10416_v12  ;;  %v9021_v12 = vld [vmem:[%s14110_s0 + $0x1b0] ss:$12 sps:$4 sm:$0xff]  }
  0x8a   :  { %7353 = vmatmul.mubr.msk.bf16.gmra.mrb[12].mxu0 %vm385_vm1, %v9012_v3  ;;  %7378 = vmatmul.mubr.msk.bf16.gmra.mrb[12].mxu1 %vm385_vm1, %v9013_v4  ;;  %v9096_v3 = vld [vmem:[%s14111_s3 + $0x150] ss:$8 sps:$4 sm:$0xff]  }
  0x8b   :  { %1132 = vmatpush1.bf16.msra.mxu0 %v10426_v14  ;;  %1498 = vmatpush1.bf16.msra.mxu1 %v10426_v14  ;;  %v9024_v14 = vld [vmem:[%s14110_s0 + $0x13c] ss:$12 sps:$4 sm:$0xff]   ;;  %v9099_v4 = vld [vmem:[%s14111_s3 + $0x650] ss:$8 sps:$4 sm:$0xff]  }
  0x8c   :  { %1133 = vmatprep.subr.bf16.mxu0 %v10436_v16  ;;  %1499 = vmatprep.subr.bf16.mxu1 %v10436_v16  ;;  %v9026_v16 = vld [vmem:[%s14110_s0 + $0x1cc] ss:$12 sps:$4 sm:$0xff]  }
  0x8d   :  { %576 = vmatprep.mubr.bf16.mxu0 %v10280_v63  ;;  %918 = vmatprep.mubr.bf16.mxu1 %v10280_v63 }
  0x8f   :  { %1134 = vmatpush1.bf16.msra.mxu0 %v10443_v17  ;;  %1500 = vmatpush1.bf16.msra.mxu1 %v10443_v17  ;;  %v9028_v17 = vld [vmem:[%s14110_s0 + $0x138] ss:$12 sps:$4 sm:$0xff]  }
  0x90   :  { %1135 = vmatprep.subr.bf16.mxu0 %v10450_v18  ;;  %1501 = vmatprep.subr.bf16.mxu1 %v10450_v18  ;;  %v9029_v18 = vld [vmem:[%s14110_s0 + $0x1c8] ss:$12 sps:$4 sm:$0xff]  }
  0x92   :  { %7354 = vmatmul.mubr.msk.bf16.gmra.mrb[16].mxu0 %vm385_vm1, %v9014_v5  ;;  %7379 = vmatmul.mubr.msk.bf16.gmra.mrb[16].mxu1 %vm385_vm1, %v9015_v6  ;;  %v9104_v5 = vld [vmem:[%s14111_s3 + $0x164] ss:$8 sps:$4 sm:$0xff]  }
  0x93   :  { %1136 = vmatpush1.bf16.msra.mxu0 %v10457_v19  ;;  %1502 = vmatpush1.bf16.msra.mxu1 %v10457_v19  ;;  %v9030_v19 = vld [vmem:[%s14110_s0 + $0x154] ss:$12 sps:$4 sm:$0xff]   ;;  %v9107_v6 = vld [vmem:[%s14111_s3 + $0x664] ss:$8 sps:$4 sm:$0xff]  }
  0x94   :  { %1137 = vmatprep.subr.bf16.mxu0 %v10464_v20  ;;  %1503 = vmatprep.subr.bf16.mxu1 %v10464_v20  ;;  %v9032_v20 = vld [vmem:[%s14110_s0 + $0x1e4] ss:$12 sps:$4 sm:$0xff]  }
  0x95   :  { %586 = vmatprep.mubr.bf16.mxu0 %v10280_v63  ;;  %928 = vmatprep.mubr.bf16.mxu1 %v10280_v63 }
  0x97   :  { %1138 = vmatpush1.bf16.msra.mxu0 %v10471_v21  ;;  %1504 = vmatpush1.bf16.msra.mxu1 %v10471_v21  ;;  %v9034_v21 = vld [vmem:[%s14110_s0 + $0x150] ss:$12 sps:$4 sm:$0xff]  }
  0x98   :  { %1139 = vmatprep.subr.bf16.mxu0 %v10478_v22  ;;  %1505 = vmatprep.subr.bf16.mxu1 %v10478_v22  ;;  %v9035_v22 = vld [vmem:[%s14110_s0 + $0x1e0] ss:$12 sps:$4 sm:$0xff]  }
  0x9a   :  { %7355 = vmatmul.mubr.msk.bf16.gmra.mrb[20].mxu0 %vm385_vm1, %v9016_v7  ;;  %7380 = vmatmul.mubr.msk.bf16.gmra.mrb[20].mxu1 %vm385_vm1, %v9017_v8  ;;  %v9102_v7 = vld [vmem:[%s14111_s3 + $0x160] ss:$8 sps:$4 sm:$0xff]  }
  0x9b   :  { %1140 = vmatpush1.bf16.msra.mxu0 %v10485_v23  ;;  %1506 = vmatpush1.bf16.msra.mxu1 %v10485_v23  ;;  %v9036_v23 = vld [vmem:[%s14110_s0 + $0x16c] ss:$12 sps:$4 sm:$0xff]   ;;  %v9105_v8 = vld [vmem:[%s14111_s3 + $0x660] ss:$8 sps:$4 sm:$0xff]  }
  0x9c   :  { %1141 = vmatprep.subr.bf16.mxu0 %v10492_v24  ;;  %1507 = vmatprep.subr.bf16.mxu1 %v10492_v24  ;;  %v9038_v24 = vld [vmem:[%s14110_s0 + $0x1fc] ss:$12 sps:$4 sm:$0xff]  }
  0x9d   :  { %1151 = vmatprep.mubr.bf16.mxu0 %v9020_v9  ;;  %1517 = vmatprep.mubr.bf16.mxu1 %v9023_v10  ;;  %v97_v9 = vlaneseq  ;;  %v9110_v10 = vld [vmem:[%s14111_s3 + $0x174] ss:$8 sps:$4 sm:$0xff]  }
  0x9f   :  { %1142 = vmatpush1.bf16.msra.mxu0 %v10499_v25  ;;  %1508 = vmatpush1.bf16.msra.mxu1 %v10499_v25  ;;  %v9040_v25 = vld [vmem:[%s14110_s0 + $0x168] ss:$12 sps:$4 sm:$0xff]  }
  0xa0   :  { %1143 = vmatprep.subr.bf16.mxu0 %v10506_v26  ;;  %1509 = vmatprep.subr.bf16.mxu1 %v10506_v26  ;;  %v9041_v26 = vld [vmem:[%s14110_s0 + $0x1f8] ss:$12 sps:$4 sm:$0xff]  }
  0xa3   :  { %1144 = vmatpush1.bf16.msra.mxu0 %v10513_v27  ;;  %1510 = vmatpush1.bf16.msra.mxu1 %v10513_v27  ;;  %v9042_v27 = vld [vmem:[%s14110_s0 + $0x184] ss:$12 sps:$4 sm:$0xff]  }
  0xa4   :  { %1145 = vmatprep.subr.bf16.mxu0 %v10520_v28  ;;  %1511 = vmatprep.subr.bf16.mxu1 %v10520_v28  ;;  %v9044_v28 = vld [vmem:[%s14110_s0 + $0x214] ss:$12 sps:$4 sm:$0xff]  }
  0xa7   :  { %1146 = vmatpush1.bf16.msra.mxu0 %v10527_v29  ;;  %1512 = vmatpush1.bf16.msra.mxu1 %v10527_v29  ;;  %v9046_v29 = vld [vmem:[%s14110_s0 + $0x180] ss:$12 sps:$4 sm:$0xff]  }
  0xa8   :  { %1147 = vmatprep.subr.bf16.mxu0 %v10534_v30  ;;  %1513 = vmatprep.subr.bf16.mxu1 %v10534_v30  ;;  %v9047_v30 = vld [vmem:[%s14110_s0 + $0x210] ss:$12 sps:$4 sm:$0xff]  }
  0xab   :  { %1148 = vmatpush1.bf16.msra.mxu0 %v10541_v31  ;;  %1514 = vmatpush1.bf16.msra.mxu1 %v10541_v31  ;;  %v9048_v31 = vld [vmem:[%s14110_s0 + $0x19c] ss:$12 sps:$4 sm:$0xff]  }
  0xac   :  { %1149 = vmatprep.subr.bf16.mxu0 %v10548_v32  ;;  %1515 = vmatprep.subr.bf16.mxu1 %v10548_v32  ;;  %v9050_v32 = vld [vmem:[%s14110_s0 + $0x22c] ss:$12 sps:$4 sm:$0xff]  }
  0xaf   :  { %1150 = vmatpush1.bf16.msra.mxu0 %v10555_v33  ;;  %1516 = vmatpush1.bf16.msra.mxu1 %v10555_v33  ;;  %v9052_v33 = vld [vmem:[%s14110_s0 + $0x198] ss:$12 sps:$4 sm:$0xff]  }
  0xb0   :  { %1212 = vmatprep.subr.bf16.mxu0 %v10568_v36  ;;  %1578 = vmatprep.subr.bf16.mxu1 %v10568_v36  ;;  %v9054_v36 = vld [vmem:[%s14110_s0 + $0x128] ss:$12 sps:$4 sm:$0xff]  }
  0xb2   :  { %1152 = vmatmul.mubr.bf16.vlgmr.msra.gmra.mrb[24].mxu0 %v9018_v11  ;;  %1518 = vmatmul.mubr.bf16.vlgmr.msra.gmra.mrb[24].mxu1 %v9021_v12  ;;  %v9113_v11 = vld [vmem:[%s14111_s3 + $0x674] ss:$8 sps:$4 sm:$0xff]   ;;  %v9108_v12 = vld [vmem:[%s14111_s3 + $0x170] ss:$8 sps:$4 sm:$0xff]  }
  0xb3   :  { %1213 = vmatpush1.bf16.msra.mxu0 %v10573_v37  ;;  %1579 = vmatpush1.bf16.msra.mxu1 %v10573_v37  ;;  %v9055_v37 = vld [vmem:[%s14110_s0 + $0x1b8] ss:$12 sps:$4 sm:$0xff]  }
  0xb4   :  { %1161 = vmatprep.mubr.bf16.mxu0 %v9024_v14  ;;  %1527 = vmatprep.mubr.bf16.mxu1 %v9026_v16  ;;  %v9111_v14 = vld [vmem:[%s14111_s3 + $0x670] ss:$8 sps:$4 sm:$0xff]   ;;  %v11038_v16 = vshrl.u32 %v97_v9, 7 }
  0xb5   :  { %1214 = vmatprep.subr.bf16.mxu0 %v10588_v40  ;;  %1580 = vmatprep.subr.bf16.mxu1 %v10588_v40  ;;  %v9058_v40 = vld [vmem:[%s14110_s0 + $0x158] ss:$12 sps:$4 sm:$0xff]  }
  0xb7   :  { %1215 = vmatpush1.bf16.msra.mxu0 %v10593_v41  ;;  %1581 = vmatpush1.bf16.msra.mxu1 %v10593_v41  ;;  %v9059_v41 = vld [vmem:[%s14110_s0 + $0x1e8] ss:$12 sps:$4 sm:$0xff]  }
  0xb8   :  { %7399 = vmatprep.subr.msk.bf16.mxu0 %vm404_vm0, %v10598_v42  ;;  %7424 = vmatprep.subr.msk.bf16.mxu1 %vm404_vm0, %v10598_v42  ;;  %v9060_v42 = vld [vmem:[%s14110_s0 + $0x170] ss:$12 sps:$4 sm:$0xff]  }
  0xba   :  { %1162 = vmatmul.mubr.bf16.gmra.mrb[28].mxu0 %v9028_v17  ;;  %1528 = vmatmul.mubr.bf16.gmra.mrb[28].mxu1 %v9029_v18  ;;  %v9116_v17 = vld [vmem:[%s14111_s3 + $0x184] ss:$8 sps:$4 sm:$0xff]  }
  0xbb   :  { %1171 = vmatprep.mubr.bf16.mxu0 %v9030_v19  ;;  %1537 = vmatprep.mubr.bf16.mxu1 %v9032_v20  ;;  %v9119_v18 = vld [vmem:[%s14111_s3 + $0x684] ss:$8 sps:$4 sm:$0xff]   ;;  %v9114_v19 = vld [vmem:[%s14111_s3 + $0x180] ss:$8 sps:$4 sm:$0xff]  }
  0xbc   :  { %1217 = vmatpush1.bf16.msra.mxu0 %v10624_v48  ;;  %1583 = vmatpush1.bf16.msra.mxu1 %v10624_v48  ;;  %v9074_v48 = vld [vmem:[%s14111_s3 + $0x114] ss:$8 sps:$4 sm:$0xff]   ;;  %v9117_v20 = vld [vmem:[%s14111_s3 + $0x680] ss:$8 sps:$4 sm:$0xff]  }
  0xbd   :  { %2010 = vmatprep.subr.bf16.mxu0 %v9068_v44  ;;  %2256 = vmatprep.subr.bf16.mxu1 %v9071_v46 }
  0xc2   :  { %1172 = vmatmul.mubr.bf16.gmra.mrb[32].mxu0 %v9034_v21  ;;  %1538 = vmatmul.mubr.bf16.gmra.mrb[32].mxu1 %v9035_v22  ;;  %v71_v21 = vld [vmem:[%s14112_s2] sm:$0x3]  ;;  %v11056_v22 = vsub.s32 0, %v11038_v16 }
  0xc3   :  { %1181 = vmatprep.mubr.bf16.mxu0 %v9036_v23  ;;  %1547 = vmatprep.mubr.bf16.mxu1 %v9038_v24  ;;  %v9122_v23 = vld [vmem:[%s14111_s3 + $0x194] ss:$8 sps:$4 sm:$0xff]  }
  0xc4   :  { %v9125_v24 = vld [vmem:[%s14111_s3 + $0x694] ss:$8 sps:$4 sm:$0xff]  }
  0xca   :  { %1182 = vmatmul.mubr.bf16.gmra.mrb[36].mxu0 %v9040_v25  ;;  %1548 = vmatmul.mubr.bf16.gmra.mrb[36].mxu1 %v9041_v26  ;;  %v11065_v25 = vsub.s32 1, %v11038_v16  ;;  %v9120_v26 = vld [vmem:[%s14111_s3 + $0x190] ss:$8 sps:$4 sm:$0xff]  }
  0xcb   :  { %1191 = vmatprep.mubr.bf16.mxu0 %v9042_v27  ;;  %1557 = vmatprep.mubr.bf16.mxu1 %v9044_v28  ;;  %v9123_v27 = vld [vmem:[%s14111_s3 + $0x690] ss:$8 sps:$4 sm:$0xff]   ;;  %v11074_v28 = vrot.slane %v71_v21, %v11056_v22 }
  0xd2   :  { %1192 = vmatmul.mubr.bf16.gmra.mrb[40].mxu0 %v9046_v29  ;;  %1558 = vmatmul.mubr.bf16.gmra.mrb[40].mxu1 %v9047_v30  ;;  %v9128_v29 = vld [vmem:[%s14111_s3 + $0x1a4] ss:$8 sps:$4 sm:$0xff]  }
  0xd3   :  { %1201 = vmatprep.mubr.bf16.mxu0 %v9048_v31  ;;  %1567 = vmatprep.mubr.bf16.mxu1 %v9050_v32  ;;  %v9131_v30 = vld [vmem:[%s14111_s3 + $0x6a4] ss:$8 sps:$4 sm:$0xff]   ;;  %v11083_v31 = vrot.slane %v71_v21, %v11065_v25  ;;  %v9126_v32 = vld [vmem:[%s14111_s3 + $0x1a0] ss:$8 sps:$4 sm:$0xff]  }
  0xda   :  { %1202 = vmatmul.mubr.bf16.gmra.mrb[44].mxu0 %v9052_v33  ;;  %1568 = vmatmul.mubr.bf16.gmra.mrb[44].mxu1 %v9053_v35  ;;  %v9129_v33 = vld [vmem:[%s14111_s3 + $0x6a0] ss:$8 sps:$4 sm:$0xff]  }
  0xdb   :  { %1244 = vmatprep.mubr.bf16.mxu0 %v10280_v63  ;;  %1610 = vmatprep.mubr.bf16.mxu1 %v10280_v63 }
  0xe2   :  { %7400 = vmatmul.mubr.msk.bf16.vlgmr.msra.gmra.mrb[24].mxu0 %vm385_vm1, %v9054_v36  ;;  %7425 = vmatmul.mubr.msk.bf16.vlgmr.msra.gmra.mrb[24].mxu1 %vm385_vm1, %v9055_v37 }
  0xe3   :  { %1254 = vmatprep.mubr.bf16.mxu0 %v10280_v63  ;;  %1620 = vmatprep.mubr.bf16.mxu1 %v10280_v63 }
  0xe4   :  { %2011 = vmatpush1.bf16.msra.mxu0 %v9066_v45  ;;  %2257 = vmatpush1.bf16.msra.mxu1 %v9069_v47  ;;  %v9132_v47 = vld [vmem:[%s14111_s3 + $0x1b0] ss:$8 sps:$4 sm:$0xff]  }
  0xe5   :  { %2012 = vmatprep.subr.bf16.mxu0 %v9074_v48  ;;  %2258 = vmatprep.subr.bf16.mxu1 %v9077_v49  ;;  %v9135_v48 = vld [vmem:[%s14111_s3 + $0x6b0] ss:$8 sps:$4 sm:$0xff]  }
  0xe8   :  { %2013 = vmatpush1.bf16.msra.mxu0 %v9072_v51  ;;  %2259 = vmatpush1.bf16.msra.mxu1 %v9075_v52 }
  0xe9   :  { %2014 = vmatprep.subr.bf16.mxu0 %v9080_v53  ;;  %2260 = vmatprep.subr.bf16.mxu1 %v9083_v56 }
  0xea   :  { %7401 = vmatmul.mubr.msk.bf16.gmra.mrb[28].mxu0 %vm385_vm1, %v9056_v38  ;;  %7426 = vmatmul.mubr.msk.bf16.gmra.mrb[28].mxu1 %vm385_vm1, %v9057_v39 }
  0xeb   :  { %1264 = vmatprep.mubr.bf16.mxu0 %v10280_v63  ;;  %1630 = vmatprep.mubr.bf16.mxu1 %v10280_v63 }
  0xec   :  { %2015 = vmatpush1.bf16.msra.mxu0 %v9078_v55  ;;  %2261 = vmatpush1.bf16.msra.mxu1 %v9081_v57 }
  0xed   :  { %2016 = vmatprep.subr.bf16.mxu0 %v9086_v58  ;;  %2262 = vmatprep.subr.bf16.mxu1 %v9089_v60 }
  0xf0   :  { %2017 = vmatpush1.bf16.msra.mxu0 %v9084_v59  ;;  %2263 = vmatpush1.bf16.msra.mxu1 %v9087_v61 }
  0xf1   :  { %2018 = vmatprep.subr.bf16.mxu0 %v9092_v62 }
  0xf2   :  { %7402 = vmatmul.mubr.msk.bf16.gmra.mrb[32].mxu0 %vm385_vm1, %v9058_v40  ;;  %7427 = vmatmul.mubr.msk.bf16.gmra.mrb[32].mxu1 %vm385_vm1, %v9059_v41  ;;  %v9134_v41 = vld [vmem:[%s14111_s3 + $0x1b4] ss:$8 sps:$4 sm:$0xff]  }
  0xf3   :  { %1274 = vmatprep.mubr.bf16.mxu0 %v10280_v63  ;;  %1640 = vmatprep.mubr.bf16.mxu1 %v10280_v63 }
  0xf4   :  { %2019 = vmatpush1.bf16.msra.mxu0 %v9090_v15  ;;  %v9143_v15 = vld [vmem:[%s14111_s3 + $0x6c4] ss:$8 sps:$4 sm:$0xff]  }
  0xf5   :  { %2020 = vmatprep.subr.bf16.mxu0 %v9098_v1  ;;  %v9138_v1 = vld [vmem:[%s14111_s3 + $0x1c0] ss:$8 sps:$4 sm:$0xff]  }
  0xf8   :  { %2021 = vmatpush1.bf16.msra.mxu0 %v9096_v3 }
  0xf9   :  { %2022 = vmatprep.subr.bf16.mxu0 %v9104_v5 }
  0xfa   :  { %7403 = vmatmul.mubr.msk.bf16.gmra.mrb[36].mxu0 %vm385_vm1, %v9060_v42  ;;  %7428 = vmatmul.mubr.msk.bf16.gmra.mrb[36].mxu1 %vm385_vm1, %v9061_v43  ;;  %v9137_v42 = vld [vmem:[%s14111_s3 + $0x6b4] ss:$8 sps:$4 sm:$0xff]  }
  0xfb   :  { %1284 = vmatprep.mubr.bf16.mxu0 %v10280_v63  ;;  %1650 = vmatprep.mubr.bf16.mxu1 %v10280_v63 }
  0xfc   :  { %2023 = vmatpush1.bf16.msra.mxu0 %v9102_v7 }
  0xfd   :  { %2024 = vmatprep.subr.bf16.mxu0 %v9110_v10 }
 0x100   :  { %2025 = vmatpush1.bf16.msra.mxu0 %v9108_v12 }
 0x101   :  { %2026 = vmatprep.subr.bf16.mxu0 %v9116_v17  ;;  %v9146_v17 = vld [vmem:[%s14111_s3 + $0x1d4] ss:$8 sps:$4 sm:$0xff]  }
 0x102   :  { %7404 = vmatmul.mubr.msk.bf16.gmra.mrb[40].mxu0 %vm385_vm1, %v9062_v50  ;;  %7429 = vmatmul.mubr.msk.bf16.gmra.mrb[40].mxu1 %vm385_vm1, %v9063_v54 }
 0x103   :  { %1294 = vmatprep.mubr.bf16.mxu0 %v10280_v63  ;;  %1660 = vmatprep.mubr.bf16.mxu1 %v10280_v63  ;;  %v9095_v63 = vld [vmem:[%s14111_s3 + $0x644] ss:$8 sps:$4 sm:$0xff]  }
 0x104   :  { %2264 = vmatprep.subr.bf16.mxu1 %v9095_v63  ;;  %2027 = vmatpush1.bf16.msra.mxu0 %v9114_v19  ;;  %v9140_v63 = vld [vmem:[%s14111_s3 + $0x1c4] ss:$8 sps:$4 sm:$0xff]  }
 0x105   :  { %2265 = vmatpush1.bf16.msra.mxu1 %v9093_v34  ;;  %2028 = vmatprep.subr.bf16.mxu0 %v9122_v23 }
 0x106   :  { %2266 = vmatprep.subr.bf16.mxu1 %v9101_v2  ;;  %v9141_v2 = vld [vmem:[%s14111_s3 + $0x6c0] ss:$8 sps:$4 sm:$0xff]  }
 0x108   :  { %2029 = vmatpush1.bf16.msra.mxu0 %v9120_v26 }
 0x109   :  { %2267 = vmatpush1.bf16.msra.mxu1 %v9099_v4  ;;  %2030 = vmatprep.subr.bf16.mxu0 %v9128_v29 }
 0x10a   :  { %7405 = vmatmul.mubr.msk.bf16.gmra.mrb[44].mxu0 %vm385_vm1, %v9064_v0  ;;  %7430 = vmatmul.mubr.msk.bf16.gmra.mrb[44].mxu1 %vm385_vm1, %v9065_v13 }
 0x10b   :  { %2268 = vmatprep.subr.bf16.mxu1 %v9107_v6 }
 0x10c   :  { %2031 = vmatpush1.bf16.msra.mxu0 %v9126_v32 }
 0x10d   :  { %2269 = vmatpush1.bf16.msra.mxu1 %v9105_v8  ;;  %2032 = vmatprep.subr.bf16.mxu0 %v9134_v41 }
 0x10e   :  { %2270 = vmatprep.subr.bf16.mxu1 %v9113_v11 }
 0x110   :  { %2033 = vmatpush1.bf16.msra.mxu0 %v9132_v47 }
 0x111   :  { %2271 = vmatpush1.bf16.msra.mxu1 %v9111_v14  ;;  %2034 = vmatprep.subr.bf16.mxu0 %v9140_v63 }
 0x112   :  { %2272 = vmatprep.subr.bf16.mxu1 %v9119_v18  ;;  %v9149_v18 = vld [vmem:[%s14111_s3 + $0x6d4] ss:$8 sps:$4 sm:$0xff]  }
 0x114   :  { %2035 = vmatpush1.bf16.msra.mxu0 %v9138_v1 }
 0x115   :  { %2273 = vmatpush1.bf16.msra.mxu1 %v9117_v20  ;;  %2036 = vmatprep.subr.bf16.mxu0 %v9146_v17 }
 0x116   :  { %2274 = vmatprep.subr.bf16.mxu1 %v9125_v24 }
 0x119   :  { %2275 = vmatpush1.bf16.msra.mxu1 %v9123_v27  ;;  %v9144_v27 = vld [vmem:[%s14111_s3 + $0x1d0] ss:$8 sps:$4 sm:$0xff]  }
 0x11a   :  { %2276 = vmatprep.subr.bf16.mxu1 %v9131_v30  ;;  %2037 = vmatpush1.bf16.msra.mxu0 %v9144_v27 }
 0x11d   :  { %2277 = vmatpush1.bf16.msra.mxu1 %v9129_v33 }
 0x11e   :  { %2278 = vmatprep.subr.bf16.mxu1 %v9137_v42  ;;  %v9152_v42 = vld [vmem:[%s14111_s3 + $0x1e4] ss:$8 sps:$4 sm:$0xff]  }
 0x11f   :  { %2038 = vmatprep.subr.bf16.mxu0 %v9152_v42 }
 0x121   :  { %2279 = vmatpush1.bf16.msra.mxu1 %v9135_v48 }
 0x122   :  { %2280 = vmatprep.subr.bf16.mxu1 %v9143_v15 }
 0x125   :  { %2281 = vmatpush1.bf16.msra.mxu1 %v9141_v2  ;;  %v9156_v2 = vld [vmem:[%s14111_s3 + $0x1f0] ss:$8 sps:$4 sm:$0xff]  }
 0x126   :  { %2282 = vmatprep.subr.bf16.mxu1 %v9149_v18  ;;  %v9164_v18 = vld [vmem:[%s14111_s3 + $0x4] ss:$8 sps:$4 sm:$0xff]  }
 0x145   :  { %v538_v35 = vpop.f32.mrb[0].mxu0  ;;  %v880_v36 = vpop.f32.mrb[0].mxu1 }
 0x146   :  { %v8564_v37 = vadd.f32 %v538_v35, %v11074_v28  ;;  %v8588_v38 = vadd.f32 %v880_v36, %v11074_v28  ;;  %v540_v39 = vpop.f32.mrb[1].mxu0  ;;  %v882_v40 = vpop.f32.mrb[1].mxu1  ;;  %v9147_v35 = vld [vmem:[%s14111_s3 + $0x6d0] ss:$8 sps:$4 sm:$0xff]  }
 0x147   :  { %v8565_v43 = vadd.f32 %v540_v39, %v11083_v31  ;;  %v8589_v44 = vadd.f32 %v882_v40, %v11083_v31  ;;  %v542_v45 = vpop.f32.mrb[2].mxu0  ;;  %v884_v46 = vpop.f32.mrb[2].mxu1  ;;  %2283 = vmatpush1.bf16.msra.mxu1 %v9147_v35 }
 0x148   :  { %v597_v49 = vmax.f32 %v8564_v37, 0.0  ;;  %v939_v50 = vmax.f32 %v8588_v38, 0.0  ;;  %v8566_v51 = vadd.f32 %v542_v45, %v11074_v28  ;;  %v8590_v52 = vadd.f32 %v884_v46, %v11074_v28  ;;  %v544_v53 = vpop.f32.mrb[3].mxu0  ;;  %v886_v54 = vpop.f32.mrb[3].mxu1  ;;  %v9150_v45 = vld [vmem:[%s14111_s3 + $0x1e0] ss:$8 sps:$4 sm:$0xff]  }
 0x149   :  { %v598_v55 = vmax.f32 %v8565_v43, 0.0  ;;  %v940_v56 = vmax.f32 %v8589_v44, 0.0  ;;  %v8567_v57 = vadd.f32 %v544_v53, %v11083_v31  ;;  %v8591_v58 = vadd.f32 %v886_v54, %v11083_v31  ;;  %v9155_v43 = vld [vmem:[%s14111_s3 + $0x6e4] ss:$8 sps:$4 sm:$0xff]   ;;  %v9153_v46 = vld [vmem:[%s14111_s3 + $0x6e0] ss:$8 sps:$4 sm:$0xff]   ;;  %2039 = vmatpush1.bf16.msra.mxu0 %v9150_v45 }
 0x14a   :  { %v11111_v59 = vmax.f32 %v597_v49, %v939_v50  ;;  %v599_v60 = vmax.f32 %v8566_v51, 0.0  ;;  %v941_v61 = vmax.f32 %v8590_v52, 0.0  ;;  %2284 = vmatprep.subr.bf16.mxu1 %v9155_v43 }
 0x14b   :  { %v11113_v62 = vmax.f32 %v598_v55, %v940_v56  ;;  %v600_v0 = vmax.f32 %v8567_v57, 0.0  ;;  %v942_v13 = vmax.f32 %v8591_v58, 0.0  ;;  %2285 = vmatpush1.bf16.msra.mxu1 %v9153_v46  ;;  %v9158_v58 = vld [vmem:[%s14111_s3 + $0x1f4] ss:$8 sps:$4 sm:$0xff]  }
 0x14c   :  { %v11121_v34 = vmax.f32 %v599_v60, %v941_v61  ;;  %v9161_v60 = vld [vmem:[%s14111_s3 + $0x6f4] ss:$8 sps:$4 sm:$0xff]   ;;  %2040 = vmatprep.subr.bf16.mxu0 %v9158_v58 }
 0x14d   :  { %v11129_v3 = vmax.f32 %v600_v0, %v942_v13  ;;  %v548_v4 = vpop.f32.mrb[4].mxu0  ;;  %v890_v5 = vpop.f32.mrb[4].mxu1  ;;  %2286 = vmatprep.subr.bf16.mxu1 %v9161_v60  ;;  %2041 = vmatpush1.bf16.msra.mxu0 %v9156_v2 }
 0x14e   :  { %v8568_v6 = vadd.f32 %v548_v4, %v11074_v28  ;;  %v8592_v7 = vadd.f32 %v890_v5, %v11074_v28  ;;  %v550_v8 = vpop.f32.mrb[5].mxu0  ;;  %v892_v9 = vpop.f32.mrb[5].mxu1  ;;  %2469 = vmatprep.subr.bf16.mxu0 %v9164_v18 }
 0x14f   :  { %v8569_v10 = vadd.f32 %v550_v8, %v11083_v31  ;;  %v8593_v11 = vadd.f32 %v892_v9, %v11083_v31  ;;  %v552_v12 = vpop.f32.mrb[6].mxu0  ;;  %v894_v14 = vpop.f32.mrb[6].mxu1  ;;  %v9159_v8 = vld [vmem:[%s14111_s3 + $0x6f0] ss:$8 sps:$4 sm:$0xff]  }
 0x150   :  { %v601_v19 = vmax.f32 %v8568_v6, 0.0  ;;  %v943_v20 = vmax.f32 %v8592_v7, 0.0  ;;  %v8570_v21 = vadd.f32 %v552_v12, %v11074_v28  ;;  %v8594_v23 = vadd.f32 %v894_v14, %v11074_v28  ;;  %v554_v24 = vpop.f32.mrb[7].mxu0  ;;  %v896_v26 = vpop.f32.mrb[7].mxu1  ;;  %2287 = vmatpush1.bf16.msra.mxu1 %v9159_v8 }
 0x151   :  { %v602_v29 = vmax.f32 %v8569_v10, 0.0  ;;  %v944_v30 = vmax.f32 %v8593_v11, 0.0  ;;  %v8571_v32 = vadd.f32 %v554_v24, %v11083_v31  ;;  %v8595_v33 = vadd.f32 %v896_v26, %v11083_v31 }
 0x152   :  { %v11151_v36 = vmax.f32 %v601_v19, %v943_v20  ;;  %v603_v37 = vmax.f32 %v8570_v21, 0.0  ;;  %v945_v38 = vmax.f32 %v8594_v23, 0.0  ;;  %v9167_v19 = vld [vmem:[%s14111_s3 + $0x504] ss:$8 sps:$4 sm:$0xff]  }
 0x153   :  { %v11153_v39 = vmax.f32 %v602_v29, %v944_v30  ;;  %v604_v40 = vmax.f32 %v8571_v32, 0.0  ;;  %v946_v41 = vmax.f32 %v8595_v33, 0.0  ;;  %2682 = vmatprep.subr.bf16.mxu1 %v9167_v19 }
 0x154   :  { %v11161_v44 = vmax.f32 %v603_v37, %v945_v38 }
 0x155   :  { %v11169_v47 = vmax.f32 %v604_v40, %v946_v41  ;;  %v558_v48 = vpop.f32.mrb[8].mxu0  ;;  %v900_v49 = vpop.f32.mrb[8].mxu1 }
 0x156   :  { %v8572_v50 = vadd.f32 %v558_v48, %v11074_v28  ;;  %v8596_v51 = vadd.f32 %v900_v49, %v11074_v28  ;;  %v560_v52 = vpop.f32.mrb[9].mxu0  ;;  %v902_v53 = vpop.f32.mrb[9].mxu1 }
 0x157   :  { %v8573_v54 = vadd.f32 %v560_v52, %v11083_v31  ;;  %v8597_v55 = vadd.f32 %v902_v53, %v11083_v31  ;;  %v562_v56 = vpop.f32.mrb[10].mxu0  ;;  %v904_v57 = vpop.f32.mrb[10].mxu1 }
 0x158   :  { %v605_v61 = vmax.f32 %v8572_v50, 0.0  ;;  %v947_v0 = vmax.f32 %v8596_v51, 0.0  ;;  %v8574_v13 = vadd.f32 %v562_v56, %v11074_v28  ;;  %v8598_v63 = vadd.f32 %v904_v57, %v11074_v28  ;;  %v564_v15 = vpop.f32.mrb[11].mxu0  ;;  %v906_v1 = vpop.f32.mrb[11].mxu1 }
 0x159   :  { %v606_v4 = vmax.f32 %v8573_v54, 0.0  ;;  %v948_v5 = vmax.f32 %v8597_v55, 0.0  ;;  %v8575_v6 = vadd.f32 %v564_v15, %v11083_v31  ;;  %v8599_v7 = vadd.f32 %v906_v1, %v11083_v31 }
 0x15a   :  { %v11191_v9 = vmax.f32 %v605_v61, %v947_v0  ;;  %v607_v10 = vmax.f32 %v8574_v13, 0.0  ;;  %v949_v11 = vmax.f32 %v8598_v63, 0.0 }
 0x15b   :  { %v11193_v12 = vmax.f32 %v606_v4, %v948_v5  ;;  %v608_v14 = vmax.f32 %v8575_v6, 0.0  ;;  %v950_v17 = vmax.f32 %v8599_v7, 0.0 }
 0x15c   :  { %v11201_v20 = vmax.f32 %v607_v10, %v949_v11 }
 0x15d   :  { %v11203_v21 = vmax.f32 %v608_v14, %v950_v17  ;;  %v568_v23 = vpop.f32.mrb[12].mxu0  ;;  %v910_v24 = vpop.f32.mrb[12].mxu1 }
 0x15e   :  { %v8576_v26 = vadd.f32 %v568_v23, %v11074_v28  ;;  %v8600_v27 = vadd.f32 %v910_v24, %v11074_v28  ;;  %v570_v29 = vpop.f32.mrb[13].mxu0  ;;  %v912_v30 = vpop.f32.mrb[13].mxu1 }
 0x15f   :  { %v8577_v32 = vadd.f32 %v570_v29, %v11083_v31  ;;  %v8601_v33 = vadd.f32 %v912_v30, %v11083_v31  ;;  %v572_v35 = vpop.f32.mrb[14].mxu0  ;;  %v914_v37 = vpop.f32.mrb[14].mxu1 }
 0x160   :  { %v609_v38 = vmax.f32 %v8576_v26, 0.0  ;;  %v951_v40 = vmax.f32 %v8600_v27, 0.0  ;;  %v8578_v41 = vadd.f32 %v572_v35, %v11074_v28  ;;  %v8602_v42 = vadd.f32 %v914_v37, %v11074_v28  ;;  %v574_v43 = vpop.f32.mrb[15].mxu0  ;;  %v916_v45 = vpop.f32.mrb[15].mxu1 }
 0x161   :  { %v610_v46 = vmax.f32 %v8577_v32, 0.0  ;;  %v952_v48 = vmax.f32 %v8601_v33, 0.0  ;;  %v8579_v49 = vadd.f32 %v574_v43, %v11083_v31  ;;  %v8603_v50 = vadd.f32 %v916_v45, %v11083_v31 }
 0x162   :  { %v11213_v51 = vmax.f32 %v609_v38, %v951_v40  ;;  %v611_v52 = vmax.f32 %v8578_v41, 0.0  ;;  %v953_v53 = vmax.f32 %v8602_v42, 0.0 }
 0x163   :  { %v11215_v54 = vmax.f32 %v610_v46, %v952_v48  ;;  %v612_v55 = vmax.f32 %v8579_v49, 0.0  ;;  %v954_v56 = vmax.f32 %v8603_v50, 0.0 }
 0x164   :  { %v11217_v57 = vmax.f32 %v611_v52, %v953_v53 }
 0x165   :  { %v11219_v58 = vmax.f32 %v612_v55, %v954_v56  ;;  %v578_v60 = vpop.f32.mrb[16].mxu0  ;;  %v920_v61 = vpop.f32.mrb[16].mxu1 }
 0x166   :  { %v8580_v0 = vadd.f32 %v578_v60, %v11074_v28  ;;  %v8604_v13 = vadd.f32 %v920_v61, %v11074_v28  ;;  %v580_v63 = vpop.f32.mrb[17].mxu0  ;;  %v922_v15 = vpop.f32.mrb[17].mxu1 }
 0x167   :  { %v8581_v1 = vadd.f32 %v580_v63, %v11083_v31  ;;  %v8605_v2 = vadd.f32 %v922_v15, %v11083_v31  ;;  %v582_v4 = vpop.f32.mrb[18].mxu0  ;;  %v924_v5 = vpop.f32.mrb[18].mxu1 }
 0x168   :  { %v613_v6 = vmax.f32 %v8580_v0, 0.0  ;;  %v955_v7 = vmax.f32 %v8604_v13, 0.0  ;;  %v8582_v8 = vadd.f32 %v582_v4, %v11074_v28  ;;  %v8606_v10 = vadd.f32 %v924_v5, %v11074_v28  ;;  %v584_v11 = vpop.f32.mrb[19].mxu0  ;;  %v926_v14 = vpop.f32.mrb[19].mxu1 }
 0x169   :  { %v614_v17 = vmax.f32 %v8581_v1, 0.0  ;;  %v956_v18 = vmax.f32 %v8605_v2, 0.0  ;;  %v8583_v19 = vadd.f32 %v584_v11, %v11083_v31  ;;  %v8607_v23 = vadd.f32 %v926_v14, %v11083_v31 }
 0x16a   :  { %v11229_v24 = vmax.f32 %v613_v6, %v955_v7  ;;  %v615_v26 = vmax.f32 %v8582_v8, 0.0  ;;  %v957_v27 = vmax.f32 %v8606_v10, 0.0 }
 0x16b   :  { %v11231_v29 = vmax.f32 %v614_v17, %v956_v18  ;;  %v616_v30 = vmax.f32 %v8583_v19, 0.0  ;;  %v958_v32 = vmax.f32 %v8607_v23, 0.0 }
 0x16c   :  { %v11233_v33 = vmax.f32 %v615_v26, %v957_v27 }
 0x16d   :  { %v11235_v35 = vmax.f32 %v616_v30, %v958_v32  ;;  %v588_v37 = vpop.f32.mrb[20].mxu0  ;;  %v930_v38 = vpop.f32.mrb[20].mxu1 }
 0x16e   :  { %v8584_v40 = vadd.f32 %v588_v37, %v11074_v28  ;;  %v8608_v41 = vadd.f32 %v930_v38, %v11074_v28  ;;  %v590_v42 = vpop.f32.mrb[21].mxu0  ;;  %v932_v43 = vpop.f32.mrb[21].mxu1 }
 0x16f   :  { %v8585_v45 = vadd.f32 %v590_v42, %v11083_v31  ;;  %v8609_v46 = vadd.f32 %v932_v43, %v11083_v31  ;;  %v592_v48 = vpop.f32.mrb[22].mxu0  ;;  %v934_v49 = vpop.f32.mrb[22].mxu1 }
 0x170   :  { %v617_v50 = vmax.f32 %v8584_v40, 0.0  ;;  %v959_v52 = vmax.f32 %v8608_v41, 0.0  ;;  %v8586_v53 = vadd.f32 %v592_v48, %v11074_v28  ;;  %v8610_v55 = vadd.f32 %v934_v49, %v11074_v28  ;;  %v594_v56 = vpop.f32.mrb[23].mxu0  ;;  %v936_v60 = vpop.f32.mrb[23].mxu1 }
 0x171   :  { %v618_v61 = vmax.f32 %v8585_v45, 0.0  ;;  %v960_v0 = vmax.f32 %v8609_v46, 0.0  ;;  %v8587_v13 = vadd.f32 %v594_v56, %v11083_v31  ;;  %v8611_v63 = vadd.f32 %v936_v60, %v11083_v31 }
 0x172   :  { %v11245_v15 = vmax.f32 %v617_v50, %v959_v52  ;;  %v619_v1 = vmax.f32 %v8586_v53, 0.0  ;;  %v961_v2 = vmax.f32 %v8610_v55, 0.0 }
 0x173   :  { %v11247_v4 = vmax.f32 %v618_v61, %v960_v0  ;;  %v620_v5 = vmax.f32 %v8587_v13, 0.0  ;;  %v962_v6 = vmax.f32 %v8611_v63, 0.0 }
 0x174   :  { %v11249_v7 = vmax.f32 %v619_v1, %v961_v2 }
 0x175   :  { %v11251_v8 = vmax.f32 %v620_v5, %v962_v6 }
 0x1b5   :  { %v1246_v10 = vpop.f32.mrb[24].mxu0  ;;  %v1612_v11 = vpop.f32.mrb[24].mxu1 }
 0x1b6   :  { %v8612_v14 = vadd.f32 %v1246_v10, %v11074_v28  ;;  %v8636_v17 = vadd.f32 %v1612_v11, %v11074_v28  ;;  %v1248_v18 = vpop.f32.mrb[25].mxu0  ;;  %v1614_v19 = vpop.f32.mrb[25].mxu1 }
 0x1b7   :  { %v8613_v23 = vadd.f32 %v1248_v18, %v11083_v31  ;;  %v8637_v26 = vadd.f32 %v1614_v19, %v11083_v31  ;;  %v1250_v27 = vpop.f32.mrb[26].mxu0  ;;  %v1616_v30 = vpop.f32.mrb[26].mxu1 }
 0x1b8   :  { %v1305_v32 = vmax.f32 %v8612_v14, 0.0  ;;  %v8614_v37 = vadd.f32 %v1250_v27, %v11074_v28  ;;  %v8638_v38 = vadd.f32 %v1616_v30, %v11074_v28  ;;  %v1252_v40 = vpop.f32.mrb[27].mxu0  ;;  %v1618_v41 = vpop.f32.mrb[27].mxu1  ;;  %v1671_v48 = vmax.f32 %v8636_v17, 0.0 }
 0x1b9   :  { %v1306_v42 = vmax.f32 %v8613_v23, 0.0  ;;  %v8615_v43 = vadd.f32 %v1252_v40, %v11083_v31  ;;  %v8639_v45 = vadd.f32 %v1618_v41, %v11083_v31  ;;  %v1672_v52 = vmax.f32 %v8637_v26, 0.0 }
 0x1ba   :  { %v1329_v46 = vmax.f32 %v11111_v59, %v1305_v32  ;;  %v1307_v49 = vmax.f32 %v8614_v37, 0.0  ;;  %v1673_v60 = vmax.f32 %v8638_v38, 0.0 }
 0x1bb   :  { %v1330_v50 = vmax.f32 %v11113_v62, %v1306_v42  ;;  %v1308_v53 = vmax.f32 %v8615_v43, 0.0  ;;  %v1674_v13 = vmax.f32 %v8639_v45, 0.0 }
 0x1bc   :  { %v1695_v55 = vmax.f32 %v1329_v46, %v1671_v48  ;;  %v1331_v56 = vmax.f32 %v11121_v34, %v1307_v49 }
 0x1bd   :  { %v1696_v61 = vmax.f32 %v1330_v50, %v1672_v52  ;;  %v1332_v0 = vmax.f32 %v11129_v3, %v1308_v53  ;;  %v1256_v63 = vpop.f32.mrb[28].mxu0  ;;  %v1622_v1 = vpop.f32.mrb[28].mxu1 }
 0x1be   :  { %v1697_v2 = vmax.f32 %v1331_v56, %v1673_v60  ;;  %v8616_v5 = vadd.f32 %v1256_v63, %v11074_v28  ;;  %v8640_v59 = vadd.f32 %v1622_v1, %v11074_v28  ;;  %v1258_v6 = vpop.f32.mrb[29].mxu0  ;;  %v1624_v10 = vpop.f32.mrb[29].mxu1 }
 0x1bf   :  { %v1698_v62 = vmax.f32 %v1332_v0, %v1674_v13  ;;  %v8617_v11 = vadd.f32 %v1258_v6, %v11083_v31  ;;  %v8641_v14 = vadd.f32 %v1624_v10, %v11083_v31  ;;  %v1260_v34 = vpop.f32.mrb[30].mxu0  ;;  %v1626_v17 = vpop.f32.mrb[30].mxu1 }
 0x1c0   :  { %v1719_v18 = vpack.c.bf16 %v1697_v2, %v1695_v55  ;;  %v1309_v19 = vmax.f32 %v8616_v5, 0.0  ;;  %v8618_v3 = vadd.f32 %v1260_v34, %v11074_v28  ;;  %v1262_v23 = vpop.f32.mrb[31].mxu0  ;;  %v1628_v26 = vpop.f32.mrb[31].mxu1  ;;  %v1675_v30 = vmax.f32 %v8640_v59, 0.0 }
 0x1c1   :  { %v11270_v27 = vpack.c.bf16 %v1698_v62, %v1696_v61  ;;  %v1310_v32 = vmax.f32 %v8617_v11, 0.0  ;;  %v8642_v37 = vadd.f32 %v1626_v17, %v11074_v28  ;;  %v8619_v41 = vadd.f32 %v1262_v23, %v11083_v31 }
 0x1c2   :  { %1731 = vst [vmem:[#allocation2] sm:$0xff] %v1719_v18  ;;  %v1333_v38 = vmax.f32 %v11151_v36, %v1309_v19  ;;  %v1311_v40 = vmax.f32 %v8618_v3, 0.0  ;;  %v8643_v42 = vadd.f32 %v1628_v26, %v11083_v31  ;;  %v1676_v45 = vmax.f32 %v8641_v14, 0.0 }
 0x1c3   :  { %1732 = vst [vmem:[#allocation2 + $0x8] sm:$0xff] %v11270_v27  ;;  %v1334_v43 = vmax.f32 %v11153_v39, %v1310_v32  ;;  %v1677_v49 = vmax.f32 %v8642_v37, 0.0  ;;  %v1312_v50 = vmax.f32 %v8619_v41, 0.0 }
 0x1c4   :  { %v1699_v46 = vmax.f32 %v1333_v38, %v1675_v30  ;;  %v1335_v48 = vmax.f32 %v11161_v44, %v1311_v40  ;;  %v1678_v53 = vmax.f32 %v8643_v42, 0.0 }
 0x1c5   :  { %v1700_v52 = vmax.f32 %v1334_v43, %v1676_v45  ;;  %v1266_v55 = vpop.f32.mrb[32].mxu0  ;;  %v1632_v56 = vpop.f32.mrb[32].mxu1  ;;  %v1336_v60 = vmax.f32 %v11169_v47, %v1312_v50 }
 0x1c6   :  { %v1701_v36 = vmax.f32 %v1335_v48, %v1677_v49  ;;  %v8620_v61 = vadd.f32 %v1266_v55, %v11074_v28  ;;  %v8644_v0 = vadd.f32 %v1632_v56, %v11074_v28  ;;  %v1268_v13 = vpop.f32.mrb[33].mxu0  ;;  %v1634_v63 = vpop.f32.mrb[33].mxu1 }
 0x1c7   :  { %v8621_v39 = vadd.f32 %v1268_v13, %v11083_v31  ;;  %v8645_v1 = vadd.f32 %v1634_v63, %v11083_v31  ;;  %v1270_v44 = vpop.f32.mrb[34].mxu0  ;;  %v1636_v2 = vpop.f32.mrb[34].mxu1  ;;  %v1702_v59 = vmax.f32 %v1336_v60, %v1678_v53 }
 0x1c8   :  { %v11284_v5 = vpack.c.bf16 %v1701_v36, %v1699_v46  ;;  %v1313_v6 = vmax.f32 %v8620_v61, 0.0  ;;  %v1272_v10 = vpop.f32.mrb[35].mxu0  ;;  %v1638_v62 = vpop.f32.mrb[35].mxu1  ;;  %v1679_v11 = vmax.f32 %v8644_v0, 0.0  ;;  %v8622_v14 = vadd.f32 %v1270_v44, %v11074_v28 }
 0x1c9   :  { %v1314_v47 = vmax.f32 %v8621_v39, 0.0  ;;  %v8646_v34 = vadd.f32 %v1636_v2, %v11074_v28  ;;  %v11289_v17 = vpack.c.bf16 %v1702_v59, %v1700_v52  ;;  %v8623_v19 = vadd.f32 %v1272_v10, %v11083_v31 }
 0x1ca   :  { %1733 = vst [vmem:[#allocation2 + $0x10] sm:$0xff] %v11284_v5  ;;  %v1337_v18 = vmax.f32 %v11191_v9, %v1313_v6  ;;  %v8647_v3 = vadd.f32 %v1638_v62, %v11083_v31  ;;  %v1680_v26 = vmax.f32 %v8645_v1, 0.0  ;;  %v1315_v30 = vmax.f32 %v8622_v14, 0.0 }
 0x1cb   :  { %v1338_v23 = vmax.f32 %v11193_v12, %v1314_v47  ;;  %1734 = vst [vmem:[#allocation2 + $0x18] sm:$0xff] %v11289_v17  ;;  %v1316_v37 = vmax.f32 %v8623_v19, 0.0  ;;  %v1681_v41 = vmax.f32 %v8646_v34, 0.0 }
 0x1cc   :  { %v1703_v32 = vmax.f32 %v1337_v18, %v1679_v11  ;;  %v1339_v40 = vmax.f32 %v11201_v20, %v1315_v30  ;;  %v1682_v45 = vmax.f32 %v8647_v3, 0.0 }
 0x1cd   :  { %v1704_v38 = vmax.f32 %v1338_v23, %v1680_v26  ;;  %v1276_v42 = vpop.f32.mrb[36].mxu0  ;;  %v1642_v43 = vpop.f32.mrb[36].mxu1  ;;  %v1340_v9 = vmax.f32 %v11203_v21, %v1316_v37 }
 0x1ce   :  { %v8624_v46 = vadd.f32 %v1276_v42, %v11074_v28  ;;  %v8648_v48 = vadd.f32 %v1642_v43, %v11074_v28  ;;  %v1278_v12 = vpop.f32.mrb[37].mxu0  ;;  %v1644_v49 = vpop.f32.mrb[37].mxu1  ;;  %v1705_v50 = vmax.f32 %v1339_v40, %v1681_v41 }
 0x1cf   :  { %v8625_v52 = vadd.f32 %v1278_v12, %v11083_v31  ;;  %v8649_v53 = vadd.f32 %v1644_v49, %v11083_v31  ;;  %v1280_v55 = vpop.f32.mrb[38].mxu0  ;;  %v1646_v56 = vpop.f32.mrb[38].mxu1  ;;  %v1706_v20 = vmax.f32 %v1340_v9, %v1682_v45 }
 0x1d0   :  { %v1317_v36 = vmax.f32 %v8624_v46, 0.0  ;;  %v8626_v60 = vadd.f32 %v1280_v55, %v11074_v28  ;;  %v1282_v61 = vpop.f32.mrb[39].mxu0  ;;  %v1648_v21 = vpop.f32.mrb[39].mxu1  ;;  %v1723_v0 = vpack.c.bf16 %v1705_v50, %v1703_v32  ;;  %v1683_v13 = vmax.f32 %v8648_v48, 0.0 }
 0x1d1   :  { %v1318_v63 = vmax.f32 %v8625_v52, 0.0  ;;  %v8650_v39 = vadd.f32 %v1646_v56, %v11074_v28  ;;  %v1724_v1 = vpack.c.bf16 %v1706_v20, %v1704_v38  ;;  %v8627_v59 = vadd.f32 %v1282_v61, %v11083_v31  ;;  %v9162_v56 = vld [vmem:[%s14111_s3] ss:$8 sps:$4 sm:$0xff]  }
 0x1d2   :  { %v1341_v44 = vmax.f32 %v11213_v51, %v1317_v36  ;;  %v1319_v2 = vmax.f32 %v8626_v60, 0.0  ;;  %1735 = vst [vmem:[#allocation2 + $0x20] sm:$0xff] %v1723_v0  ;;  %v1684_v10 = vmax.f32 %v8649_v53, 0.0  ;;  %v8651_v62 = vadd.f32 %v1648_v21, %v11083_v31  ;;  %v9165_v20 = vld [vmem:[%s14111_s3 + $0x500] ss:$8 sps:$4 sm:$0xff]  }
 0x1d3   :  { %v1342_v6 = vmax.f32 %v11215_v54, %v1318_v63  ;;  %1736 = vst [vmem:[#allocation2 + $0x28] sm:$0xff] %v1724_v1  ;;  %v1685_v14 = vmax.f32 %v8650_v39, 0.0  ;;  %v1320_v34 = vmax.f32 %v8627_v59, 0.0  ;;  %v9173_v21 = vld [vmem:[%s14111_s3 + $0x514] ss:$8 sps:$4 sm:$0xff]  }
 0x1d4   :  { %v1707_v11 = vmax.f32 %v1341_v44, %v1683_v13  ;;  %v1343_v47 = vmax.f32 %v11217_v57, %v1319_v2  ;;  %v1686_v19 = vmax.f32 %v8651_v62, 0.0  ;;  %v9168_v2 = vld [vmem:[%s14111_s3 + $0x10] ss:$8 sps:$4 sm:$0xff]  }
 0x1d5   :  { %v1708_v18 = vmax.f32 %v1342_v6, %v1684_v10  ;;  %v1286_v3 = vpop.f32.mrb[40].mxu0  ;;  %v1652_v23 = vpop.f32.mrb[40].mxu1  ;;  %v1344_v26 = vmax.f32 %v11219_v58, %v1320_v34 }
 0x1d6   :  { %v1709_v51 = vmax.f32 %v1343_v47, %v1685_v14  ;;  %v8628_v30 = vadd.f32 %v1286_v3, %v11074_v28  ;;  %v8652_v54 = vadd.f32 %v1652_v23, %v11074_v28  ;;  %v1288_v32 = vpop.f32.mrb[41].mxu0  ;;  %v1654_v37 = vpop.f32.mrb[41].mxu1  ;;  %v9176_v3 = vld [vmem:[%s14111_s3 + $0x24] ss:$8 sps:$4 sm:$0xff]  }
 0x1d7   :  { %v8629_v38 = vadd.f32 %v1288_v32, %v11083_v31  ;;  %v8653_v40 = vadd.f32 %v1654_v37, %v11083_v31  ;;  %v1290_v57 = vpop.f32.mrb[42].mxu0  ;;  %v1656_v41 = vpop.f32.mrb[42].mxu1  ;;  %v1710_v43 = vmax.f32 %v1344_v26, %v1686_v19  ;;  %v9179_v23 = vld [vmem:[%s14111_s3 + $0x524] ss:$8 sps:$4 sm:$0xff]  }
 0x1d8   :  { %v1725_v42 = vpack.c.bf16 %v1709_v51, %v1707_v11  ;;  %v1321_v9 = vmax.f32 %v8628_v30, 0.0  ;;  %v1292_v45 = vpop.f32.mrb[43].mxu0  ;;  %v1658_v46 = vpop.f32.mrb[43].mxu1  ;;  %v1687_v48 = vmax.f32 %v8652_v54, 0.0  ;;  %v8630_v58 = vadd.f32 %v1290_v57, %v11074_v28 }
 0x1d9   :  { %v1322_v12 = vmax.f32 %v8629_v38, 0.0  ;;  %v8654_v49 = vadd.f32 %v1656_v41, %v11074_v28  ;;  %v1726_v50 = vpack.c.bf16 %v1710_v43, %v1708_v18  ;;  %v8631_v53 = vadd.f32 %v1292_v45, %v11083_v31  ;;  %v9174_v45 = vld [vmem:[%s14111_s3 + $0x20] ss:$8 sps:$4 sm:$0xff]  }
 0x1da   :  { %1737 = vst [vmem:[#allocation2 + $0x30] sm:$0xff] %v1725_v42  ;;  %v1345_v52 = vmax.f32 %v11229_v24, %v1321_v9  ;;  %v8655_v55 = vadd.f32 %v1658_v46, %v11083_v31  ;;  %v1688_v60 = vmax.f32 %v8653_v40, 0.0  ;;  %v1323_v61 = vmax.f32 %v8630_v58, 0.0  ;;  %v9170_v24 = vld [vmem:[%s14111_s3 + $0x14] ss:$8 sps:$4 sm:$0xff]  }
 0x1db   :  { %v1346_v36 = vmax.f32 %v11231_v29, %v1322_v12  ;;  %1738 = vst [vmem:[#allocation2 + $0x38] sm:$0xff] %v1726_v50  ;;  %v1324_v13 = vmax.f32 %v8631_v53, 0.0  ;;  %2042 = vmatprep.mubr.bf16.mxu0 %v1726_v50  ;;  %2288 = vmatprep.mubr.bf16.mxu1 %v1726_v50  ;;  %v1689_v1 = vmax.f32 %v8654_v49, 0.0  ;;  %v9177_v46 = vld [vmem:[%s14111_s3 + $0x520] ss:$8 sps:$4 sm:$0xff]  }
 0x1dc   :  { %v1711_v0 = vmax.f32 %v1345_v52, %v1687_v48  ;;  %v1347_v39 = vmax.f32 %v11233_v33, %v1323_v61  ;;  %2043 = vmatmul.mubr.bf16.vlgmr.msra.gmra.mrb[48].mxu0 %v1725_v42  ;;  %2289 = vmatmul.mubr.bf16.vlgmr.msra.gmra.mrb[48].mxu1 %v1725_v42  ;;  %v1690_v6 = vmax.f32 %v8655_v55, 0.0  ;;  %v9171_v33 = vld [vmem:[%s14111_s3 + $0x510] ss:$8 sps:$4 sm:$0xff]   ;;  %v9182_v52 = vld [vmem:[%s14111_s3 + $0x34] ss:$8 sps:$4 sm:$0xff]  }
 0x1dd   :  { %v1712_v63 = vmax.f32 %v1346_v36, %v1688_v60  ;;  %v1296_v29 = vpop.f32.mrb[44].mxu0  ;;  %v1662_v44 = vpop.f32.mrb[44].mxu1  ;;  %v1348_v59 = vmax.f32 %v11235_v35, %v1324_v13  ;;  %2470 = vmatpush1.bf16.msra.mxu0 %v9162_v56  ;;  %2683 = vmatpush1.bf16.msra.mxu1 %v9165_v20  ;;  %v9183_v20 = vld [vmem:[%s14111_s3 + $0x530] ss:$8 sps:$4 sm:$0xff]   ;;  %v9188_v36 = vld [vmem:[%s14111_s3 + $0x44] ss:$8 sps:$4 sm:$0xff]  }
 0x1de   :  { %v8632_v10 = vadd.f32 %v1296_v29, %v11074_v28  ;;  %v8656_v62 = vadd.f32 %v1662_v44, %v11074_v28  ;;  %v1298_v11 = vpop.f32.mrb[45].mxu0  ;;  %v1664_v47 = vpop.f32.mrb[45].mxu1  ;;  %v1713_v14 = vmax.f32 %v1347_v39, %v1689_v1  ;;  %2471 = vmatprep.subr.bf16.mxu0 %v9170_v24  ;;  %2684 = vmatprep.subr.bf16.mxu1 %v9173_v21  ;;  %v9189_v21 = vld [vmem:[%s14111_s3 + $0x540] ss:$8 sps:$4 sm:$0xff]   ;;  %v9197_v13 = vld [vmem:[%s14111_s3 + $0x554] ss:$8 sps:$4 sm:$0xff]  }
 0x1df   :  { %v8633_v34 = vadd.f32 %v1298_v11, %v11083_v31  ;;  %v8657_v18 = vadd.f32 %v1664_v47, %v11083_v31  ;;  %v1300_v19 = vpop.f32.mrb[46].mxu0  ;;  %v1666_v35 = vpop.f32.mrb[46].mxu1  ;;  %v1714_v51 = vmax.f32 %v1348_v59, %v1690_v6  ;;  %v9195_v39 = vld [vmem:[%s14111_s3 + $0x550] ss:$8 sps:$4 sm:$0xff]   ;;  %v9200_v1 = vld [vmem:[%s14111_s3 + $0x64] ss:$8 sps:$4 sm:$0xff]  }
 0x1e0   :  { %v1325_v26 = vmax.f32 %v8632_v10, 0.0  ;;  %v8634_v30 = vadd.f32 %v1300_v19, %v11074_v28  ;;  %v1302_v54 = vpop.f32.mrb[47].mxu0  ;;  %v1668_v32 = vpop.f32.mrb[47].mxu1  ;;  %v1727_v37 = vpack.c.bf16 %v1713_v14, %v1711_v0  ;;  %v1691_v38 = vmax.f32 %v8656_v62, 0.0  ;;  %v9194_v0 = vld [vmem:[%s14111_s3 + $0x54] ss:$8 sps:$4 sm:$0xff]  }
 0x1e1   :  { %v1326_v40 = vmax.f32 %v8633_v34, 0.0  ;;  %v8658_v57 = vadd.f32 %v1666_v35, %v11074_v28  ;;  %v1728_v41 = vpack.c.bf16 %v1714_v51, %v1712_v63  ;;  %v8635_v9 = vadd.f32 %v1302_v54, %v11083_v31  ;;  %2472 = vmatpush1.bf16.msra.mxu0 %v9168_v2  ;;  %2685 = vmatpush1.bf16.msra.mxu1 %v9171_v33  ;;  %v9192_v63 = vld [vmem:[%s14111_s3 + $0x50] ss:$8 sps:$4 sm:$0xff]   ;;  %v9203_v29 = vld [vmem:[%s14111_s3 + $0x564] ss:$8 sps:$4 sm:$0xff]  }
 0x1e2   :  { %v1349_v42 = vmax.f32 %v11245_v15, %v1325_v26  ;;  %v1327_v43 = vmax.f32 %v8634_v30, 0.0  ;;  %1739 = vst [vmem:[#allocation2 + $0x40] sm:$0xff] %v1727_v37  ;;  %v1692_v28 = vmax.f32 %v8657_v18, 0.0  ;;  %v8659_v12 = vadd.f32 %v1668_v32, %v11083_v31  ;;  %2473 = vmatprep.subr.bf16.mxu0 %v9176_v3  ;;  %2686 = vmatprep.subr.bf16.mxu1 %v9179_v23  ;;  %v9198_v44 = vld [vmem:[%s14111_s3 + $0x60] ss:$8 sps:$4 sm:$0xff]  }
 0x1e3   :  { %v1350_v48 = vmax.f32 %v11247_v4, %v1326_v40  ;;  %1740 = vst [vmem:[#allocation2 + $0x48] sm:$0xff] %v1728_v41  ;;  %v1693_v49 = vmax.f32 %v8658_v57, 0.0  ;;  %v1328_v50 = vmax.f32 %v8635_v9, 0.0  ;;  %2052 = vmatprep.mubr.bf16.mxu0 %v1728_v41  ;;  %2298 = vmatprep.mubr.bf16.mxu1 %v1728_v41  ;;  %v9185_v4 = vld [vmem:[%s14111_s3 + $0x534] ss:$8 sps:$4 sm:$0xff]  }
 0x1e4   :  { %v1715_v15 = vmax.f32 %v1349_v42, %v1691_v38  ;;  %v1351_v58 = vmax.f32 %v11249_v7, %v1327_v43  ;;  %2053 = vmatmul.mubr.bf16.gmra.mrb[52].mxu0 %v1727_v37  ;;  %2299 = vmatmul.mubr.bf16.gmra.mrb[52].mxu1 %v1727_v37  ;;  %v1694_v56 = vmax.f32 %v8659_v12, 0.0  ;;  %v9180_v7 = vld [vmem:[%s14111_s3 + $0x30] ss:$8 sps:$4 sm:$0xff]   ;;  %v9201_v2 = vld [vmem:[%s14111_s3 + $0x560] ss:$8 sps:$4 sm:$0xff]  }
 0x1e5   :  { %v1716_v53 = vmax.f32 %v1350_v48, %v1692_v28  ;;  %v1352_v55 = vmax.f32 %v11251_v8, %v1328_v50  ;;  %2474 = vmatpush1.bf16.msra.mxu0 %v9174_v45  ;;  %2687 = vmatpush1.bf16.msra.mxu1 %v9177_v46  ;;  %v9191_v8 = vld [vmem:[%s14111_s3 + $0x544] ss:$8 sps:$4 sm:$0xff]   ;;  %v9206_v59 = vld [vmem:[%s14111_s3 + $0x74] ss:$8 sps:$4 sm:$0xff]   ;;  %v9204_v10 = vld [vmem:[%s14111_s3 + $0x70] ss:$8 sps:$4 sm:$0xff]  }
 0x1e6   :  { %v1717_v31 = vmax.f32 %v1351_v58, %v1693_v49  ;;  %2501 = vmatprep.mubr.bf16.mxu0 %v11270_v27  ;;  %2714 = vmatprep.mubr.bf16.mxu1 %v11270_v27  ;;  %v9186_v27 = vld [vmem:[%s14111_s3 + $0x40] ss:$8 sps:$4 sm:$0xff]   ;;  %v9209_v6 = vld [vmem:[%s14111_s3 + $0x574] ss:$8 sps:$4 sm:$0xff]   ;;  %v9207_v62 = vld [vmem:[%s14111_s3 + $0x570] ss:$8 sps:$4 sm:$0xff]  }
 0x1e7   :  { %v1718_v61 = vmax.f32 %v1352_v55, %v1694_v56  ;;  %2475 = vmatprep.subr.bf16.mxu0 %v9182_v52  ;;  %2688 = vmatprep.subr.bf16.mxu1 %v9185_v4  ;;  %v9212_v11 = vld [vmem:[%s14111_s3 + $0x84] ss:$8 sps:$4 sm:$0xff]   ;;  %v9210_v33 = vld [vmem:[%s14111_s3 + $0x80] ss:$8 sps:$4 sm:$0xff]   ;;  %v9218_v34 = vld [vmem:[%s14111_s3 + $0x94] ss:$8 sps:$4 sm:$0xff]  }
 0x1e8   :  { %v1729_v60 = vpack.c.bf16 %v1717_v31, %v1715_v15  ;;  %v9215_v47 = vld [vmem:[%s14111_s3 + $0x584] ss:$8 sps:$4 sm:$0xff]   ;;  %v9213_v14 = vld [vmem:[%s14111_s3 + $0x580] ss:$8 sps:$4 sm:$0xff]   ;;  %v9221_v18 = vld [vmem:[%s14111_s3 + $0x594] ss:$8 sps:$4 sm:$0xff]  }
 0x1e9   :  { %v1730_v24 = vpack.c.bf16 %v1718_v61, %v1716_v53  ;;  %2476 = vmatpush1.bf16.msra.mxu0 %v9180_v7  ;;  %2689 = vmatpush1.bf16.msra.mxu1 %v9183_v20  ;;  %v9216_v19 = vld [vmem:[%s14111_s3 + $0x90] ss:$8 sps:$4 sm:$0xff]   ;;  %v9224_v3 = vld [vmem:[%s14111_s3 + $0xa4] ss:$8 sps:$4 sm:$0xff]   ;;  %v9222_v51 = vld [vmem:[%s14111_s3 + $0xa0] ss:$8 sps:$4 sm:$0xff]  }
 0x1ea   :  { %1741 = vst [vmem:[#allocation2 + $0x50] sm:$0xff] %v1729_v60  ;;  %2477 = vmatprep.subr.bf16.mxu0 %v9188_v36  ;;  %2690 = vmatprep.subr.bf16.mxu1 %v9191_v8  ;;  %v9219_v35 = vld [vmem:[%s14111_s3 + $0x590] ss:$8 sps:$4 sm:$0xff]   ;;  %v9227_v23 = vld [vmem:[%s14111_s3 + $0x5a4] ss:$8 sps:$4 sm:$0xff]  }
 0x1eb   :  { %1742 = vst [vmem:[#allocation2 + $0x58] sm:$0xff] %v1730_v24  ;;  %v9225_v26 = vld [vmem:[%s14111_s3 + $0x5a0] ss:$8 sps:$4 sm:$0xff]   ;;  %v9230_v30 = vld [vmem:[%s14111_s3 + $0xb4] ss:$8 sps:$4 sm:$0xff]  }
 0x1ec   :  { %v9233_v54 = vld [vmem:[%s14111_s3 + $0x5b4] ss:$8 sps:$4 sm:$0xff]   ;;  %v9228_v32 = vld [vmem:[%s14111_s3 + $0xb0] ss:$8 sps:$4 sm:$0xff]   ;;  %v9236_v38 = vld [vmem:[%s14111_s3 + $0xc4] ss:$8 sps:$4 sm:$0xff]  }
 0x1ed   :  { %2478 = vmatpush1.bf16.msra.mxu0 %v9186_v27  ;;  %2691 = vmatpush1.bf16.msra.mxu1 %v9189_v21  ;;  %v9231_v37 = vld [vmem:[%s14111_s3 + $0x5b0] ss:$8 sps:$4 sm:$0xff]   ;;  %v9239_v40 = vld [vmem:[%s14111_s3 + $0x5c4] ss:$8 sps:$4 sm:$0xff]   ;;  %v9234_v57 = vld [vmem:[%s14111_s3 + $0xc0] ss:$8 sps:$4 sm:$0xff]  }
 0x1ee   :  { %2479 = vmatprep.subr.bf16.mxu0 %v9194_v0  ;;  %2692 = vmatprep.subr.bf16.mxu1 %v9197_v13  ;;  %v9237_v41 = vld [vmem:[%s14111_s3 + $0x5c0] ss:$8 sps:$4 sm:$0xff]   ;;  %v9242_v42 = vld [vmem:[%s14111_s3 + $0xd4] ss:$8 sps:$4 sm:$0xff]   ;;  %v9240_v9 = vld [vmem:[%s14111_s3 + $0xd0] ss:$8 sps:$4 sm:$0xff]  }
 0x1ef   :  { %v9245_v43 = vld [vmem:[%s14111_s3 + $0x5d4] ss:$8 sps:$4 sm:$0xff]   ;;  %v9243_v45 = vld [vmem:[%s14111_s3 + $0x5d0] ss:$8 sps:$4 sm:$0xff]   ;;  %v9248_v46 = vld [vmem:[%s14111_s3 + $0xe4] ss:$8 sps:$4 sm:$0xff]  }
 0x1f0   :  { %v9251_v48 = vld [vmem:[%s14111_s3 + $0x5e4] ss:$8 sps:$4 sm:$0xff]   ;;  %v9246_v28 = vld [vmem:[%s14111_s3 + $0xe0] ss:$8 sps:$4 sm:$0xff]   ;;  %v9254_v15 = vld [vmem:[%s14111_s3 + $0xf4] ss:$8 sps:$4 sm:$0xff]  }
 0x1f1   :  { %2480 = vmatpush1.bf16.msra.mxu0 %v9192_v63  ;;  %2693 = vmatpush1.bf16.msra.mxu1 %v9195_v39  ;;  %v9249_v12 = vld [vmem:[%s14111_s3 + $0x5e0] ss:$8 sps:$4 sm:$0xff]   ;;  %v9257_v58 = vld [vmem:[%s14111_s3 + $0x5f4] ss:$8 sps:$4 sm:$0xff]   ;;  %v9252_v49 = vld [vmem:[%s14111_s3 + $0xf0] ss:$8 sps:$4 sm:$0xff]  }
 0x1f2   :  { %2481 = vmatprep.subr.bf16.mxu0 %v9200_v1  ;;  %2694 = vmatprep.subr.bf16.mxu1 %v9203_v29  ;;  %v9255_v50 = vld [vmem:[%s14111_s3 + $0x5f0] ss:$8 sps:$4 sm:$0xff]   ;;  %v9260_v52 = vld [vmem:[%s14111_s3 + $0x204] ss:$8 sps:$4 sm:$0xff]   ;;  %v9258_v53 = vld [vmem:[%s14111_s3 + $0x200] ss:$8 sps:$4 sm:$0xff]  }
 0x1f3   :  { %v9263_v4 = vld [vmem:[%s14111_s3 + $0x704] ss:$8 sps:$4 sm:$0xff]   ;;  %v9261_v31 = vld [vmem:[%s14111_s3 + $0x700] ss:$8 sps:$4 sm:$0xff]   ;;  %v9266_v56 = vld [vmem:[%s14111_s3 + $0x214] ss:$8 sps:$4 sm:$0xff]  }
 0x1f4   :  { %v1744_v55 = vld [vmem:[#allocation2] sm:$0xff]  ;;  %v9269_v7 = vld [vmem:[%s14111_s3 + $0x714] ss:$8 sps:$4 sm:$0xff]   ;;  %v2736_v20 = vld [vmem:[#allocation2 + $0x8] sm:$0xf0]  ;;  %v2785_v27 = vrot.slane %v11289_v17, 4 }
 0x1f5   :  { %2482 = vmatpush1.bf16.msra.mxu0 %v9198_v44  ;;  %2695 = vmatpush1.bf16.msra.mxu1 %v9201_v2  ;;  %v9264_v36 = vld [vmem:[%s14111_s3 + $0x210] ss:$8 sps:$4 sm:$0xff]   ;;  %v9272_v60 = vld [vmem:[%s14111_s3 + $0x224] ss:$8 sps:$4 sm:$0xff]   ;;  %v2784_v24 = vrot.slane %v2736_v20, 4 }
 0x1f6   :  { %2483 = vmatprep.subr.bf16.mxu0 %v9206_v59  ;;  %2696 = vmatprep.subr.bf16.mxu1 %v9209_v6  ;;  %v9267_v8 = vld [vmem:[%s14111_s3 + $0x710] ss:$8 sps:$4 sm:$0xff]   ;;  %v9275_v61 = vld [vmem:[%s14111_s3 + $0x724] ss:$8 sps:$4 sm:$0xff]   ;;  %v9270_v21 = vld [vmem:[%s14111_s3 + $0x220] ss:$8 sps:$4 sm:$0xff]  }
 0x1f7   :  { %v9273_v0 = vld [vmem:[%s14111_s3 + $0x720] ss:$8 sps:$4 sm:$0xff]   ;;  %v9278_v13 = vld [vmem:[%s14111_s3 + $0x234] ss:$8 sps:$4 sm:$0xff]   ;;  %v11572_v39 = vsel %vm2780_vm2, %v2784_v24, %v2785_v27  ;;  %v9276_v1 = vld [vmem:[%s14111_s3 + $0x230] ss:$8 sps:$4 sm:$0xff]  }
 0x1f8   :  { %v9281_v63 = vld [vmem:[%s14111_s3 + $0x734] ss:$8 sps:$4 sm:$0xff]   ;;  %v9279_v29 = vld [vmem:[%s14111_s3 + $0x730] ss:$8 sps:$4 sm:$0xff]   ;;  %v9287_v44 = vld [vmem:[%s14111_s3 + $0x744] ss:$8 sps:$4 sm:$0xff]  }
 0x1f9   :  { %2484 = vmatpush1.bf16.msra.mxu0 %v9204_v10  ;;  %2697 = vmatpush1.bf16.msra.mxu1 %v9207_v62  ;;  %v9282_v2 = vld [vmem:[%s14111_s3 + $0x240] ss:$8 sps:$4 sm:$0xff]   ;;  %v9290_v6 = vld [vmem:[%s14111_s3 + $0x254] ss:$8 sps:$4 sm:$0xff]   ;;  %v9288_v62 = vld [vmem:[%s14111_s3 + $0x250] ss:$8 sps:$4 sm:$0xff]  }
 0x1fa   :  { %2485 = vmatprep.subr.bf16.mxu0 %v9212_v11  ;;  %2698 = vmatprep.subr.bf16.mxu1 %v9215_v47  ;;  %v9285_v59 = vld [vmem:[%s14111_s3 + $0x740] ss:$8 sps:$4 sm:$0xff]   ;;  %v9293_v10 = vld [vmem:[%s14111_s3 + $0x754] ss:$8 sps:$4 sm:$0xff]   ;;  %v9291_v11 = vld [vmem:[%s14111_s3 + $0x750] ss:$8 sps:$4 sm:$0xff]  }
 0x1fb   :  { %v9296_v47 = vld [vmem:[%s14111_s3 + $0x264] ss:$8 sps:$4 sm:$0xff]   ;;  %v11720_v20 = vld [vmem:[#allocation2 + $0x10] sm:$0xff] }
 0x1fc   :  { %v9356_v24 = vld [vmem:[%s14111_s3 + $0x304] ss:$8 sps:$4 sm:$0xff]  }
 0x1fd   :  { %2486 = vmatpush1.bf16.msra.mxu0 %v9210_v33  ;;  %2699 = vmatpush1.bf16.msra.mxu1 %v9213_v14  ;;  %v9299_v33 = vld [vmem:[%s14111_s3 + $0x764] ss:$8 sps:$4 sm:$0xff]   ;;  %v9294_v14 = vld [vmem:[%s14111_s3 + $0x260] ss:$8 sps:$4 sm:$0xff]  }
 0x1fe   :  { %2487 = vmatprep.subr.bf16.mxu0 %v9218_v34  ;;  %2700 = vmatprep.subr.bf16.mxu1 %v9221_v18  ;;  %v9297_v34 = vld [vmem:[%s14111_s3 + $0x760] ss:$8 sps:$4 sm:$0xff]   ;;  %v9302_v18 = vld [vmem:[%s14111_s3 + $0x274] ss:$8 sps:$4 sm:$0xff]  }
 0x201   :  { %2488 = vmatpush1.bf16.msra.mxu0 %v9216_v19  ;;  %2701 = vmatpush1.bf16.msra.mxu1 %v9219_v35  ;;  %v9305_v19 = vld [vmem:[%s14111_s3 + $0x774] ss:$8 sps:$4 sm:$0xff]   ;;  %v9300_v35 = vld [vmem:[%s14111_s3 + $0x270] ss:$8 sps:$4 sm:$0xff]  }
 0x202   :  { %2489 = vmatprep.subr.bf16.mxu0 %v9224_v3  ;;  %2702 = vmatprep.subr.bf16.mxu1 %v9227_v23  ;;  %v9303_v3 = vld [vmem:[%s14111_s3 + $0x770] ss:$8 sps:$4 sm:$0xff]   ;;  %v9308_v23 = vld [vmem:[%s14111_s3 + $0x284] ss:$8 sps:$4 sm:$0xff]  }
 0x205   :  { %2490 = vmatpush1.bf16.msra.mxu0 %v9222_v51  ;;  %2703 = vmatpush1.bf16.msra.mxu1 %v9225_v26  ;;  %v9311_v51 = vld [vmem:[%s14111_s3 + $0x784] ss:$8 sps:$4 sm:$0xff]   ;;  %v9306_v26 = vld [vmem:[%s14111_s3 + $0x280] ss:$8 sps:$4 sm:$0xff]  }
 0x206   :  { %2491 = vmatprep.subr.bf16.mxu0 %v9230_v30  ;;  %2704 = vmatprep.subr.bf16.mxu1 %v9233_v54  ;;  %v9309_v30 = vld [vmem:[%s14111_s3 + $0x780] ss:$8 sps:$4 sm:$0xff]   ;;  %v9314_v54 = vld [vmem:[%s14111_s3 + $0x294] ss:$8 sps:$4 sm:$0xff]  }
 0x209   :  { %2492 = vmatpush1.bf16.msra.mxu0 %v9228_v32  ;;  %2705 = vmatpush1.bf16.msra.mxu1 %v9231_v37  ;;  %v9317_v32 = vld [vmem:[%s14111_s3 + $0x794] ss:$8 sps:$4 sm:$0xff]   ;;  %v9312_v37 = vld [vmem:[%s14111_s3 + $0x290] ss:$8 sps:$4 sm:$0xff]  }
 0x20a   :  { %2493 = vmatprep.subr.bf16.mxu0 %v9236_v38  ;;  %2706 = vmatprep.subr.bf16.mxu1 %v9239_v40  ;;  %v9315_v38 = vld [vmem:[%s14111_s3 + $0x790] ss:$8 sps:$4 sm:$0xff]   ;;  %v9320_v40 = vld [vmem:[%s14111_s3 + $0x2a4] ss:$8 sps:$4 sm:$0xff]  }
 0x20d   :  { %2494 = vmatpush1.bf16.msra.mxu0 %v9234_v57  ;;  %2707 = vmatpush1.bf16.msra.mxu1 %v9237_v41  ;;  %v9323_v57 = vld [vmem:[%s14111_s3 + $0x7a4] ss:$8 sps:$4 sm:$0xff]   ;;  %v9318_v41 = vld [vmem:[%s14111_s3 + $0x2a0] ss:$8 sps:$4 sm:$0xff]  }
 0x20e   :  { %2495 = vmatprep.subr.bf16.mxu0 %v9242_v42  ;;  %2708 = vmatprep.subr.bf16.mxu1 %v9245_v43  ;;  %v9321_v42 = vld [vmem:[%s14111_s3 + $0x7a0] ss:$8 sps:$4 sm:$0xff]   ;;  %v9326_v43 = vld [vmem:[%s14111_s3 + $0x2b4] ss:$8 sps:$4 sm:$0xff]  }
 0x211   :  { %2496 = vmatpush1.bf16.msra.mxu0 %v9240_v9  ;;  %2709 = vmatpush1.bf16.msra.mxu1 %v9243_v45  ;;  %v9329_v9 = vld [vmem:[%s14111_s3 + $0x7b4] ss:$8 sps:$4 sm:$0xff]   ;;  %v9324_v45 = vld [vmem:[%s14111_s3 + $0x2b0] ss:$8 sps:$4 sm:$0xff]  }
 0x212   :  { %2497 = vmatprep.subr.bf16.mxu0 %v9248_v46  ;;  %2710 = vmatprep.subr.bf16.mxu1 %v9251_v48  ;;  %v9327_v46 = vld [vmem:[%s14111_s3 + $0x7b0] ss:$8 sps:$4 sm:$0xff]   ;;  %v9332_v48 = vld [vmem:[%s14111_s3 + $0x2c4] ss:$8 sps:$4 sm:$0xff]  }
 0x215   :  { %2498 = vmatpush1.bf16.msra.mxu0 %v9246_v28  ;;  %2711 = vmatpush1.bf16.msra.mxu1 %v9249_v12  ;;  %v9335_v28 = vld [vmem:[%s14111_s3 + $0x7c4] ss:$8 sps:$4 sm:$0xff]   ;;  %v9330_v12 = vld [vmem:[%s14111_s3 + $0x2c0] ss:$8 sps:$4 sm:$0xff]  }
 0x216   :  { %2499 = vmatprep.subr.bf16.mxu0 %v9254_v15  ;;  %2712 = vmatprep.subr.bf16.mxu1 %v9257_v58  ;;  %v9333_v15 = vld [vmem:[%s14111_s3 + $0x7c0] ss:$8 sps:$4 sm:$0xff]   ;;  %v9338_v58 = vld [vmem:[%s14111_s3 + $0x2d4] ss:$8 sps:$4 sm:$0xff]  }
 0x219   :  { %2500 = vmatpush1.bf16.msra.mxu0 %v9252_v49  ;;  %2713 = vmatpush1.bf16.msra.mxu1 %v9255_v50  ;;  %v9341_v49 = vld [vmem:[%s14111_s3 + $0x7d4] ss:$8 sps:$4 sm:$0xff]   ;;  %v9336_v50 = vld [vmem:[%s14111_s3 + $0x2d0] ss:$8 sps:$4 sm:$0xff]  }
 0x21a   :  { %2955 = vmatprep.subr.bf16.mxu0 %v9260_v52  ;;  %3201 = vmatprep.subr.bf16.mxu1 %v9263_v4  ;;  %v9339_v52 = vld [vmem:[%s14111_s3 + $0x7d0] ss:$8 sps:$4 sm:$0xff]   ;;  %v9344_v4 = vld [vmem:[%s14111_s3 + $0x2e4] ss:$8 sps:$4 sm:$0xff]  }
 0x21c   :  { %2502 = vmatmul.mubr.bf16.vlgmr.msra.gmra.mrb[48].mxu0 %v1744_v55  ;;  %2715 = vmatmul.mubr.bf16.vlgmr.msra.gmra.mrb[48].mxu1 %v1744_v55  ;;  %v9345_v55 = vld [vmem:[%s14111_s3 + $0x7e0] ss:$8 sps:$4 sm:$0xff]  }
 0x21d   :  { %2511 = vmatprep.mubr.bf16.mxu0 %v11289_v17  ;;  %2724 = vmatprep.mubr.bf16.mxu1 %v11289_v17  ;;  %v11769_v17 = vld [vmem:[%s14111_s3 + $0x810] ss:$8 sps:$4 sm:$0xff]  }
 0x21e   :  { %2956 = vmatpush1.bf16.msra.mxu0 %v9258_v53  ;;  %3202 = vmatpush1.bf16.msra.mxu1 %v9261_v31  ;;  %v9347_v53 = vld [vmem:[%s14111_s3 + $0x7e4] ss:$8 sps:$4 sm:$0xff]   ;;  %v9342_v31 = vld [vmem:[%s14111_s3 + $0x2e0] ss:$8 sps:$4 sm:$0xff]  }
 0x21f   :  { %2957 = vmatprep.subr.bf16.mxu0 %v9266_v56  ;;  %3203 = vmatprep.subr.bf16.mxu1 %v9269_v7  ;;  %v9350_v56 = vld [vmem:[%s14111_s3 + $0x2f4] ss:$8 sps:$4 sm:$0xff]  }
 0x220   :  { %v9353_v7 = vld [vmem:[%s14111_s3 + $0x7f4] ss:$8 sps:$4 sm:$0xff]  }
 0x222   :  { %2958 = vmatpush1.bf16.msra.mxu0 %v9264_v36  ;;  %3204 = vmatpush1.bf16.msra.mxu1 %v9267_v8  ;;  %v9348_v36 = vld [vmem:[%s14111_s3 + $0x2f0] ss:$8 sps:$4 sm:$0xff]  }
 0x223   :  { %2959 = vmatprep.subr.bf16.mxu0 %v9272_v60  ;;  %3205 = vmatprep.subr.bf16.mxu1 %v9275_v61  ;;  %v9351_v8 = vld [vmem:[%s14111_s3 + $0x7f0] ss:$8 sps:$4 sm:$0xff]   ;;  %v2740_v60 = vld [vmem:[#allocation2 + $0x28] sm:$0xf]  ;;  %v2735_v61 = vld [vmem:[#allocation2] sm:$0xf0] }
 0x224   :  { %2512 = vmatmul.mubr.bf16.gmra.mrb[52].mxu0 %v11284_v5  ;;  %2725 = vmatmul.mubr.bf16.gmra.mrb[52].mxu1 %v11284_v5  ;;  %v9284_v5 = vld [vmem:[%s14111_s3 + $0x244] ss:$8 sps:$4 sm:$0xff]  }
 0x225   :  { %2987 = vmatprep.mubr.bf16.mxu0 %v11572_v39  ;;  %3233 = vmatprep.mubr.bf16.mxu1 %v11572_v39 }
 0x226   :  { %2960 = vmatpush1.bf16.msra.mxu0 %v9270_v21  ;;  %3206 = vmatpush1.bf16.msra.mxu1 %v9273_v0  ;;  %v9359_v21 = vld [vmem:[%s14111_s3 + $0x804] ss:$8 sps:$4 sm:$0xff]   ;;  %v2782_v0 = vrot.slane %v11720_v20, 4 }
 0x227   :  { %2961 = vmatprep.subr.bf16.mxu0 %v9278_v13  ;;  %3207 = vmatprep.subr.bf16.mxu1 %v9281_v63  ;;  %v2789_v13 = vrot.slane %v2740_v60, 4  ;;  %v2781_v63 = vrot.slane %v2735_v61, 4  ;;  %v9422_v60 = vld [vmem:[%s14111_s3 + $0x3b4] ss:$8 sps:$4 sm:$0xff]  }
 0x228   :  { %v9425_v61 = vld [vmem:[%s14111_s3 + $0x8b4] ss:$8 sps:$4 sm:$0xff]  }
 0x22a   :  { %2962 = vmatpush1.bf16.msra.mxu0 %v9276_v1  ;;  %3208 = vmatpush1.bf16.msra.mxu1 %v9279_v29  ;;  %v9354_v1 = vld [vmem:[%s14111_s3 + $0x300] ss:$8 sps:$4 sm:$0xff]  }
 0x22b   :  { %2963 = vmatprep.subr.bf16.mxu0 %v9284_v5  ;;  %3209 = vmatprep.subr.bf16.mxu1 %v9287_v44  ;;  %v9357_v29 = vld [vmem:[%s14111_s3 + $0x800] ss:$8 sps:$4 sm:$0xff]   ;;  %v11742_v5 = vsel %vm2780_vm2, %v2781_v63, %v2782_v0  ;;  %v9362_v44 = vld [vmem:[%s14111_s3 + $0x314] ss:$8 sps:$4 sm:$0xff]  }
 0x22c   :  { %v9426_v63 = vld [vmem:[%s14111_s3 + $0x3c0] ss:$8 sps:$4 sm:$0xff]  }
 0x22e   :  { %2964 = vmatpush1.bf16.msra.mxu0 %v9282_v2  ;;  %3210 = vmatpush1.bf16.msra.mxu1 %v9285_v59  ;;  %v9365_v2 = vld [vmem:[%s14111_s3 + $0x814] ss:$8 sps:$4 sm:$0xff]   ;;  %v2739_v59 = vld [vmem:[#allocation2 + $0x20] sm:$0xf] }
 0x22f   :  { %2965 = vmatprep.subr.bf16.mxu0 %v9290_v6  ;;  %3211 = vmatprep.subr.bf16.mxu1 %v9293_v10  ;;  %v11755_v6 = vsel %vm2780_vm2, %v2785_v27, %v2789_v13  ;;  %v11759_v10 = vld [vmem:[#allocation2 + $0x48] sm:$0xff]  ;;  %v2787_v27 = vrot.slane %v2739_v59, 4  ;;  %v9435_v59 = vld [vmem:[%s14111_s3 + $0x8d0] ss:$8 sps:$4 sm:$0xff]  }
 0x230   :  { %v9431_v13 = vld [vmem:[%s14111_s3 + $0x8c4] ss:$8 sps:$4 sm:$0xff]  }
 0x232   :  { %2966 = vmatpush1.bf16.msra.mxu0 %v9288_v62  ;;  %3212 = vmatpush1.bf16.msra.mxu1 %v9291_v11  ;;  %v11764_v62 = vld [vmem:[%s14111_s3 + $0x310] ss:$8 sps:$4 sm:$0xff]   ;;  %v11774_v11 = vld [vmem:[%s14111_s3 + $0x324] ss:$8 sps:$4 sm:$0xff]  }
 0x233   :  { %2967 = vmatprep.subr.bf16.mxu0 %v9296_v47  ;;  %3213 = vmatprep.subr.bf16.mxu1 %v9299_v33  ;;  %v11779_v47 = vld [vmem:[%s14111_s3 + $0x824] ss:$8 sps:$4 sm:$0xff]   ;;  %v3271_v33 = vld [vmem:[#allocation2 + $0x38] sm:$0xf0] }
 0x236   :  { %2968 = vmatpush1.bf16.msra.mxu0 %v9294_v14  ;;  %3214 = vmatpush1.bf16.msra.mxu1 %v9297_v34  ;;  %v3319_v14 = vrot.slane %v11759_v10, 4  ;;  %v11787_v34 = vld [vmem:[%s14111_s3 + $0x320] ss:$8 sps:$4 sm:$0xff]  }
 0x237   :  { %2969 = vmatprep.subr.bf16.mxu0 %v9302_v18  ;;  %3215 = vmatprep.subr.bf16.mxu1 %v9305_v19  ;;  %v11792_v18 = vld [vmem:[%s14111_s3 + $0x820] ss:$8 sps:$4 sm:$0xff]   ;;  %v3318_v19 = vrot.slane %v3271_v33, 4  ;;  %v9443_v33 = vld [vmem:[%s14111_s3 + $0x8e4] ss:$8 sps:$4 sm:$0xff]  }
 0x23a   :  { %2970 = vmatpush1.bf16.msra.mxu0 %v9300_v35  ;;  %3216 = vmatpush1.bf16.msra.mxu1 %v9303_v3  ;;  %v11795_v35 = vsel %vm2780_vm2, %v2782_v0, %v2787_v27  ;;  %v11802_v3 = vld [vmem:[%s14111_s3 + $0x334] ss:$8 sps:$4 sm:$0xff]   ;;  %v9428_v0 = vld [vmem:[%s14111_s3 + $0x3c4] ss:$8 sps:$4 sm:$0xff]  }
 0x23b   :  { %2971 = vmatprep.subr.bf16.mxu0 %v9308_v23  ;;  %3217 = vmatprep.subr.bf16.mxu1 %v9311_v51  ;;  %v11807_v23 = vld [vmem:[%s14111_s3 + $0x834] ss:$8 sps:$4 sm:$0xff]   ;;  %v11814_v51 = vsel %vm2780_vm2, %v3318_v19, %v3319_v14  ;;  %v9440_v27 = vld [vmem:[%s14111_s3 + $0x3e4] ss:$8 sps:$4 sm:$0xff]   ;;  %v9438_v19 = vld [vmem:[%s14111_s3 + $0x3e0] ss:$8 sps:$4 sm:$0xff]  }
 0x23e   :  { %2972 = vmatpush1.bf16.msra.mxu0 %v9306_v26  ;;  %3218 = vmatpush1.bf16.msra.mxu1 %v9309_v30  ;;  %v11823_v26 = vld [vmem:[%s14111_s3 + $0x330] ss:$8 sps:$4 sm:$0xff]  }
 0x23f   :  { %2973 = vmatprep.subr.bf16.mxu0 %v9314_v54  ;;  %3219 = vmatprep.subr.bf16.mxu1 %v9317_v32  ;;  %v11828_v30 = vld [vmem:[%s14111_s3 + $0x830] ss:$8 sps:$4 sm:$0xff]   ;;  %v11835_v54 = vld [vmem:[%s14111_s3 + $0x344] ss:$8 sps:$4 sm:$0xff]  }
 0x240   :  { %v11840_v32 = vld [vmem:[%s14111_s3 + $0x844] ss:$8 sps:$4 sm:$0xff]  }
 0x242   :  { %2974 = vmatpush1.bf16.msra.mxu0 %v9312_v37  ;;  %3220 = vmatpush1.bf16.msra.mxu1 %v9315_v38  ;;  %v11847_v37 = vld [vmem:[%s14111_s3 + $0x340] ss:$8 sps:$4 sm:$0xff]  }
 0x243   :  { %2975 = vmatprep.subr.bf16.mxu0 %v9320_v40  ;;  %3221 = vmatprep.subr.bf16.mxu1 %v9323_v57  ;;  %v11852_v38 = vld [vmem:[%s14111_s3 + $0x840] ss:$8 sps:$4 sm:$0xff]   ;;  %v9386_v40 = vld [vmem:[%s14111_s3 + $0x354] ss:$8 sps:$4 sm:$0xff]  }
 0x244   :  { %v9389_v57 = vld [vmem:[%s14111_s3 + $0x854] ss:$8 sps:$4 sm:$0xff]  }
 0x246   :  { %2976 = vmatpush1.bf16.msra.mxu0 %v9318_v41  ;;  %3222 = vmatpush1.bf16.msra.mxu1 %v9321_v42  ;;  %v9384_v41 = vld [vmem:[%s14111_s3 + $0x350] ss:$8 sps:$4 sm:$0xff]  }
 0x247   :  { %2977 = vmatprep.subr.bf16.mxu0 %v9326_v43  ;;  %3223 = vmatprep.subr.bf16.mxu1 %v9329_v9  ;;  %v9387_v42 = vld [vmem:[%s14111_s3 + $0x850] ss:$8 sps:$4 sm:$0xff]   ;;  %v9392_v43 = vld [vmem:[%s14111_s3 + $0x364] ss:$8 sps:$4 sm:$0xff]  }
 0x248   :  { %v9395_v9 = vld [vmem:[%s14111_s3 + $0x864] ss:$8 sps:$4 sm:$0xff]  }
 0x24a   :  { %2978 = vmatpush1.bf16.msra.mxu0 %v9324_v45  ;;  %3224 = vmatpush1.bf16.msra.mxu1 %v9327_v46  ;;  %v9390_v45 = vld [vmem:[%s14111_s3 + $0x360] ss:$8 sps:$4 sm:$0xff]  }
 0x24b   :  { %2979 = vmatprep.subr.bf16.mxu0 %v9332_v48  ;;  %3225 = vmatprep.subr.bf16.mxu1 %v9335_v28  ;;  %v9393_v46 = vld [vmem:[%s14111_s3 + $0x860] ss:$8 sps:$4 sm:$0xff]   ;;  %v9398_v48 = vld [vmem:[%s14111_s3 + $0x374] ss:$8 sps:$4 sm:$0xff]  }
 0x24c   :  { %v9401_v28 = vld [vmem:[%s14111_s3 + $0x874] ss:$8 sps:$4 sm:$0xff]  }
 0x24e   :  { %2980 = vmatpush1.bf16.msra.mxu0 %v9330_v12  ;;  %3226 = vmatpush1.bf16.msra.mxu1 %v9333_v15  ;;  %v9396_v12 = vld [vmem:[%s14111_s3 + $0x370] ss:$8 sps:$4 sm:$0xff]  }
 0x24f   :  { %2981 = vmatprep.subr.bf16.mxu0 %v9338_v58  ;;  %3227 = vmatprep.subr.bf16.mxu1 %v9341_v49  ;;  %v9399_v15 = vld [vmem:[%s14111_s3 + $0x870] ss:$8 sps:$4 sm:$0xff]   ;;  %v9404_v58 = vld [vmem:[%s14111_s3 + $0x384] ss:$8 sps:$4 sm:$0xff]  }
 0x250   :  { %v9407_v49 = vld [vmem:[%s14111_s3 + $0x884] ss:$8 sps:$4 sm:$0xff]  }
 0x252   :  { %2982 = vmatpush1.bf16.msra.mxu0 %v9336_v50  ;;  %3228 = vmatpush1.bf16.msra.mxu1 %v9339_v52  ;;  %v9402_v50 = vld [vmem:[%s14111_s3 + $0x380] ss:$8 sps:$4 sm:$0xff]  }
 0x253   :  { %2983 = vmatprep.subr.bf16.mxu0 %v9344_v4  ;;  %3229 = vmatprep.subr.bf16.mxu1 %v9347_v53  ;;  %v9405_v52 = vld [vmem:[%s14111_s3 + $0x880] ss:$8 sps:$4 sm:$0xff]   ;;  %v9410_v4 = vld [vmem:[%s14111_s3 + $0x394] ss:$8 sps:$4 sm:$0xff]  }
 0x254   :  { %v9413_v53 = vld [vmem:[%s14111_s3 + $0x894] ss:$8 sps:$4 sm:$0xff]  }
 0x256   :  { %2984 = vmatpush1.bf16.msra.mxu0 %v9342_v31  ;;  %3230 = vmatpush1.bf16.msra.mxu1 %v9345_v55  ;;  %v9408_v31 = vld [vmem:[%s14111_s3 + $0x390] ss:$8 sps:$4 sm:$0xff]  }
 0x257   :  { %2985 = vmatprep.subr.bf16.mxu0 %v9350_v56  ;;  %3231 = vmatprep.subr.bf16.mxu1 %v9353_v7  ;;  %v9411_v55 = vld [vmem:[%s14111_s3 + $0x890] ss:$8 sps:$4 sm:$0xff]   ;;  %v9416_v56 = vld [vmem:[%s14111_s3 + $0x3a4] ss:$8 sps:$4 sm:$0xff]  }
 0x258   :  { %v9419_v7 = vld [vmem:[%s14111_s3 + $0x8a4] ss:$8 sps:$4 sm:$0xff]  }
 0x25a   :  { %2986 = vmatpush1.bf16.msra.mxu0 %v9348_v36  ;;  %3232 = vmatpush1.bf16.msra.mxu1 %v9351_v8  ;;  %v9414_v36 = vld [vmem:[%s14111_s3 + $0x3a0] ss:$8 sps:$4 sm:$0xff]  }
 0x25b   :  { %3489 = vmatprep.subr.bf16.mxu0 %v9356_v24  ;;  %3735 = vmatprep.subr.bf16.mxu1 %v9359_v21  ;;  %v9417_v8 = vld [vmem:[%s14111_s3 + $0x8a0] ss:$8 sps:$4 sm:$0xff]   ;;  %v9420_v24 = vld [vmem:[%s14111_s3 + $0x3b0] ss:$8 sps:$4 sm:$0xff]  }
 0x25c   :  { %v9423_v21 = vld [vmem:[%s14111_s3 + $0x8b0] ss:$8 sps:$4 sm:$0xff]  }
 0x25d   :  { %2988 = vmatmul.mubr.bf16.vlgmr.msra.gmra.mrb[48].mxu0 %v11742_v5  ;;  %3234 = vmatmul.mubr.bf16.vlgmr.msra.gmra.mrb[48].mxu1 %v11742_v5 }
 0x25e   :  { %2997 = vmatprep.mubr.bf16.mxu0 %v11755_v6  ;;  %3243 = vmatprep.mubr.bf16.mxu1 %v11755_v6 }
 0x25f   :  { %3490 = vmatpush1.bf16.msra.mxu0 %v9354_v1  ;;  %3736 = vmatpush1.bf16.msra.mxu1 %v9357_v29  ;;  %v9429_v1 = vld [vmem:[%s14111_s3 + $0x8c0] ss:$8 sps:$4 sm:$0xff]   ;;  %v9434_v29 = vld [vmem:[%s14111_s3 + $0x3d4] ss:$8 sps:$4 sm:$0xff]  }
 0x260   :  { %3491 = vmatprep.subr.bf16.mxu0 %v9362_v44  ;;  %3737 = vmatprep.subr.bf16.mxu1 %v9365_v2  ;;  %v9437_v44 = vld [vmem:[%s14111_s3 + $0x8d4] ss:$8 sps:$4 sm:$0xff]   ;;  %v9432_v2 = vld [vmem:[%s14111_s3 + $0x3d0] ss:$8 sps:$4 sm:$0xff]  }
 0x263   :  { %3492 = vmatpush1.bf16.msra.mxu0 %v11764_v62  ;;  %3738 = vmatpush1.bf16.msra.mxu1 %v11769_v17 }
 0x264   :  { %3493 = vmatprep.subr.bf16.mxu0 %v11774_v11  ;;  %3739 = vmatprep.subr.bf16.mxu1 %v11779_v47 }
 0x265   :  { %2998 = vmatmul.mubr.bf16.gmra.mrb[52].mxu0 %v11795_v35  ;;  %3244 = vmatmul.mubr.bf16.gmra.mrb[52].mxu1 %v11795_v35 }
 0x266   :  { %3521 = vmatprep.mubr.bf16.mxu0 %v11814_v51  ;;  %3767 = vmatprep.mubr.bf16.mxu1 %v11814_v51 }
 0x267   :  { %3494 = vmatpush1.bf16.msra.mxu0 %v11787_v34  ;;  %3740 = vmatpush1.bf16.msra.mxu1 %v11792_v18 }
 0x268   :  { %3495 = vmatprep.subr.bf16.mxu0 %v11802_v3  ;;  %3741 = vmatprep.subr.bf16.mxu1 %v11807_v23 }
 0x26b   :  { %3496 = vmatpush1.bf16.msra.mxu0 %v11823_v26  ;;  %3742 = vmatpush1.bf16.msra.mxu1 %v11828_v30 }
 0x26c   :  { %3497 = vmatprep.subr.bf16.mxu0 %v11835_v54  ;;  %3743 = vmatprep.subr.bf16.mxu1 %v11840_v32 }
 0x26f   :  { %3498 = vmatpush1.bf16.msra.mxu0 %v11847_v37  ;;  %3744 = vmatpush1.bf16.msra.mxu1 %v11852_v38 }
 0x270   :  { %3499 = vmatprep.subr.bf16.mxu0 %v9386_v40  ;;  %3745 = vmatprep.subr.bf16.mxu1 %v9389_v57  ;;  %v9441_v40 = vld [vmem:[%s14111_s3 + $0x8e0] ss:$8 sps:$4 sm:$0xff]   ;;  %v9446_v57 = vld [vmem:[%s14111_s3 + $0x3f4] ss:$8 sps:$4 sm:$0xff]  }
 0x273   :  { %3500 = vmatpush1.bf16.msra.mxu0 %v9384_v41  ;;  %3746 = vmatpush1.bf16.msra.mxu1 %v9387_v42  ;;  %v9449_v41 = vld [vmem:[%s14111_s3 + $0x8f4] ss:$8 sps:$4 sm:$0xff]   ;;  %v3272_v42 = vld [vmem:[#allocation2 + $0x40] sm:$0xff] }
 0x274   :  { %3501 = vmatprep.subr.bf16.mxu0 %v9392_v43  ;;  %3747 = vmatprep.subr.bf16.mxu1 %v9395_v9  ;;  %v9444_v43 = vld [vmem:[%s14111_s3 + $0x3f0] ss:$8 sps:$4 sm:$0xff]  }
 0x275   :  { %v9447_v9 = vld [vmem:[%s14111_s3 + $0x8f0] ss:$8 sps:$4 sm:$0xff]  }
 0x277   :  { %3502 = vmatpush1.bf16.msra.mxu0 %v9390_v45  ;;  %3748 = vmatpush1.bf16.msra.mxu1 %v9393_v46  ;;  %v3275_v45 = vld [vmem:[#allocation2 + $0x58] sm:$0xf]  ;;  %v3270_v46 = vld [vmem:[#allocation2 + $0x30] sm:$0xf0] }
 0x278   :  { %3503 = vmatprep.subr.bf16.mxu0 %v9398_v48  ;;  %3749 = vmatprep.subr.bf16.mxu1 %v9401_v28  ;;  %v9452_v48 = vld [vmem:[%s14111_s3 + $0x404] ss:$8 sps:$4 sm:$0xff]  }
 0x279   :  { %v9455_v28 = vld [vmem:[%s14111_s3 + $0x904] ss:$8 sps:$4 sm:$0xff]  }
 0x27b   :  { %3504 = vmatpush1.bf16.msra.mxu0 %v9396_v12  ;;  %3750 = vmatpush1.bf16.msra.mxu1 %v9399_v15  ;;  %v3316_v12 = vrot.slane %v3272_v42, 4  ;;  %v3323_v15 = vrot.slane %v3275_v45, 4  ;;  %v9489_v42 = vld [vmem:[%s14111_s3 + $0x960] ss:$8 sps:$4 sm:$0xff]   ;;  %v9492_v45 = vld [vmem:[%s14111_s3 + $0x470] ss:$8 sps:$4 sm:$0xff]  }
 0x27c   :  { %3505 = vmatprep.subr.bf16.mxu0 %v9404_v58  ;;  %3751 = vmatprep.subr.bf16.mxu1 %v9407_v49  ;;  %v3315_v58 = vrot.slane %v3270_v46, 4  ;;  %v9450_v49 = vld [vmem:[%s14111_s3 + $0x400] ss:$8 sps:$4 sm:$0xff]   ;;  %v9495_v46 = vld [vmem:[%s14111_s3 + $0x970] ss:$8 sps:$4 sm:$0xff]  }
 0x27f   :  { %3506 = vmatpush1.bf16.msra.mxu0 %v9402_v50  ;;  %3752 = vmatpush1.bf16.msra.mxu1 %v9405_v52  ;;  %v9453_v50 = vld [vmem:[%s14111_s3 + $0x900] ss:$8 sps:$4 sm:$0xff]   ;;  %v12003_v52 = vsel %vm2780_vm2, %v3315_v58, %v3316_v12  ;;  %v9506_v58 = vld [vmem:[%s14111_s3 + $0x494] ss:$8 sps:$4 sm:$0xff]  }
 0x280   :  { %3507 = vmatprep.subr.bf16.mxu0 %v9410_v4  ;;  %3753 = vmatprep.subr.bf16.mxu1 %v9413_v53  ;;  %v9458_v4 = vld [vmem:[%s14111_s3 + $0x414] ss:$8 sps:$4 sm:$0xff]  }
 0x281   :  { %v9461_v53 = vld [vmem:[%s14111_s3 + $0x914] ss:$8 sps:$4 sm:$0xff]  }
 0x283   :  { %3508 = vmatpush1.bf16.msra.mxu0 %v9408_v31  ;;  %3754 = vmatpush1.bf16.msra.mxu1 %v9411_v55  ;;  %v12016_v31 = vsel %vm2780_vm2, %v3319_v14, %v3323_v15  ;;  %v3274_v55 = vld [vmem:[#allocation2 + $0x50] sm:$0xf]  ;;  %v9464_v14 = vld [vmem:[%s14111_s3 + $0x424] ss:$8 sps:$4 sm:$0xff]   ;;  %v9501_v15 = vld [vmem:[%s14111_s3 + $0x980] ss:$8 sps:$4 sm:$0xff]  }
 0x284   :  { %3509 = vmatprep.subr.bf16.mxu0 %v9416_v56  ;;  %3755 = vmatprep.subr.bf16.mxu1 %v9419_v7  ;;  %v9456_v56 = vld [vmem:[%s14111_s3 + $0x410] ss:$8 sps:$4 sm:$0xff]   ;;  %v3321_v10 = vrot.slane %v3274_v55, 4  ;;  %v9515_v55 = vld [vmem:[%s14111_s3 + $0x9a4] ss:$8 sps:$4 sm:$0xff]  }
 0x285   :  { %v9459_v7 = vld [vmem:[%s14111_s3 + $0x910] ss:$8 sps:$4 sm:$0xff]  }
 0x287   :  { %3510 = vmatpush1.bf16.msra.mxu0 %v9414_v36  ;;  %3756 = vmatpush1.bf16.msra.mxu1 %v9417_v8  ;;  %v9467_v36 = vld [vmem:[%s14111_s3 + $0x924] ss:$8 sps:$4 sm:$0xff]   ;;  %v9462_v8 = vld [vmem:[%s14111_s3 + $0x420] ss:$8 sps:$4 sm:$0xff]  }
 0x288   :  { %3511 = vmatprep.subr.bf16.mxu0 %v9422_v60  ;;  %3757 = vmatprep.subr.bf16.mxu1 %v9425_v61  ;;  %v9465_v60 = vld [vmem:[%s14111_s3 + $0x920] ss:$8 sps:$4 sm:$0xff]   ;;  %v12039_v61 = vsel %vm2780_vm2, %v3316_v12, %v3321_v10  ;;  %v9518_v10 = vld [vmem:[%s14111_s3 + $0x4b4] ss:$8 sps:$4 sm:$0xff]  }
 0x289   :  { %v9498_v12 = vld [vmem:[%s14111_s3 + $0x480] ss:$8 sps:$4 sm:$0xff]  }
 0x28b   :  { %3512 = vmatpush1.bf16.msra.mxu0 %v9420_v24  ;;  %3758 = vmatpush1.bf16.msra.mxu1 %v9423_v21  ;;  %v9470_v24 = vld [vmem:[%s14111_s3 + $0x434] ss:$8 sps:$4 sm:$0xff]  }
 0x28c   :  { %3513 = vmatprep.subr.bf16.mxu0 %v9428_v0  ;;  %3759 = vmatprep.subr.bf16.mxu1 %v9431_v13  ;;  %v9473_v21 = vld [vmem:[%s14111_s3 + $0x934] ss:$8 sps:$4 sm:$0xff]   ;;  %v9468_v13 = vld [vmem:[%s14111_s3 + $0x430] ss:$8 sps:$4 sm:$0xff]  }
 0x28d   :  { %v12049_v0 = vld [vmem:[#allocation2 + $0x18] sm:$0xff] }
 0x28f   :  { %3514 = vmatpush1.bf16.msra.mxu0 %v9426_v63  ;;  %3760 = vmatpush1.bf16.msra.mxu1 %v9429_v1  ;;  %v9471_v63 = vld [vmem:[%s14111_s3 + $0x930] ss:$8 sps:$4 sm:$0xff]   ;;  %v9476_v1 = vld [vmem:[%s14111_s3 + $0x444] ss:$8 sps:$4 sm:$0xff]  }
 0x290   :  { %3515 = vmatprep.subr.bf16.mxu0 %v9434_v29  ;;  %3761 = vmatprep.subr.bf16.mxu1 %v9437_v44  ;;  %v9479_v29 = vld [vmem:[%s14111_s3 + $0x944] ss:$8 sps:$4 sm:$0xff]   ;;  %v9474_v44 = vld [vmem:[%s14111_s3 + $0x440] ss:$8 sps:$4 sm:$0xff]  }
 0x293   :  { %3516 = vmatpush1.bf16.msra.mxu0 %v9432_v2  ;;  %3762 = vmatpush1.bf16.msra.mxu1 %v9435_v59  ;;  %v9477_v2 = vld [vmem:[%s14111_s3 + $0x940] ss:$8 sps:$4 sm:$0xff]   ;;  %v9482_v59 = vld [vmem:[%s14111_s3 + $0x454] ss:$8 sps:$4 sm:$0xff]  }
 0x294   :  { %3517 = vmatprep.subr.bf16.mxu0 %v9440_v27  ;;  %3763 = vmatprep.subr.bf16.mxu1 %v9443_v33  ;;  %v9485_v27 = vld [vmem:[%s14111_s3 + $0x954] ss:$8 sps:$4 sm:$0xff]   ;;  %v9480_v33 = vld [vmem:[%s14111_s3 + $0x450] ss:$8 sps:$4 sm:$0xff]  }
 0x297   :  { %3518 = vmatpush1.bf16.msra.mxu0 %v9438_v19  ;;  %3764 = vmatpush1.bf16.msra.mxu1 %v9441_v40  ;;  %v9483_v19 = vld [vmem:[%s14111_s3 + $0x950] ss:$8 sps:$4 sm:$0xff]   ;;  %v9488_v40 = vld [vmem:[%s14111_s3 + $0x464] ss:$8 sps:$4 sm:$0xff]  }
 0x298   :  { %3519 = vmatprep.subr.bf16.mxu0 %v9446_v57  ;;  %3765 = vmatprep.subr.bf16.mxu1 %v9449_v41  ;;  %v9491_v57 = vld [vmem:[%s14111_s3 + $0x964] ss:$8 sps:$4 sm:$0xff]   ;;  %v9486_v41 = vld [vmem:[%s14111_s3 + $0x460] ss:$8 sps:$4 sm:$0xff]  }
 0x29b   :  { %3520 = vmatpush1.bf16.msra.mxu0 %v9444_v43  ;;  %3766 = vmatpush1.bf16.msra.mxu1 %v9447_v9  ;;  %v9494_v43 = vld [vmem:[%s14111_s3 + $0x474] ss:$8 sps:$4 sm:$0xff]  }
 0x29c   :  { %3999 = vmatprep.subr.bf16.mxu0 %v9452_v48  ;;  %4245 = vmatprep.subr.bf16.mxu1 %v9455_v28  ;;  %v9497_v9 = vld [vmem:[%s14111_s3 + $0x974] ss:$8 sps:$4 sm:$0xff]   ;;  %v9500_v48 = vld [vmem:[%s14111_s3 + $0x484] ss:$8 sps:$4 sm:$0xff]  }
 0x29d   :  { %v9503_v28 = vld [vmem:[%s14111_s3 + $0x984] ss:$8 sps:$4 sm:$0xff]  }
 0x29e   :  { %3522 = vmatmul.mubr.bf16.vlgmr.msra.gmra.mrb[48].mxu0 %v12003_v52  ;;  %3768 = vmatmul.mubr.bf16.vlgmr.msra.gmra.mrb[48].mxu1 %v12003_v52 }
 0x29f   :  { %3531 = vmatprep.mubr.bf16.mxu0 %v12016_v31  ;;  %3777 = vmatprep.mubr.bf16.mxu1 %v12016_v31 }
 0x2a0   :  { %4000 = vmatpush1.bf16.msra.mxu0 %v9450_v49  ;;  %4246 = vmatpush1.bf16.msra.mxu1 %v9453_v50  ;;  %v9509_v49 = vld [vmem:[%s14111_s3 + $0x994] ss:$8 sps:$4 sm:$0xff]   ;;  %v9504_v50 = vld [vmem:[%s14111_s3 + $0x490] ss:$8 sps:$4 sm:$0xff]  }
 0x2a1   :  { %4001 = vmatprep.subr.bf16.mxu0 %v9458_v4  ;;  %4247 = vmatprep.subr.bf16.mxu1 %v9461_v53  ;;  %v9507_v4 = vld [vmem:[%s14111_s3 + $0x990] ss:$8 sps:$4 sm:$0xff]   ;;  %v9512_v53 = vld [vmem:[%s14111_s3 + $0x4a4] ss:$8 sps:$4 sm:$0xff]  }
 0x2a4   :  { %4002 = vmatpush1.bf16.msra.mxu0 %v9456_v56  ;;  %4248 = vmatpush1.bf16.msra.mxu1 %v9459_v7  ;;  %v9510_v56 = vld [vmem:[%s14111_s3 + $0x4a0] ss:$8 sps:$4 sm:$0xff]  }
 0x2a5   :  { %4003 = vmatprep.subr.bf16.mxu0 %v9464_v14  ;;  %4249 = vmatprep.subr.bf16.mxu1 %v9467_v36  ;;  %v9513_v7 = vld [vmem:[%s14111_s3 + $0x9a0] ss:$8 sps:$4 sm:$0xff]   ;;  %v9521_v14 = vld [vmem:[%s14111_s3 + $0x9b4] ss:$8 sps:$4 sm:$0xff]   ;;  %v9516_v36 = vld [vmem:[%s14111_s3 + $0x4b0] ss:$8 sps:$4 sm:$0xff]  }
 0x2a6   :  { %3532 = vmatmul.mubr.bf16.gmra.mrb[52].mxu0 %v12039_v61  ;;  %3778 = vmatmul.mubr.bf16.gmra.mrb[52].mxu1 %v12039_v61 }
 0x2a7   :  { %4031 = vmatprep.mubr.bf16.mxu0 %v12049_v0  ;;  %4277 = vmatprep.mubr.bf16.mxu1 %v12049_v0 }
 0x2a8   :  { %4004 = vmatpush1.bf16.msra.mxu0 %v9462_v8  ;;  %4250 = vmatpush1.bf16.msra.mxu1 %v9465_v60  ;;  %v9519_v8 = vld [vmem:[%s14111_s3 + $0x9b0] ss:$8 sps:$4 sm:$0xff]   ;;  %v9524_v60 = vld [vmem:[%s14111_s3 + $0x4c4] ss:$8 sps:$4 sm:$0xff]  }
 0x2a9   :  { %4005 = vmatprep.subr.bf16.mxu0 %v9470_v24  ;;  %4251 = vmatprep.subr.bf16.mxu1 %v9473_v21  ;;  %v9527_v24 = vld [vmem:[%s14111_s3 + $0x9c4] ss:$8 sps:$4 sm:$0xff]   ;;  %v9522_v21 = vld [vmem:[%s14111_s3 + $0x4c0] ss:$8 sps:$4 sm:$0xff]  }
 0x2ac   :  { %4006 = vmatpush1.bf16.msra.mxu0 %v9468_v13  ;;  %4252 = vmatpush1.bf16.msra.mxu1 %v9471_v63  ;;  %v9525_v13 = vld [vmem:[%s14111_s3 + $0x9c0] ss:$8 sps:$4 sm:$0xff]   ;;  %v9530_v63 = vld [vmem:[%s14111_s3 + $0x4d4] ss:$8 sps:$4 sm:$0xff]  }
 0x2ad   :  { %4007 = vmatprep.subr.bf16.mxu0 %v9476_v1  ;;  %4253 = vmatprep.subr.bf16.mxu1 %v9479_v29  ;;  %v9533_v1 = vld [vmem:[%s14111_s3 + $0x9d4] ss:$8 sps:$4 sm:$0xff]   ;;  %v9528_v29 = vld [vmem:[%s14111_s3 + $0x4d0] ss:$8 sps:$4 sm:$0xff]  }
 0x2b0   :  { %4008 = vmatpush1.bf16.msra.mxu0 %v9474_v44  ;;  %4254 = vmatpush1.bf16.msra.mxu1 %v9477_v2  ;;  %v9531_v44 = vld [vmem:[%s14111_s3 + $0x9d0] ss:$8 sps:$4 sm:$0xff]   ;;  %v9536_v2 = vld [vmem:[%s14111_s3 + $0x4e4] ss:$8 sps:$4 sm:$0xff]  }
 0x2b1   :  { %4009 = vmatprep.subr.bf16.mxu0 %v9482_v59  ;;  %4255 = vmatprep.subr.bf16.mxu1 %v9485_v27  ;;  %v9539_v59 = vld [vmem:[%s14111_s3 + $0x9e4] ss:$8 sps:$4 sm:$0xff]   ;;  %v9534_v27 = vld [vmem:[%s14111_s3 + $0x4e0] ss:$8 sps:$4 sm:$0xff]  }
 0x2b4   :  { %4010 = vmatpush1.bf16.msra.mxu0 %v9480_v33  ;;  %4256 = vmatpush1.bf16.msra.mxu1 %v9483_v19  ;;  %v9537_v33 = vld [vmem:[%s14111_s3 + $0x9e0] ss:$8 sps:$4 sm:$0xff]   ;;  %v9542_v19 = vld [vmem:[%s14111_s3 + $0x4f4] ss:$8 sps:$4 sm:$0xff]  }
 0x2b5   :  { %4011 = vmatprep.subr.bf16.mxu0 %v9488_v40  ;;  %4257 = vmatprep.subr.bf16.mxu1 %v9491_v57  ;;  %v9545_v40 = vld [vmem:[%s14111_s3 + $0x9f4] ss:$8 sps:$4 sm:$0xff]   ;;  %v9540_v57 = vld [vmem:[%s14111_s3 + $0x4f0] ss:$8 sps:$4 sm:$0xff]  }
 0x2b8   :  { %4012 = vmatpush1.bf16.msra.mxu0 %v9486_v41  ;;  %4258 = vmatpush1.bf16.msra.mxu1 %v9489_v42  ;;  %v9543_v41 = vld [vmem:[%s14111_s3 + $0x9f0] ss:$8 sps:$4 sm:$0xff]   ;;  %v9967_v42 = vld [vmem:[%s14111_s3 + $0x104] ss:$8 sps:$4 sm:$0xff]  }
 0x2b9   :  { %4013 = vmatprep.subr.bf16.mxu0 %v9494_v43  ;;  %4259 = vmatprep.subr.bf16.mxu1 %v9497_v9  ;;  %v9968_v43 = vld [vmem:[%s14111_s3 + $0x604] ss:$8 sps:$4 sm:$0xff]  }
 0x2ba   :  { %v12211_v9 = vld [vmem:[#allocation2 + $0x28] sm:$0xff] }
 0x2bc   :  { %4014 = vmatpush1.bf16.msra.mxu0 %v9492_v45  ;;  %4260 = vmatpush1.bf16.msra.mxu1 %v9495_v46  ;;  %v9969_v45 = vld [vmem:[%s14111_s3 + $0x100] ss:$8 sps:$4 sm:$0xff]  }
 0x2bd   :  { %4015 = vmatprep.subr.bf16.mxu0 %v9500_v48  ;;  %4261 = vmatprep.subr.bf16.mxu1 %v9503_v28  ;;  %v9970_v46 = vld [vmem:[%s14111_s3 + $0x600] ss:$8 sps:$4 sm:$0xff]   ;;  %v9972_v48 = vld [vmem:[%s14111_s3 + $0x614] ss:$8 sps:$4 sm:$0xff]   ;;  %v9973_v28 = vld [vmem:[%s14111_s3 + $0x110] ss:$8 sps:$4 sm:$0xff]  }
 0x2c0   :  { %4016 = vmatpush1.bf16.msra.mxu0 %v9498_v12  ;;  %4262 = vmatpush1.bf16.msra.mxu1 %v9501_v15  ;;  %v9974_v12 = vld [vmem:[%s14111_s3 + $0x610] ss:$8 sps:$4 sm:$0xff]   ;;  %v12233_v15 = vld [vmem:[#allocation2 + $0x20] sm:$0xff] }
 0x2c1   :  { %4017 = vmatprep.subr.bf16.mxu0 %v9506_v58  ;;  %4263 = vmatprep.subr.bf16.mxu1 %v9509_v49  ;;  %v9975_v58 = vld [vmem:[%s14111_s3 + $0x124] ss:$8 sps:$4 sm:$0xff]  }
 0x2c2   :  { %v9976_v49 = vld [vmem:[%s14111_s3 + $0x624] ss:$8 sps:$4 sm:$0xff]  }
 0x2c4   :  { %4018 = vmatpush1.bf16.msra.mxu0 %v9504_v50  ;;  %4264 = vmatpush1.bf16.msra.mxu1 %v9507_v4  ;;  %v9977_v50 = vld [vmem:[%s14111_s3 + $0x120] ss:$8 sps:$4 sm:$0xff]  }
 0x2c5   :  { %4019 = vmatprep.subr.bf16.mxu0 %v9512_v53  ;;  %4265 = vmatprep.subr.bf16.mxu1 %v9515_v55  ;;  %v9978_v4 = vld [vmem:[%s14111_s3 + $0x620] ss:$8 sps:$4 sm:$0xff]   ;;  %v9979_v53 = vld [vmem:[%s14111_s3 + $0x134] ss:$8 sps:$4 sm:$0xff]  }
 0x2c6   :  { %v9980_v55 = vld [vmem:[%s14111_s3 + $0x634] ss:$8 sps:$4 sm:$0xff]  }
 0x2c8   :  { %4020 = vmatpush1.bf16.msra.mxu0 %v9510_v56  ;;  %4266 = vmatpush1.bf16.msra.mxu1 %v9513_v7  ;;  %v9982_v56 = vld [vmem:[%s14111_s3 + $0x630] ss:$8 sps:$4 sm:$0xff]   ;;  %v9983_v7 = vld [vmem:[%s14111_s3 + $0x144] ss:$8 sps:$4 sm:$0xff]  }
 0x2c9   :  { %4021 = vmatprep.subr.bf16.mxu0 %v9518_v10  ;;  %4267 = vmatprep.subr.bf16.mxu1 %v9521_v14  ;;  %v9984_v10 = vld [vmem:[%s14111_s3 + $0x644] ss:$8 sps:$4 sm:$0xff]   ;;  %v9985_v14 = vld [vmem:[%s14111_s3 + $0x140] ss:$8 sps:$4 sm:$0xff]  }
 0x2cc   :  { %4022 = vmatpush1.bf16.msra.mxu0 %v9516_v36  ;;  %4268 = vmatpush1.bf16.msra.mxu1 %v9519_v8  ;;  %v9986_v36 = vld [vmem:[%s14111_s3 + $0x640] ss:$8 sps:$4 sm:$0xff]   ;;  %v9987_v8 = vld [vmem:[%s14111_s3 + $0x154] ss:$8 sps:$4 sm:$0xff]  }
 0x2cd   :  { %4023 = vmatprep.subr.bf16.mxu0 %v9524_v60  ;;  %4269 = vmatprep.subr.bf16.mxu1 %v9527_v24  ;;  %v9988_v60 = vld [vmem:[%s14111_s3 + $0x654] ss:$8 sps:$4 sm:$0xff]   ;;  %v9989_v24 = vld [vmem:[%s14111_s3 + $0x150] ss:$8 sps:$4 sm:$0xff]  }
 0x2d0   :  { %4024 = vmatpush1.bf16.msra.mxu0 %v9522_v21  ;;  %4270 = vmatpush1.bf16.msra.mxu1 %v9525_v13  ;;  %v9990_v21 = vld [vmem:[%s14111_s3 + $0x650] ss:$8 sps:$4 sm:$0xff]   ;;  %v9991_v13 = vld [vmem:[%s14111_s3 + $0x164] ss:$8 sps:$4 sm:$0xff]  }
 0x2d1   :  { %4025 = vmatprep.subr.bf16.mxu0 %v9530_v63  ;;  %4271 = vmatprep.subr.bf16.mxu1 %v9533_v1  ;;  %v9992_v63 = vld [vmem:[%s14111_s3 + $0x664] ss:$8 sps:$4 sm:$0xff]   ;;  %v9993_v1 = vld [vmem:[%s14111_s3 + $0x160] ss:$8 sps:$4 sm:$0xff]  }
 0x2d4   :  { %4026 = vmatpush1.bf16.msra.mxu0 %v9528_v29  ;;  %4272 = vmatpush1.bf16.msra.mxu1 %v9531_v44  ;;  %v9994_v29 = vld [vmem:[%s14111_s3 + $0x660] ss:$8 sps:$4 sm:$0xff]   ;;  %v9995_v44 = vld [vmem:[%s14111_s3 + $0x174] ss:$8 sps:$4 sm:$0xff]  }
 0x2d5   :  { %4027 = vmatprep.subr.bf16.mxu0 %v9536_v2  ;;  %4273 = vmatprep.subr.bf16.mxu1 %v9539_v59  ;;  %v9996_v2 = vld [vmem:[%s14111_s3 + $0x674] ss:$8 sps:$4 sm:$0xff]   ;;  %v9997_v59 = vld [vmem:[%s14111_s3 + $0x170] ss:$8 sps:$4 sm:$0xff]  }
 0x2d8   :  { %4028 = vmatpush1.bf16.msra.mxu0 %v9534_v27  ;;  %4274 = vmatpush1.bf16.msra.mxu1 %v9537_v33  ;;  %v9998_v27 = vld [vmem:[%s14111_s3 + $0x670] ss:$8 sps:$4 sm:$0xff]   ;;  %v9999_v33 = vld [vmem:[%s14111_s3 + $0x184] ss:$8 sps:$4 sm:$0xff]  }
 0x2d9   :  { %4029 = vmatprep.subr.bf16.mxu0 %v9542_v19  ;;  %4275 = vmatprep.subr.bf16.mxu1 %v9545_v40  ;;  %v10000_v19 = vld [vmem:[%s14111_s3 + $0x684] ss:$8 sps:$4 sm:$0xff]   ;;  %v10001_v40 = vld [vmem:[%s14111_s3 + $0x180] ss:$8 sps:$4 sm:$0xff]  }
 0x2dc   :  { %4030 = vmatpush1.bf16.msra.mxu0 %v9540_v57  ;;  %4276 = vmatpush1.bf16.msra.mxu1 %v9543_v41  ;;  %v10002_v57 = vld [vmem:[%s14111_s3 + $0x680] ss:$8 sps:$4 sm:$0xff]   ;;  %v10003_v41 = vld [vmem:[%s14111_s3 + $0x194] ss:$8 sps:$4 sm:$0xff]  }
 0x2dd   :  { %4365 = vmatprep.subr.bf16.mxu0 %v9967_v42  ;;  %4418 = vmatprep.subr.bf16.mxu1 %v9968_v43  ;;  %v10004_v42 = vld [vmem:[%s14111_s3 + $0x694] ss:$8 sps:$4 sm:$0xff]   ;;  %v10005_v43 = vld [vmem:[%s14111_s3 + $0x190] ss:$8 sps:$4 sm:$0xff]  }
 0x2df   :  { %4032 = vmatmul.mubr.bf16.vlgmr.msra.gmra.mrb[48].mxu0 %v11720_v20  ;;  %4278 = vmatmul.mubr.bf16.vlgmr.msra.gmra.mrb[48].mxu1 %v11720_v20  ;;  %v9971_v20 = vld [vmem:[%s14111_s3 + $0x114] ss:$8 sps:$4 sm:$0xff]  }
 0x2e0   :  { %4041 = vmatprep.mubr.bf16.mxu0 %v12211_v9  ;;  %4287 = vmatprep.mubr.bf16.mxu1 %v12211_v9 }
 0x2e1   :  { %4366 = vmatpush1.bf16.msra.mxu0 %v9969_v45  ;;  %4419 = vmatpush1.bf16.msra.mxu1 %v9970_v46  ;;  %v10006_v45 = vld [vmem:[%s14111_s3 + $0x690] ss:$8 sps:$4 sm:$0xff]   ;;  %v10007_v46 = vld [vmem:[%s14111_s3 + $0x1a4] ss:$8 sps:$4 sm:$0xff]  }
 0x2e2   :  { %4367 = vmatprep.subr.bf16.mxu0 %v9971_v20  ;;  %4420 = vmatprep.subr.bf16.mxu1 %v9972_v48  ;;  %v10008_v20 = vld [vmem:[%s14111_s3 + $0x6a4] ss:$8 sps:$4 sm:$0xff]   ;;  %v10009_v48 = vld [vmem:[%s14111_s3 + $0x1a0] ss:$8 sps:$4 sm:$0xff]  }
 0x2e5   :  { %4368 = vmatpush1.bf16.msra.mxu0 %v9973_v28  ;;  %4421 = vmatpush1.bf16.msra.mxu1 %v9974_v12  ;;  %v10010_v28 = vld [vmem:[%s14111_s3 + $0x6a0] ss:$8 sps:$4 sm:$0xff]   ;;  %v10011_v12 = vld [vmem:[%s14111_s3 + $0x1b4] ss:$8 sps:$4 sm:$0xff]  }
 0x2e6   :  { %4369 = vmatprep.subr.bf16.mxu0 %v9975_v58  ;;  %4422 = vmatprep.subr.bf16.mxu1 %v9976_v49  ;;  %v10012_v58 = vld [vmem:[%s14111_s3 + $0x6b4] ss:$8 sps:$4 sm:$0xff]   ;;  %v10013_v49 = vld [vmem:[%s14111_s3 + $0x1b0] ss:$8 sps:$4 sm:$0xff]  }
 0x2e7   :  { %4042 = vmatmul.mubr.bf16.gmra.mrb[52].mxu0 %v12233_v15  ;;  %4288 = vmatmul.mubr.bf16.gmra.mrb[52].mxu1 %v12233_v15 }
 0x2e8   :  { %4397 = vmatprep.mubr.bf16.mxu0 %v11572_v39  ;;  %4450 = vmatprep.mubr.bf16.mxu1 %v11572_v39  ;;  %v9981_v39 = vld [vmem:[%s14111_s3 + $0x130] ss:$8 sps:$4 sm:$0xff]  }
 0x2e9   :  { %4370 = vmatpush1.bf16.msra.mxu0 %v9977_v50  ;;  %4423 = vmatpush1.bf16.msra.mxu1 %v9978_v4  ;;  %v10014_v50 = vld [vmem:[%s14111_s3 + $0x6b0] ss:$8 sps:$4 sm:$0xff]   ;;  %v10015_v4 = vld [vmem:[%s14111_s3 + $0x1c4] ss:$8 sps:$4 sm:$0xff]  }
 0x2ea   :  { %4371 = vmatprep.subr.bf16.mxu0 %v9979_v53  ;;  %4424 = vmatprep.subr.bf16.mxu1 %v9980_v55  ;;  %v10016_v53 = vld [vmem:[%s14111_s3 + $0x6c4] ss:$8 sps:$4 sm:$0xff]   ;;  %v10017_v55 = vld [vmem:[%s14111_s3 + $0x1c0] ss:$8 sps:$4 sm:$0xff]  }
 0x2ed   :  { %4372 = vmatpush1.bf16.msra.mxu0 %v9981_v39  ;;  %4425 = vmatpush1.bf16.msra.mxu1 %v9982_v56  ;;  %v10018_v39 = vld [vmem:[%s14111_s3 + $0x6c0] ss:$8 sps:$4 sm:$0xff]   ;;  %v10019_v56 = vld [vmem:[%s14111_s3 + $0x1d4] ss:$8 sps:$4 sm:$0xff]  }
 0x2ee   :  { %4373 = vmatprep.subr.bf16.mxu0 %v9983_v7  ;;  %4426 = vmatprep.subr.bf16.mxu1 %v9984_v10  ;;  %v10020_v7 = vld [vmem:[%s14111_s3 + $0x6d4] ss:$8 sps:$4 sm:$0xff]   ;;  %v10021_v10 = vld [vmem:[%s14111_s3 + $0x1d0] ss:$8 sps:$4 sm:$0xff]  }
 0x2f1   :  { %4374 = vmatpush1.bf16.msra.mxu0 %v9985_v14  ;;  %4427 = vmatpush1.bf16.msra.mxu1 %v9986_v36  ;;  %v10022_v14 = vld [vmem:[%s14111_s3 + $0x6d0] ss:$8 sps:$4 sm:$0xff]   ;;  %v10023_v36 = vld [vmem:[%s14111_s3 + $0x1e4] ss:$8 sps:$4 sm:$0xff]  }
 0x2f2   :  { %4375 = vmatprep.subr.bf16.mxu0 %v9987_v8  ;;  %4428 = vmatprep.subr.bf16.mxu1 %v9988_v60  ;;  %v10024_v8 = vld [vmem:[%s14111_s3 + $0x6e4] ss:$8 sps:$4 sm:$0xff]   ;;  %v10025_v60 = vld [vmem:[%s14111_s3 + $0x1e0] ss:$8 sps:$4 sm:$0xff]  }
 0x2f5   :  { %4376 = vmatpush1.bf16.msra.mxu0 %v9989_v24  ;;  %4429 = vmatpush1.bf16.msra.mxu1 %v9990_v21  ;;  %v10026_v24 = vld [vmem:[%s14111_s3 + $0x6e0] ss:$8 sps:$4 sm:$0xff]   ;;  %v10027_v21 = vld [vmem:[%s14111_s3 + $0x1f4] ss:$8 sps:$4 sm:$0xff]  }
 0x2f6   :  { %4377 = vmatprep.subr.bf16.mxu0 %v9991_v13  ;;  %4430 = vmatprep.subr.bf16.mxu1 %v9992_v63  ;;  %v10028_v13 = vld [vmem:[%s14111_s3 + $0x6f4] ss:$8 sps:$4 sm:$0xff]   ;;  %v10029_v63 = vld [vmem:[%s14111_s3 + $0x1f0] ss:$8 sps:$4 sm:$0xff]  }
 0x2f9   :  { %4378 = vmatpush1.bf16.msra.mxu0 %v9993_v1  ;;  %4431 = vmatpush1.bf16.msra.mxu1 %v9994_v29  ;;  %v10030_v1 = vld [vmem:[%s14111_s3 + $0x6f0] ss:$8 sps:$4 sm:$0xff]   ;;  %v10031_v29 = vld [vmem:[%s14111_s3 + $0x4] ss:$8 sps:$4 sm:$0xff]  }
 0x2fa   :  { %4379 = vmatprep.subr.bf16.mxu0 %v9995_v44  ;;  %4432 = vmatprep.subr.bf16.mxu1 %v9996_v2  ;;  %v10032_v44 = vld [vmem:[%s14111_s3 + $0x504] ss:$8 sps:$4 sm:$0xff]   ;;  %v10033_v2 = vld [vmem:[%s14111_s3] ss:$8 sps:$4 sm:$0xff]  }
 0x2fd   :  { %4380 = vmatpush1.bf16.msra.mxu0 %v9997_v59  ;;  %4433 = vmatpush1.bf16.msra.mxu1 %v9998_v27  ;;  %v10034_v59 = vld [vmem:[%s14111_s3 + $0x500] ss:$8 sps:$4 sm:$0xff]   ;;  %v10035_v27 = vld [vmem:[%s14111_s3 + $0x14] ss:$8 sps:$4 sm:$0xff]  }
 0x2fe   :  { %4381 = vmatprep.subr.bf16.mxu0 %v9999_v33  ;;  %4434 = vmatprep.subr.bf16.mxu1 %v10000_v19  ;;  %v10038_v33 = vld [vmem:[%s14111_s3 + $0x510] ss:$8 sps:$4 sm:$0xff]   ;;  %v10039_v19 = vld [vmem:[%s14111_s3 + $0x24] ss:$8 sps:$4 sm:$0xff]  }
 0x301   :  { %4382 = vmatpush1.bf16.msra.mxu0 %v10001_v40  ;;  %4435 = vmatpush1.bf16.msra.mxu1 %v10002_v57  ;;  %v10040_v40 = vld [vmem:[%s14111_s3 + $0x524] ss:$8 sps:$4 sm:$0xff]   ;;  %v10041_v57 = vld [vmem:[#allocation2 + $0x38] sm:$0xff] }
 0x302   :  { %4383 = vmatprep.subr.bf16.mxu0 %v10003_v41  ;;  %4436 = vmatprep.subr.bf16.mxu1 %v10004_v42  ;;  %v10042_v41 = vld [vmem:[%s14111_s3 + $0x20] ss:$8 sps:$4 sm:$0xff]  }
 0x303   :  { %v10043_v42 = vld [vmem:[%s14111_s3 + $0x520] ss:$8 sps:$4 sm:$0xff]  }
 0x305   :  { %4384 = vmatpush1.bf16.msra.mxu0 %v10005_v43  ;;  %4437 = vmatpush1.bf16.msra.mxu1 %v10006_v45  ;;  %v10044_v43 = vld [vmem:[%s14111_s3 + $0x34] ss:$8 sps:$4 sm:$0xff]   ;;  %v10046_v45 = vld [vmem:[%s14111_s3 + $0x30] ss:$8 sps:$4 sm:$0xff]  }
 0x306   :  { %4385 = vmatprep.subr.bf16.mxu0 %v10007_v46  ;;  %4438 = vmatprep.subr.bf16.mxu1 %v10008_v20  ;;  %v10047_v46 = vld [vmem:[%s14111_s3 + $0x530] ss:$8 sps:$4 sm:$0xff]   ;;  %v10048_v20 = vld [vmem:[%s14111_s3 + $0x44] ss:$8 sps:$4 sm:$0xff]  }
 0x309   :  { %4386 = vmatpush1.bf16.msra.mxu0 %v10009_v48  ;;  %4439 = vmatpush1.bf16.msra.mxu1 %v10010_v28  ;;  %v10049_v48 = vld [vmem:[%s14111_s3 + $0x544] ss:$8 sps:$4 sm:$0xff]   ;;  %v10050_v28 = vld [vmem:[%s14111_s3 + $0x40] ss:$8 sps:$4 sm:$0xff]  }
 0x30a   :  { %4387 = vmatprep.subr.bf16.mxu0 %v10011_v12  ;;  %4440 = vmatprep.subr.bf16.mxu1 %v10012_v58  ;;  %v10051_v12 = vld [vmem:[%s14111_s3 + $0x540] ss:$8 sps:$4 sm:$0xff]   ;;  %v10052_v58 = vld [vmem:[%s14111_s3 + $0x54] ss:$8 sps:$4 sm:$0xff]  }
 0x30d   :  { %4388 = vmatpush1.bf16.msra.mxu0 %v10013_v49  ;;  %4441 = vmatpush1.bf16.msra.mxu1 %v10014_v50  ;;  %v10053_v49 = vld [vmem:[%s14111_s3 + $0x554] ss:$8 sps:$4 sm:$0xff]   ;;  %v10054_v50 = vld [vmem:[%s14111_s3 + $0x50] ss:$8 sps:$4 sm:$0xff]  }
 0x30e   :  { %4389 = vmatprep.subr.bf16.mxu0 %v10015_v4  ;;  %4442 = vmatprep.subr.bf16.mxu1 %v10016_v53  ;;  %v10055_v4 = vld [vmem:[%s14111_s3 + $0x550] ss:$8 sps:$4 sm:$0xff]   ;;  %v10056_v53 = vld [vmem:[%s14111_s3 + $0x64] ss:$8 sps:$4 sm:$0xff]  }
 0x311   :  { %4390 = vmatpush1.bf16.msra.mxu0 %v10017_v55  ;;  %4443 = vmatpush1.bf16.msra.mxu1 %v10018_v39  ;;  %v10057_v55 = vld [vmem:[%s14111_s3 + $0x564] ss:$8 sps:$4 sm:$0xff]   ;;  %v10058_v39 = vld [vmem:[%s14111_s3 + $0x60] ss:$8 sps:$4 sm:$0xff]  }
 0x312   :  { %4391 = vmatprep.subr.bf16.mxu0 %v10019_v56  ;;  %4444 = vmatprep.subr.bf16.mxu1 %v10020_v7  ;;  %v10059_v56 = vld [vmem:[%s14111_s3 + $0x560] ss:$8 sps:$4 sm:$0xff]   ;;  %v10060_v7 = vld [vmem:[%s14111_s3 + $0x74] ss:$8 sps:$4 sm:$0xff]  }
 0x315   :  { %4392 = vmatpush1.bf16.msra.mxu0 %v10021_v10  ;;  %4445 = vmatpush1.bf16.msra.mxu1 %v10022_v14  ;;  %v10061_v10 = vld [vmem:[%s14111_s3 + $0x574] ss:$8 sps:$4 sm:$0xff]   ;;  %v10062_v14 = vld [vmem:[%s14111_s3 + $0x70] ss:$8 sps:$4 sm:$0xff]  }
 0x316   :  { %4393 = vmatprep.subr.bf16.mxu0 %v10023_v36  ;;  %4446 = vmatprep.subr.bf16.mxu1 %v10024_v8  ;;  %v10063_v36 = vld [vmem:[%s14111_s3 + $0x570] ss:$8 sps:$4 sm:$0xff]   ;;  %v10064_v8 = vld [vmem:[%s14111_s3 + $0x84] ss:$8 sps:$4 sm:$0xff]  }
 0x319   :  { %4394 = vmatpush1.bf16.msra.mxu0 %v10025_v60  ;;  %4447 = vmatpush1.bf16.msra.mxu1 %v10026_v24  ;;  %v10065_v60 = vld [vmem:[%s14111_s3 + $0x584] ss:$8 sps:$4 sm:$0xff]   ;;  %v10066_v24 = vld [vmem:[%s14111_s3 + $0x80] ss:$8 sps:$4 sm:$0xff]  }
 0x31a   :  { %4395 = vmatprep.subr.bf16.mxu0 %v10027_v21  ;;  %4448 = vmatprep.subr.bf16.mxu1 %v10028_v13  ;;  %v10067_v21 = vld [vmem:[%s14111_s3 + $0x580] ss:$8 sps:$4 sm:$0xff]   ;;  %v10068_v13 = vld [vmem:[%s14111_s3 + $0x94] ss:$8 sps:$4 sm:$0xff]  }
 0x31d   :  { %4396 = vmatpush1.bf16.msra.mxu0 %v10029_v63  ;;  %4449 = vmatpush1.bf16.msra.mxu1 %v10030_v1  ;;  %v10069_v63 = vld [vmem:[%s14111_s3 + $0x594] ss:$8 sps:$4 sm:$0xff]   ;;  %v10070_v1 = vld [vmem:[%s14111_s3 + $0x90] ss:$8 sps:$4 sm:$0xff]  }
 0x31e   :  { %4471 = vmatprep.subr.bf16.mxu0 %v10031_v29  ;;  %4524 = vmatprep.subr.bf16.mxu1 %v10032_v44  ;;  %v10071_v29 = vld [vmem:[%s14111_s3 + $0x590] ss:$8 sps:$4 sm:$0xff]   ;;  %v10072_v44 = vld [vmem:[%s14111_s3 + $0xa4] ss:$8 sps:$4 sm:$0xff]  }
 0x320   :  { %4398 = vmatmul.mubr.bf16.vlgmr.msra.gmra.mrb[56].mxu0 %v11742_v5  ;;  %4451 = vmatmul.mubr.bf16.vlgmr.msra.gmra.mrb[56].mxu1 %v11742_v5  ;;  %v10036_v5 = vld [vmem:[%s14111_s3 + $0x514] ss:$8 sps:$4 sm:$0xff]  }
 0x321   :  { %4407 = vmatprep.mubr.bf16.mxu0 %v11755_v6  ;;  %4460 = vmatprep.mubr.bf16.mxu1 %v11755_v6  ;;  %v10037_v6 = vld [vmem:[%s14111_s3 + $0x10] ss:$8 sps:$4 sm:$0xff]  }
 0x322   :  { %4472 = vmatpush1.bf16.msra.mxu0 %v10033_v2  ;;  %4525 = vmatpush1.bf16.msra.mxu1 %v10034_v59  ;;  %v10073_v2 = vld [vmem:[%s14111_s3 + $0x5a4] ss:$8 sps:$4 sm:$0xff]   ;;  %v10074_v59 = vld [vmem:[%s14111_s3 + $0xa0] ss:$8 sps:$4 sm:$0xff]  }
 0x323   :  { %4473 = vmatprep.subr.bf16.mxu0 %v10035_v27  ;;  %4526 = vmatprep.subr.bf16.mxu1 %v10036_v5  ;;  %v10075_v27 = vld [vmem:[%s14111_s3 + $0x5a0] ss:$8 sps:$4 sm:$0xff]   ;;  %v10076_v5 = vld [vmem:[%s14111_s3 + $0xb4] ss:$8 sps:$4 sm:$0xff]  }
 0x326   :  { %4474 = vmatpush1.bf16.msra.mxu0 %v10037_v6  ;;  %4527 = vmatpush1.bf16.msra.mxu1 %v10038_v33  ;;  %v10077_v6 = vld [vmem:[%s14111_s3 + $0x5b4] ss:$8 sps:$4 sm:$0xff]   ;;  %v10078_v33 = vld [vmem:[%s14111_s3 + $0xb0] ss:$8 sps:$4 sm:$0xff]  }
 0x327   :  { %4475 = vmatprep.subr.bf16.mxu0 %v10039_v19  ;;  %4528 = vmatprep.subr.bf16.mxu1 %v10040_v40  ;;  %v10079_v19 = vld [vmem:[%s14111_s3 + $0x5b0] ss:$8 sps:$4 sm:$0xff]   ;;  %v10080_v40 = vld [vmem:[%s14111_s3 + $0xc4] ss:$8 sps:$4 sm:$0xff]  }
 0x328   :  { %4408 = vmatmul.mubr.bf16.gmra.mrb[60].mxu0 %v11795_v35  ;;  %4461 = vmatmul.mubr.bf16.gmra.mrb[60].mxu1 %v11795_v35  ;;  %v10045_v35 = vld [vmem:[%s14111_s3 + $0x534] ss:$8 sps:$4 sm:$0xff]  }
 0x329   :  { %4503 = vmatprep.mubr.bf16.mxu0 %v10041_v57  ;;  %4556 = vmatprep.mubr.bf16.mxu1 %v10041_v57  ;;  %v10081_v57 = vld [vmem:[%s14111_s3 + $0x5c4] ss:$8 sps:$4 sm:$0xff]  }
 0x32a   :  { %4476 = vmatpush1.bf16.msra.mxu0 %v10042_v41  ;;  %4529 = vmatpush1.bf16.msra.mxu1 %v10043_v42  ;;  %v10082_v41 = vld [vmem:[%s14111_s3 + $0xc0] ss:$8 sps:$4 sm:$0xff]  }
 0x32b   :  { %4477 = vmatprep.subr.bf16.mxu0 %v10044_v43  ;;  %4530 = vmatprep.subr.bf16.mxu1 %v10045_v35  ;;  %v10083_v42 = vld [vmem:[%s14111_s3 + $0x5c0] ss:$8 sps:$4 sm:$0xff]   ;;  %v10084_v43 = vld [vmem:[%s14111_s3 + $0xd4] ss:$8 sps:$4 sm:$0xff]  }
 0x32c   :  { %v10085_v35 = vld [vmem:[%s14111_s3 + $0x5d4] ss:$8 sps:$4 sm:$0xff]  }
 0x32e   :  { %4478 = vmatpush1.bf16.msra.mxu0 %v10046_v45  ;;  %4531 = vmatpush1.bf16.msra.mxu1 %v10047_v46  ;;  %v10086_v45 = vld [vmem:[%s14111_s3 + $0xd0] ss:$8 sps:$4 sm:$0xff]  }
 0x32f   :  { %4479 = vmatprep.subr.bf16.mxu0 %v10048_v20  ;;  %4532 = vmatprep.subr.bf16.mxu1 %v10049_v48  ;;  %v10087_v46 = vld [vmem:[%s14111_s3 + $0x5d0] ss:$8 sps:$4 sm:$0xff]   ;;  %v10088_v20 = vld [vmem:[%s14111_s3 + $0xe4] ss:$8 sps:$4 sm:$0xff]  }
 0x330   :  { %v10089_v48 = vld [vmem:[%s14111_s3 + $0x5e4] ss:$8 sps:$4 sm:$0xff]  }
 0x332   :  { %4480 = vmatpush1.bf16.msra.mxu0 %v10050_v28  ;;  %4533 = vmatpush1.bf16.msra.mxu1 %v10051_v12  ;;  %v10090_v28 = vld [vmem:[%s14111_s3 + $0xe0] ss:$8 sps:$4 sm:$0xff]  }
 0x333   :  { %4481 = vmatprep.subr.bf16.mxu0 %v10052_v58  ;;  %4534 = vmatprep.subr.bf16.mxu1 %v10053_v49  ;;  %v10091_v12 = vld [vmem:[%s14111_s3 + $0x5e0] ss:$8 sps:$4 sm:$0xff]   ;;  %v10092_v58 = vld [vmem:[%s14111_s3 + $0xf4] ss:$8 sps:$4 sm:$0xff]  }
 0x334   :  { %v10093_v49 = vld [vmem:[%s14111_s3 + $0x5f4] ss:$8 sps:$4 sm:$0xff]  }
 0x336   :  { %4482 = vmatpush1.bf16.msra.mxu0 %v10054_v50  ;;  %4535 = vmatpush1.bf16.msra.mxu1 %v10055_v4  ;;  %v10094_v50 = vld [vmem:[%s14111_s3 + $0xf0] ss:$8 sps:$4 sm:$0xff]  }
 0x337   :  { %4483 = vmatprep.subr.bf16.mxu0 %v10056_v53  ;;  %4536 = vmatprep.subr.bf16.mxu1 %v10057_v55  ;;  %v10095_v4 = vld [vmem:[%s14111_s3 + $0x5f0] ss:$8 sps:$4 sm:$0xff]   ;;  %v10096_v53 = vld [vmem:[%s14111_s3 + $0x204] ss:$8 sps:$4 sm:$0xff]  }
 0x338   :  { %v10097_v55 = vld [vmem:[%s14111_s3 + $0x704] ss:$8 sps:$4 sm:$0xff]  }
 0x33a   :  { %4484 = vmatpush1.bf16.msra.mxu0 %v10058_v39  ;;  %4537 = vmatpush1.bf16.msra.mxu1 %v10059_v56  ;;  %v10098_v39 = vld [vmem:[#allocation2 + $0x30] sm:$0xff]  ;;  %v10099_v56 = vld [vmem:[#allocation2 + $0x48] sm:$0xff] }
 0x33b   :  { %4485 = vmatprep.subr.bf16.mxu0 %v10060_v7  ;;  %4538 = vmatprep.subr.bf16.mxu1 %v10061_v10  ;;  %v10100_v7 = vld [vmem:[%s14111_s3 + $0x200] ss:$8 sps:$4 sm:$0xff]  }
 0x33c   :  { %v10101_v10 = vld [vmem:[%s14111_s3 + $0x700] ss:$8 sps:$4 sm:$0xff]  }
 0x33e   :  { %4486 = vmatpush1.bf16.msra.mxu0 %v10062_v14  ;;  %4539 = vmatpush1.bf16.msra.mxu1 %v10063_v36  ;;  %v10102_v14 = vld [vmem:[%s14111_s3 + $0x214] ss:$8 sps:$4 sm:$0xff]  }
 0x33f   :  { %4487 = vmatprep.subr.bf16.mxu0 %v10064_v8  ;;  %4540 = vmatprep.subr.bf16.mxu1 %v10065_v60  ;;  %v10103_v36 = vld [vmem:[%s14111_s3 + $0x714] ss:$8 sps:$4 sm:$0xff]   ;;  %v10104_v8 = vld [vmem:[%s14111_s3 + $0x210] ss:$8 sps:$4 sm:$0xff]  }
 0x340   :  { %v10105_v60 = vld [vmem:[%s14111_s3 + $0x710] ss:$8 sps:$4 sm:$0xff]  }
 0x342   :  { %4488 = vmatpush1.bf16.msra.mxu0 %v10066_v24  ;;  %4541 = vmatpush1.bf16.msra.mxu1 %v10067_v21  ;;  %v10106_v24 = vld [vmem:[%s14111_s3 + $0x224] ss:$8 sps:$4 sm:$0xff]  }
 0x343   :  { %4489 = vmatprep.subr.bf16.mxu0 %v10068_v13  ;;  %4542 = vmatprep.subr.bf16.mxu1 %v10069_v63  ;;  %v10107_v21 = vld [vmem:[%s14111_s3 + $0x724] ss:$8 sps:$4 sm:$0xff]   ;;  %v10109_v63 = vld [vmem:[%s14111_s3 + $0x220] ss:$8 sps:$4 sm:$0xff]  }
 0x344   :  { %v10108_v13 = vld [vmem:[#allocation2 + $0x40] sm:$0xff] }
 0x346   :  { %4490 = vmatpush1.bf16.msra.mxu0 %v10070_v1  ;;  %4543 = vmatpush1.bf16.msra.mxu1 %v10071_v29  ;;  %v10110_v1 = vld [vmem:[%s14111_s3 + $0x720] ss:$8 sps:$4 sm:$0xff]   ;;  %v10111_v29 = vld [vmem:[%s14111_s3 + $0x234] ss:$8 sps:$4 sm:$0xff]  }
 0x347   :  { %4491 = vmatprep.subr.bf16.mxu0 %v10072_v44  ;;  %4544 = vmatprep.subr.bf16.mxu1 %v10073_v2  ;;  %v10112_v44 = vld [vmem:[%s14111_s3 + $0x734] ss:$8 sps:$4 sm:$0xff]   ;;  %v10114_v2 = vld [vmem:[%s14111_s3 + $0x730] ss:$8 sps:$4 sm:$0xff]  }
 0x34a   :  { %4492 = vmatpush1.bf16.msra.mxu0 %v10074_v59  ;;  %4545 = vmatpush1.bf16.msra.mxu1 %v10075_v27  ;;  %v10115_v59 = vld [vmem:[%s14111_s3 + $0x244] ss:$8 sps:$4 sm:$0xff]  }
 0x34b   :  { %4493 = vmatprep.subr.bf16.mxu0 %v10076_v5  ;;  %4546 = vmatprep.subr.bf16.mxu1 %v10077_v6  ;;  %v10116_v27 = vld [vmem:[%s14111_s3 + $0x744] ss:$8 sps:$4 sm:$0xff]   ;;  %v10117_v5 = vld [vmem:[%s14111_s3 + $0x240] ss:$8 sps:$4 sm:$0xff]  }
 0x34c   :  { %v10118_v6 = vld [vmem:[%s14111_s3 + $0x740] ss:$8 sps:$4 sm:$0xff]  }
 0x34e   :  { %4494 = vmatpush1.bf16.msra.mxu0 %v10078_v33  ;;  %4547 = vmatpush1.bf16.msra.mxu1 %v10079_v19  ;;  %v10119_v33 = vld [vmem:[%s14111_s3 + $0x254] ss:$8 sps:$4 sm:$0xff]  }
 0x34f   :  { %4495 = vmatprep.subr.bf16.mxu0 %v10080_v40  ;;  %4548 = vmatprep.subr.bf16.mxu1 %v10081_v57  ;;  %v10120_v19 = vld [vmem:[%s14111_s3 + $0x754] ss:$8 sps:$4 sm:$0xff]   ;;  %v10121_v40 = vld [vmem:[%s14111_s3 + $0x250] ss:$8 sps:$4 sm:$0xff]  }
 0x350   :  { %v10122_v57 = vld [vmem:[%s14111_s3 + $0x750] ss:$8 sps:$4 sm:$0xff]  }
 0x352   :  { %4496 = vmatpush1.bf16.msra.mxu0 %v10082_v41  ;;  %4549 = vmatpush1.bf16.msra.mxu1 %v10083_v42  ;;  %v10123_v41 = vld [vmem:[%s14111_s3 + $0x264] ss:$8 sps:$4 sm:$0xff]  }
 0x353   :  { %4497 = vmatprep.subr.bf16.mxu0 %v10084_v43  ;;  %4550 = vmatprep.subr.bf16.mxu1 %v10085_v35  ;;  %v10124_v42 = vld [vmem:[%s14111_s3 + $0x764] ss:$8 sps:$4 sm:$0xff]   ;;  %v10125_v43 = vld [vmem:[%s14111_s3 + $0x260] ss:$8 sps:$4 sm:$0xff]  }
 0x354   :  { %v10126_v35 = vld [vmem:[%s14111_s3 + $0x760] ss:$8 sps:$4 sm:$0xff]  }
 0x356   :  { %4498 = vmatpush1.bf16.msra.mxu0 %v10086_v45  ;;  %4551 = vmatpush1.bf16.msra.mxu1 %v10087_v46  ;;  %v10127_v45 = vld [vmem:[%s14111_s3 + $0x274] ss:$8 sps:$4 sm:$0xff]  }
 0x357   :  { %4499 = vmatprep.subr.bf16.mxu0 %v10088_v20  ;;  %4552 = vmatprep.subr.bf16.mxu1 %v10089_v48  ;;  %v10128_v46 = vld [vmem:[%s14111_s3 + $0x774] ss:$8 sps:$4 sm:$0xff]   ;;  %v10129_v20 = vld [vmem:[%s14111_s3 + $0x270] ss:$8 sps:$4 sm:$0xff]  }
 0x358   :  { %v10130_v48 = vld [vmem:[%s14111_s3 + $0x770] ss:$8 sps:$4 sm:$0xff]  }
 0x35a   :  { %4500 = vmatpush1.bf16.msra.mxu0 %v10090_v28  ;;  %4553 = vmatpush1.bf16.msra.mxu1 %v10091_v12  ;;  %v10131_v28 = vld [vmem:[%s14111_s3 + $0x284] ss:$8 sps:$4 sm:$0xff]  }
 0x35b   :  { %4501 = vmatprep.subr.bf16.mxu0 %v10092_v58  ;;  %4554 = vmatprep.subr.bf16.mxu1 %v10093_v49  ;;  %v10132_v12 = vld [vmem:[%s14111_s3 + $0x784] ss:$8 sps:$4 sm:$0xff]   ;;  %v10133_v58 = vld [vmem:[%s14111_s3 + $0x280] ss:$8 sps:$4 sm:$0xff]  }
 0x35c   :  { %v10134_v49 = vld [vmem:[%s14111_s3 + $0x780] ss:$8 sps:$4 sm:$0xff]  }
 0x35e   :  { %4502 = vmatpush1.bf16.msra.mxu0 %v10094_v50  ;;  %4555 = vmatpush1.bf16.msra.mxu1 %v10095_v4  ;;  %v10135_v50 = vld [vmem:[%s14111_s3 + $0x294] ss:$8 sps:$4 sm:$0xff]  }
 0x35f   :  { %4577 = vmatprep.subr.bf16.mxu0 %v10096_v53  ;;  %4630 = vmatprep.subr.bf16.mxu1 %v10097_v55  ;;  %v10136_v4 = vld [vmem:[%s14111_s3 + $0x794] ss:$8 sps:$4 sm:$0xff]   ;;  %v10137_v53 = vld [vmem:[%s14111_s3 + $0x290] ss:$8 sps:$4 sm:$0xff]  }
 0x360   :  { %v10138_v55 = vld [vmem:[%s14111_s3 + $0x790] ss:$8 sps:$4 sm:$0xff]  }
 0x361   :  { %4504 = vmatmul.mubr.bf16.vlgmr.msra.gmra.mrb[56].mxu0 %v10098_v39  ;;  %4557 = vmatmul.mubr.bf16.vlgmr.msra.gmra.mrb[56].mxu1 %v10098_v39  ;;  %v10139_v39 = vld [vmem:[%s14111_s3 + $0x2a4] ss:$8 sps:$4 sm:$0xff]  }
 0x362   :  { %4513 = vmatprep.mubr.bf16.mxu0 %v10099_v56  ;;  %4566 = vmatprep.mubr.bf16.mxu1 %v10099_v56  ;;  %v10140_v56 = vld [vmem:[%s14111_s3 + $0x7a4] ss:$8 sps:$4 sm:$0xff]  }
 0x363   :  { %4578 = vmatpush1.bf16.msra.mxu0 %v10100_v7  ;;  %4631 = vmatpush1.bf16.msra.mxu1 %v10101_v10  ;;  %v10141_v7 = vld [vmem:[%s14111_s3 + $0x2a0] ss:$8 sps:$4 sm:$0xff]  }
 0x364   :  { %4579 = vmatprep.subr.bf16.mxu0 %v10102_v14  ;;  %4632 = vmatprep.subr.bf16.mxu1 %v10103_v36  ;;  %v10142_v10 = vld [vmem:[%s14111_s3 + $0x7a0] ss:$8 sps:$4 sm:$0xff]   ;;  %v10143_v14 = vld [vmem:[%s14111_s3 + $0x2b4] ss:$8 sps:$4 sm:$0xff]  }
 0x365   :  { %v10144_v36 = vld [vmem:[%s14111_s3 + $0x7b4] ss:$8 sps:$4 sm:$0xff]  }
 0x367   :  { %4580 = vmatpush1.bf16.msra.mxu0 %v10104_v8  ;;  %4633 = vmatpush1.bf16.msra.mxu1 %v10105_v60  ;;  %v10145_v8 = vld [vmem:[%s14111_s3 + $0x2b0] ss:$8 sps:$4 sm:$0xff]  }
 0x368   :  { %4581 = vmatprep.subr.bf16.mxu0 %v10106_v24  ;;  %4634 = vmatprep.subr.bf16.mxu1 %v10107_v21  ;;  %v10146_v60 = vld [vmem:[%s14111_s3 + $0x7b0] ss:$8 sps:$4 sm:$0xff]   ;;  %v10147_v24 = vld [vmem:[%s14111_s3 + $0x2c4] ss:$8 sps:$4 sm:$0xff]  }
 0x369   :  { %4514 = vmatmul.mubr.bf16.gmra.mrb[60].mxu0 %v10108_v13  ;;  %4567 = vmatmul.mubr.bf16.gmra.mrb[60].mxu1 %v10108_v13  ;;  %v10148_v21 = vld [vmem:[%s14111_s3 + $0x7c4] ss:$8 sps:$4 sm:$0xff]   ;;  %v10149_v13 = vld [vmem:[%s14111_s3 + $0x2c0] ss:$8 sps:$4 sm:$0xff]  }
 0x36a   :  { %4609 = vmatprep.mubr.bf16.mxu0 %v11814_v51  ;;  %4662 = vmatprep.mubr.bf16.mxu1 %v11814_v51  ;;  %v10113_v51 = vld [vmem:[%s14111_s3 + $0x230] ss:$8 sps:$4 sm:$0xff]  }
 0x36b   :  { %4582 = vmatpush1.bf16.msra.mxu0 %v10109_v63  ;;  %4635 = vmatpush1.bf16.msra.mxu1 %v10110_v1  ;;  %v10150_v63 = vld [vmem:[%s14111_s3 + $0x7c0] ss:$8 sps:$4 sm:$0xff]   ;;  %v10151_v1 = vld [vmem:[%s14111_s3 + $0x2d4] ss:$8 sps:$4 sm:$0xff]  }
 0x36c   :  { %4583 = vmatprep.subr.bf16.mxu0 %v10111_v29  ;;  %4636 = vmatprep.subr.bf16.mxu1 %v10112_v44  ;;  %v10152_v29 = vld [vmem:[%s14111_s3 + $0x7d4] ss:$8 sps:$4 sm:$0xff]   ;;  %v10153_v44 = vld [vmem:[%s14111_s3 + $0x2d0] ss:$8 sps:$4 sm:$0xff]  }
 0x36f   :  { %4584 = vmatpush1.bf16.msra.mxu0 %v10113_v51  ;;  %4637 = vmatpush1.bf16.msra.mxu1 %v10114_v2  ;;  %v10154_v51 = vld [vmem:[%s14111_s3 + $0x7d0] ss:$8 sps:$4 sm:$0xff]   ;;  %v10155_v2 = vld [vmem:[%s14111_s3 + $0x2e4] ss:$8 sps:$4 sm:$0xff]  }
 0x370   :  { %4585 = vmatprep.subr.bf16.mxu0 %v10115_v59  ;;  %4638 = vmatprep.subr.bf16.mxu1 %v10116_v27  ;;  %v10156_v59 = vld [vmem:[%s14111_s3 + $0x7e4] ss:$8 sps:$4 sm:$0xff]   ;;  %v10157_v27 = vld [vmem:[%s14111_s3 + $0x2e0] ss:$8 sps:$4 sm:$0xff]  }
 0x373   :  { %4586 = vmatpush1.bf16.msra.mxu0 %v10117_v5  ;;  %4639 = vmatpush1.bf16.msra.mxu1 %v10118_v6  ;;  %v10158_v5 = vld [vmem:[%s14111_s3 + $0x7e0] ss:$8 sps:$4 sm:$0xff]   ;;  %v10159_v6 = vld [vmem:[%s14111_s3 + $0x2f4] ss:$8 sps:$4 sm:$0xff]  }
 0x374   :  { %4587 = vmatprep.subr.bf16.mxu0 %v10119_v33  ;;  %4640 = vmatprep.subr.bf16.mxu1 %v10120_v19  ;;  %v10160_v33 = vld [vmem:[%s14111_s3 + $0x7f4] ss:$8 sps:$4 sm:$0xff]   ;;  %v10161_v19 = vld [vmem:[%s14111_s3 + $0x2f0] ss:$8 sps:$4 sm:$0xff]  }
 0x377   :  { %4588 = vmatpush1.bf16.msra.mxu0 %v10121_v40  ;;  %4641 = vmatpush1.bf16.msra.mxu1 %v10122_v57  ;;  %v10162_v40 = vld [vmem:[%s14111_s3 + $0x7f0] ss:$8 sps:$4 sm:$0xff]   ;;  %v10163_v57 = vld [vmem:[%s14111_s3 + $0x304] ss:$8 sps:$4 sm:$0xff]  }
 0x378   :  { %4589 = vmatprep.subr.bf16.mxu0 %v10123_v41  ;;  %4642 = vmatprep.subr.bf16.mxu1 %v10124_v42  ;;  %v10164_v41 = vld [vmem:[%s14111_s3 + $0x804] ss:$8 sps:$4 sm:$0xff]   ;;  %v10165_v42 = vld [vmem:[%s14111_s3 + $0x300] ss:$8 sps:$4 sm:$0xff]  }
 0x37b   :  { %4590 = vmatpush1.bf16.msra.mxu0 %v10125_v43  ;;  %4643 = vmatpush1.bf16.msra.mxu1 %v10126_v35  ;;  %v10166_v43 = vld [vmem:[%s14111_s3 + $0x800] ss:$8 sps:$4 sm:$0xff]   ;;  %v10167_v35 = vld [vmem:[%s14111_s3 + $0x314] ss:$8 sps:$4 sm:$0xff]  }
 0x37c   :  { %4591 = vmatprep.subr.bf16.mxu0 %v10127_v45  ;;  %4644 = vmatprep.subr.bf16.mxu1 %v10128_v46  ;;  %v10169_v45 = vld [vmem:[%s14111_s3 + $0x354] ss:$8 sps:$4 sm:$0xff]  }
 0x37d   :  { %v10170_v46 = vld [vmem:[%s14111_s3 + $0x854] ss:$8 sps:$4 sm:$0xff]  }
 0x37f   :  { %4592 = vmatpush1.bf16.msra.mxu0 %v10129_v20  ;;  %4645 = vmatpush1.bf16.msra.mxu1 %v10130_v48 }
 0x380   :  { %4593 = vmatprep.subr.bf16.mxu0 %v10131_v28  ;;  %4646 = vmatprep.subr.bf16.mxu1 %v10132_v12 }
 0x383   :  { %4594 = vmatpush1.bf16.msra.mxu0 %v10133_v58  ;;  %4647 = vmatpush1.bf16.msra.mxu1 %v10134_v49 }
 0x384   :  { %4595 = vmatprep.subr.bf16.mxu0 %v10135_v50  ;;  %4648 = vmatprep.subr.bf16.mxu1 %v10136_v4 }
 0x387   :  { %4596 = vmatpush1.bf16.msra.mxu0 %v10137_v53  ;;  %4649 = vmatpush1.bf16.msra.mxu1 %v10138_v55 }
 0x388   :  { %4597 = vmatprep.subr.bf16.mxu0 %v10139_v39  ;;  %4650 = vmatprep.subr.bf16.mxu1 %v10140_v56  ;;  %v10171_v39 = vld [vmem:[%s14111_s3 + $0x350] ss:$8 sps:$4 sm:$0xff]  }
 0x389   :  { %v10172_v56 = vld [vmem:[%s14111_s3 + $0x850] ss:$8 sps:$4 sm:$0xff]  }
 0x38b   :  { %4598 = vmatpush1.bf16.msra.mxu0 %v10141_v7  ;;  %4651 = vmatpush1.bf16.msra.mxu1 %v10142_v10 }
 0x38c   :  { %4599 = vmatprep.subr.bf16.mxu0 %v10143_v14  ;;  %4652 = vmatprep.subr.bf16.mxu1 %v10144_v36  ;;  %v10173_v36 = vld [vmem:[%s14111_s3 + $0x364] ss:$8 sps:$4 sm:$0xff]  }
 0x38f   :  { %4600 = vmatpush1.bf16.msra.mxu0 %v10145_v8  ;;  %4653 = vmatpush1.bf16.msra.mxu1 %v10146_v60  ;;  %v10174_v8 = vld [vmem:[%s14111_s3 + $0x864] ss:$8 sps:$4 sm:$0xff]  }
 0x390   :  { %4601 = vmatprep.subr.bf16.mxu0 %v10147_v24  ;;  %4654 = vmatprep.subr.bf16.mxu1 %v10148_v21 }
 0x393   :  { %4602 = vmatpush1.bf16.msra.mxu0 %v10149_v13  ;;  %4655 = vmatpush1.bf16.msra.mxu1 %v10150_v63 }
 0x394   :  { %4603 = vmatprep.subr.bf16.mxu0 %v10151_v1  ;;  %4656 = vmatprep.subr.bf16.mxu1 %v10152_v29 }
 0x397   :  { %4604 = vmatpush1.bf16.msra.mxu0 %v10153_v44  ;;  %4657 = vmatpush1.bf16.msra.mxu1 %v10154_v51  ;;  %v10175_v44 = vld [vmem:[%s14111_s3 + $0x360] ss:$8 sps:$4 sm:$0xff]  }
 0x398   :  { %4605 = vmatprep.subr.bf16.mxu0 %v10155_v2  ;;  %4658 = vmatprep.subr.bf16.mxu1 %v10156_v59  ;;  %v10176_v51 = vld [vmem:[%s14111_s3 + $0x860] ss:$8 sps:$4 sm:$0xff]  }
 0x39b   :  { %4606 = vmatpush1.bf16.msra.mxu0 %v10157_v27  ;;  %4659 = vmatpush1.bf16.msra.mxu1 %v10158_v5 }
 0x39c   :  { %4607 = vmatprep.subr.bf16.mxu0 %v10159_v6  ;;  %4660 = vmatprep.subr.bf16.mxu1 %v10160_v33 }
 0x39f   :  { %4608 = vmatpush1.bf16.msra.mxu0 %v10161_v19  ;;  %4661 = vmatpush1.bf16.msra.mxu1 %v10162_v40  ;;  %v10177_v19 = vld [vmem:[%s14111_s3 + $0x374] ss:$8 sps:$4 sm:$0xff]  }
 0x3a0   :  { %4699 = vmatprep.subr.bf16.mxu0 %v10163_v57  ;;  %4752 = vmatprep.subr.bf16.mxu1 %v10164_v41  ;;  %v10178_v40 = vld [vmem:[%s14111_s3 + $0x874] ss:$8 sps:$4 sm:$0xff]  }
 0x3a2   :  { %4610 = vmatmul.mubr.bf16.vlgmr.msra.gmra.mrb[56].mxu0 %v12003_v52  ;;  %4663 = vmatmul.mubr.bf16.vlgmr.msra.gmra.mrb[56].mxu1 %v12003_v52  ;;  %v10168_v52 = vld [vmem:[%s14111_s3 + $0x814] ss:$8 sps:$4 sm:$0xff]  }
 0x3a3   :  { %4619 = vmatprep.mubr.bf16.mxu0 %v12016_v31  ;;  %4672 = vmatprep.mubr.bf16.mxu1 %v12016_v31 }
 0x3a4   :  { %4700 = vmatpush1.bf16.msra.mxu0 %v10165_v42  ;;  %4753 = vmatpush1.bf16.msra.mxu1 %v10166_v43 }
 0x3a5   :  { %4701 = vmatprep.subr.bf16.mxu0 %v10167_v35  ;;  %4754 = vmatprep.subr.bf16.mxu1 %v10168_v52 }
 0x3a8   :  { %4702 = vmatpush1.bf16.msra.mxu0 %v11764_v62  ;;  %4755 = vmatpush1.bf16.msra.mxu1 %v11769_v17  ;;  %v1743_v62 = vld [vmem:[%s14113_s4] sm:$0x3] }
 0x3a9   :  { %4703 = vmatprep.subr.bf16.mxu0 %v11774_v11  ;;  %4756 = vmatprep.subr.bf16.mxu1 %v11779_v47  ;;  %v12837_v17 = vrot.slane %v1743_v62, %v11056_v22  ;;  %v12842_v11 = vrot.slane %v1743_v62, %v11065_v25 }
 0x3aa   :  { %4620 = vmatmul.mubr.bf16.gmra.mrb[60].mxu0 %v12039_v61  ;;  %4673 = vmatmul.mubr.bf16.gmra.mrb[60].mxu1 %v12039_v61 }
 0x3ab   :  { %4731 = vmatprep.mubr.bf16.mxu0 %v12049_v0  ;;  %4784 = vmatprep.mubr.bf16.mxu1 %v12049_v0 }
 0x3ac   :  { %4704 = vmatpush1.bf16.msra.mxu0 %v11787_v34  ;;  %4757 = vmatpush1.bf16.msra.mxu1 %v11792_v18 }
 0x3ad   :  { %4705 = vmatprep.subr.bf16.mxu0 %v11802_v3  ;;  %4758 = vmatprep.subr.bf16.mxu1 %v11807_v23 }
 0x3b0   :  { %4706 = vmatpush1.bf16.msra.mxu0 %v11823_v26  ;;  %4759 = vmatpush1.bf16.msra.mxu1 %v11828_v30 }
 0x3b1   :  { %4707 = vmatprep.subr.bf16.mxu0 %v11835_v54  ;;  %4760 = vmatprep.subr.bf16.mxu1 %v11840_v32 }
 0x3b2   :  { %v4033_v47 = vpop.f32.mrb[48].mxu0  ;;  %v4279_v34 = vpop.f32.mrb[48].mxu1 }
 0x3b3   :  { %v4325_v18 = vadd.f32 %v12837_v17, %v4033_v47  ;;  %v4341_v3 = vadd.f32 %v12837_v17, %v4279_v34  ;;  %v4035_v23 = vpop.f32.mrb[49].mxu0  ;;  %v4281_v31 = vpop.f32.mrb[49].mxu1 }
 0x3b4   :  { %4708 = vmatpush1.bf16.msra.mxu0 %v11847_v37  ;;  %4761 = vmatpush1.bf16.msra.mxu1 %v11852_v38  ;;  %v4326_v26 = vadd.f32 %v12842_v11, %v4035_v23  ;;  %v4342_v30 = vadd.f32 %v12842_v11, %v4281_v31  ;;  %v4037_v61 = vpop.f32.mrb[50].mxu0  ;;  %v4283_v54 = vpop.f32.mrb[50].mxu1  ;;  %v10179_v31 = vld [vmem:[%s14111_s3 + $0x370] ss:$8 sps:$4 sm:$0xff]  }
 0x3b5   :  { %v4333_v0 = vmax.f32 %v4325_v18, 0.0  ;;  %v4349_v32 = vmax.f32 %v4341_v3, 0.0  ;;  %4709 = vmatprep.subr.bf16.mxu0 %v10169_v45  ;;  %4762 = vmatprep.subr.bf16.mxu1 %v10170_v46  ;;  %v4327_v37 = vadd.f32 %v12837_v17, %v4037_v61  ;;  %v4343_v38 = vadd.f32 %v12837_v17, %v4283_v54  ;;  %v4039_v20 = vpop.f32.mrb[51].mxu0  ;;  %v4285_v48 = vpop.f32.mrb[51].mxu1  ;;  %v10183_v46 = vld [vmem:[%s14111_s3 + $0x380] ss:$8 sps:$4 sm:$0xff]  }
 0x3b6   :  { %v4334_v28 = vmax.f32 %v4326_v26, 0.0  ;;  %v4350_v12 = vmax.f32 %v4342_v30, 0.0  ;;  %v4328_v58 = vadd.f32 %v12842_v11, %v4039_v20  ;;  %v4344_v49 = vadd.f32 %v12842_v11, %v4285_v48  ;;  %v10180_v26 = vld [vmem:[%s14111_s3 + $0x870] ss:$8 sps:$4 sm:$0xff]   ;;  %v10186_v20 = vld [vmem:[%s14111_s3 + $0x894] ss:$8 sps:$4 sm:$0xff]  }
 0x3b7   :  { %v12862_v50 = vmax.f32 %v4333_v0, %v4349_v32  ;;  %v4335_v4 = vmax.f32 %v4327_v37, 0.0  ;;  %v4351_v53 = vmax.f32 %v4343_v38, 0.0  ;;  %v10181_v0 = vld [vmem:[%s14111_s3 + $0x384] ss:$8 sps:$4 sm:$0xff]   ;;  %v10184_v37 = vld [vmem:[%s14111_s3 + $0x880] ss:$8 sps:$4 sm:$0xff]  }
 0x3b8   :  { %v12864_v55 = vmax.f32 %v4334_v28, %v4350_v12  ;;  %4710 = vmatpush1.bf16.msra.mxu0 %v10171_v39  ;;  %4763 = vmatpush1.bf16.msra.mxu1 %v10172_v56  ;;  %v4336_v7 = vmax.f32 %v4328_v58, 0.0  ;;  %v4352_v10 = vmax.f32 %v4344_v49, 0.0  ;;  %v10182_v32 = vld [vmem:[%s14111_s3 + $0x884] ss:$8 sps:$4 sm:$0xff]   ;;  %v10185_v38 = vld [vmem:[%s14111_s3 + $0x394] ss:$8 sps:$4 sm:$0xff]  }
 0x3b9   :  { %v12872_v14 = vmax.f32 %v4335_v4, %v4351_v53  ;;  %4711 = vmatprep.subr.bf16.mxu0 %v10173_v36  ;;  %4764 = vmatprep.subr.bf16.mxu1 %v10174_v8  ;;  %v10187_v48 = vld [vmem:[%s14111_s3 + $0x390] ss:$8 sps:$4 sm:$0xff]   ;;  %v10189_v12 = vld [vmem:[%s14111_s3 + $0x3a4] ss:$8 sps:$4 sm:$0xff]   ;;  %v10191_v49 = vld [vmem:[%s14111_s3 + $0x3a0] ss:$8 sps:$4 sm:$0xff]  }
 0x3ba   :  { %v12880_v60 = vmax.f32 %v4336_v7, %v4352_v10  ;;  %v4043_v24 = vpop.f32.mrb[52].mxu0  ;;  %v4289_v21 = vpop.f32.mrb[52].mxu1  ;;  %v10188_v28 = vld [vmem:[%s14111_s3 + $0x890] ss:$8 sps:$4 sm:$0xff]   ;;  %v10190_v58 = vld [vmem:[%s14111_s3 + $0x8a4] ss:$8 sps:$4 sm:$0xff]  }
 0x3bb   :  { %v4329_v13 = vadd.f32 %v12837_v17, %v4043_v24  ;;  %v4345_v63 = vadd.f32 %v12837_v17, %v4289_v21  ;;  %v4045_v1 = vpop.f32.mrb[53].mxu0  ;;  %v4291_v29 = vpop.f32.mrb[53].mxu1  ;;  %v10192_v4 = vld [vmem:[%s14111_s3 + $0x8a0] ss:$8 sps:$4 sm:$0xff]   ;;  %v10193_v53 = vld [vmem:[%s14111_s3 + $0x3b4] ss:$8 sps:$4 sm:$0xff]  }
 0x3bc   :  { %4712 = vmatpush1.bf16.msra.mxu0 %v10175_v44  ;;  %4765 = vmatpush1.bf16.msra.mxu1 %v10176_v51  ;;  %v4330_v2 = vadd.f32 %v12842_v11, %v4045_v1  ;;  %v4346_v59 = vadd.f32 %v12842_v11, %v4291_v29  ;;  %v4047_v27 = vpop.f32.mrb[54].mxu0  ;;  %v4293_v5 = vpop.f32.mrb[54].mxu1  ;;  %v10194_v39 = vld [vmem:[%s14111_s3 + $0x8b4] ss:$8 sps:$4 sm:$0xff]   ;;  %v10195_v56 = vld [vmem:[%s14111_s3 + $0x3b0] ss:$8 sps:$4 sm:$0xff]  }
 0x3bd   :  { %v4337_v6 = vmax.f32 %v4329_v13, 0.0  ;;  %v4353_v33 = vmax.f32 %v4345_v63, 0.0  ;;  %4713 = vmatprep.subr.bf16.mxu0 %v10177_v19  ;;  %4766 = vmatprep.subr.bf16.mxu1 %v10178_v40  ;;  %v4331_v57 = vadd.f32 %v12837_v17, %v4047_v27  ;;  %v4347_v41 = vadd.f32 %v12837_v17, %v4293_v5  ;;  %v4049_v42 = vpop.f32.mrb[55].mxu0  ;;  %v4295_v43 = vpop.f32.mrb[55].mxu1  ;;  %v10196_v7 = vld [vmem:[%s14111_s3 + $0x8b0] ss:$8 sps:$4 sm:$0xff]  }
 0x3be   :  { %v4338_v35 = vmax.f32 %v4330_v2, 0.0  ;;  %v4354_v52 = vmax.f32 %v4346_v59, 0.0  ;;  %v4332_v62 = vadd.f32 %v12842_v11, %v4049_v42  ;;  %v4348_v47 = vadd.f32 %v12842_v11, %v4295_v43  ;;  %v10197_v10 = vld [vmem:[%s14111_s3 + $0x3c4] ss:$8 sps:$4 sm:$0xff]   ;;  %v10199_v8 = vld [vmem:[%s14111_s3 + $0x3c0] ss:$8 sps:$4 sm:$0xff]  }
 0x3bf   :  { %v12902_v34 = vmax.f32 %v4337_v6, %v4353_v33  ;;  %v4339_v18 = vmax.f32 %v4331_v57, 0.0  ;;  %v4355_v3 = vmax.f32 %v4347_v41, 0.0  ;;  %v10198_v36 = vld [vmem:[%s14111_s3 + $0x8c4] ss:$8 sps:$4 sm:$0xff]   ;;  %v10200_v24 = vld [vmem:[%s14111_s3 + $0x8c0] ss:$8 sps:$4 sm:$0xff]  }
 0x3c0   :  { %v12904_v23 = vmax.f32 %v4338_v35, %v4354_v52  ;;  %4714 = vmatpush1.bf16.msra.mxu0 %v10179_v31  ;;  %4767 = vmatpush1.bf16.msra.mxu1 %v10180_v26  ;;  %v4340_v30 = vmax.f32 %v4332_v62, 0.0  ;;  %v4356_v61 = vmax.f32 %v4348_v47, 0.0  ;;  %v10201_v21 = vld [vmem:[%s14111_s3 + $0x3d4] ss:$8 sps:$4 sm:$0xff]   ;;  %v10203_v63 = vld [vmem:[%s14111_s3 + $0x3d0] ss:$8 sps:$4 sm:$0xff]  }
 0x3c1   :  { %v12912_v54 = vmax.f32 %v4339_v18, %v4355_v3  ;;  %4715 = vmatprep.subr.bf16.mxu0 %v10181_v0  ;;  %4768 = vmatprep.subr.bf16.mxu1 %v10182_v32  ;;  %v10202_v13 = vld [vmem:[%s14111_s3 + $0x8d4] ss:$8 sps:$4 sm:$0xff]   ;;  %v10204_v1 = vld [vmem:[%s14111_s3 + $0x8d0] ss:$8 sps:$4 sm:$0xff]   ;;  %v10205_v29 = vld [vmem:[%s14111_s3 + $0x3e4] ss:$8 sps:$4 sm:$0xff]  }
 0x3c2   :  { %v12920_v45 = vmax.f32 %v4340_v30, %v4356_v61  ;;  %v10206_v44 = vld [vmem:[%s14111_s3 + $0x8e4] ss:$8 sps:$4 sm:$0xff]   ;;  %v10207_v51 = vld [vmem:[%s14111_s3 + $0x3e0] ss:$8 sps:$4 sm:$0xff]   ;;  %v10209_v59 = vld [vmem:[%s14111_s3 + $0x3f4] ss:$8 sps:$4 sm:$0xff]  }
 0x3c3   :  { %v10208_v2 = vld [vmem:[%s14111_s3 + $0x8e0] ss:$8 sps:$4 sm:$0xff]   ;;  %v10210_v27 = vld [vmem:[%s14111_s3 + $0x8f4] ss:$8 sps:$4 sm:$0xff]   ;;  %v10211_v5 = vld [vmem:[%s14111_s3 + $0x3f0] ss:$8 sps:$4 sm:$0xff]  }
 0x3c4   :  { %4716 = vmatpush1.bf16.msra.mxu0 %v10183_v46  ;;  %4769 = vmatpush1.bf16.msra.mxu1 %v10184_v37  ;;  %v10212_v6 = vld [vmem:[%s14111_s3 + $0x8f0] ss:$8 sps:$4 sm:$0xff]   ;;  %v10213_v33 = vld [vmem:[%s14111_s3 + $0x404] ss:$8 sps:$4 sm:$0xff]   ;;  %v10216_v57 = vld [vmem:[%s14111_s3 + $0x400] ss:$8 sps:$4 sm:$0xff]  }
 0x3c5   :  { %4717 = vmatprep.subr.bf16.mxu0 %v10185_v38  ;;  %4770 = vmatprep.subr.bf16.mxu1 %v10186_v20  ;;  %v10214_v19 = vld [vmem:[%s14111_s3 + $0x904] ss:$8 sps:$4 sm:$0xff]   ;;  %v10215_v40 = vld [vmem:[#allocation2 + $0x10] sm:$0xff]  ;;  %v10217_v41 = vld [vmem:[%s14111_s3 + $0x900] ss:$8 sps:$4 sm:$0xff]  }
 0x3c6   :  { %v10218_v42 = vld [vmem:[%s14111_s3 + $0x414] ss:$8 sps:$4 sm:$0xff]   ;;  %v10221_v35 = vld [vmem:[%s14111_s3 + $0x910] ss:$8 sps:$4 sm:$0xff]   ;;  %v10222_v52 = vld [vmem:[%s14111_s3 + $0x424] ss:$8 sps:$4 sm:$0xff]  }
 0x3c7   :  { %v10219_v43 = vld [vmem:[%s14111_s3 + $0x914] ss:$8 sps:$4 sm:$0xff]   ;;  %v10223_v62 = vld [vmem:[%s14111_s3 + $0x924] ss:$8 sps:$4 sm:$0xff]   ;;  %v10225_v18 = vld [vmem:[%s14111_s3 + $0x420] ss:$8 sps:$4 sm:$0xff]  }
 0x3c8   :  { %4718 = vmatpush1.bf16.msra.mxu0 %v10187_v48  ;;  %4771 = vmatpush1.bf16.msra.mxu1 %v10188_v28  ;;  %v10224_v47 = vld [vmem:[#allocation2 + $0x48] sm:$0xff]  ;;  %v10227_v31 = vld [vmem:[%s14111_s3 + $0x434] ss:$8 sps:$4 sm:$0xff]   ;;  %v10229_v26 = vld [vmem:[%s14111_s3 + $0x430] ss:$8 sps:$4 sm:$0xff]  }
 0x3c9   :  { %4719 = vmatprep.subr.bf16.mxu0 %v10189_v12  ;;  %4772 = vmatprep.subr.bf16.mxu1 %v10190_v58  ;;  %v10226_v3 = vld [vmem:[%s14111_s3 + $0x920] ss:$8 sps:$4 sm:$0xff]   ;;  %v10230_v30 = vld [vmem:[%s14111_s3 + $0x930] ss:$8 sps:$4 sm:$0xff]   ;;  %v10231_v61 = vld [vmem:[%s14111_s3 + $0x444] ss:$8 sps:$4 sm:$0xff]  }
 0x3ca   :  { %v10232_v0 = vld [vmem:[%s14111_s3 + $0x944] ss:$8 sps:$4 sm:$0xff]   ;;  %v10233_v32 = vld [vmem:[%s14111_s3 + $0x440] ss:$8 sps:$4 sm:$0xff]   ;;  %v10235_v37 = vld [vmem:[%s14111_s3 + $0x454] ss:$8 sps:$4 sm:$0xff]  }
 0x3cb   :  { %v10234_v46 = vld [vmem:[%s14111_s3 + $0x940] ss:$8 sps:$4 sm:$0xff]   ;;  %v10236_v38 = vld [vmem:[%s14111_s3 + $0x954] ss:$8 sps:$4 sm:$0xff]   ;;  %v10237_v20 = vld [vmem:[%s14111_s3 + $0x450] ss:$8 sps:$4 sm:$0xff]  }
 0x3cc   :  { %4720 = vmatpush1.bf16.msra.mxu0 %v10191_v49  ;;  %4773 = vmatpush1.bf16.msra.mxu1 %v10192_v4  ;;  %v10238_v48 = vld [vmem:[%s14111_s3 + $0x950] ss:$8 sps:$4 sm:$0xff]   ;;  %v10239_v28 = vld [vmem:[%s14111_s3 + $0x464] ss:$8 sps:$4 sm:$0xff]   ;;  %v10241_v58 = vld [vmem:[%s14111_s3 + $0x460] ss:$8 sps:$4 sm:$0xff]  }
 0x3cd   :  { %4721 = vmatprep.subr.bf16.mxu0 %v10193_v53  ;;  %4774 = vmatprep.subr.bf16.mxu1 %v10194_v39  ;;  %v10240_v12 = vld [vmem:[%s14111_s3 + $0x964] ss:$8 sps:$4 sm:$0xff]   ;;  %v10242_v49 = vld [vmem:[%s14111_s3 + $0x960] ss:$8 sps:$4 sm:$0xff]   ;;  %v10243_v4 = vld [vmem:[%s14111_s3 + $0x474] ss:$8 sps:$4 sm:$0xff]  }
 0x3ce   :  { %v10244_v53 = vld [vmem:[%s14111_s3 + $0x974] ss:$8 sps:$4 sm:$0xff]   ;;  %v10245_v39 = vld [vmem:[%s14111_s3 + $0x470] ss:$8 sps:$4 sm:$0xff]  }
 0x3d0   :  { %4722 = vmatpush1.bf16.msra.mxu0 %v10195_v56  ;;  %4775 = vmatpush1.bf16.msra.mxu1 %v10196_v7  ;;  %v10246_v56 = vld [vmem:[%s14111_s3 + $0x970] ss:$8 sps:$4 sm:$0xff]   ;;  %v10247_v7 = vld [vmem:[%s14111_s3 + $0x484] ss:$8 sps:$4 sm:$0xff]  }
 0x3d1   :  { %4723 = vmatprep.subr.bf16.mxu0 %v10197_v10  ;;  %4776 = vmatprep.subr.bf16.mxu1 %v10198_v36  ;;  %v10248_v10 = vld [vmem:[%s14111_s3 + $0x984] ss:$8 sps:$4 sm:$0xff]   ;;  %v10249_v36 = vld [vmem:[%s14111_s3 + $0x480] ss:$8 sps:$4 sm:$0xff]  }
 0x3d4   :  { %4724 = vmatpush1.bf16.msra.mxu0 %v10199_v8  ;;  %4777 = vmatpush1.bf16.msra.mxu1 %v10200_v24  ;;  %v10250_v8 = vld [vmem:[%s14111_s3 + $0x980] ss:$8 sps:$4 sm:$0xff]   ;;  %v10251_v24 = vld [vmem:[%s14111_s3 + $0x494] ss:$8 sps:$4 sm:$0xff]  }
 0x3d5   :  { %4725 = vmatprep.subr.bf16.mxu0 %v10201_v21  ;;  %4778 = vmatprep.subr.bf16.mxu1 %v10202_v13  ;;  %v10252_v21 = vld [vmem:[%s14111_s3 + $0x994] ss:$8 sps:$4 sm:$0xff]   ;;  %v10253_v13 = vld [vmem:[%s14111_s3 + $0x490] ss:$8 sps:$4 sm:$0xff]  }
 0x3d8   :  { %4726 = vmatpush1.bf16.msra.mxu0 %v10203_v63  ;;  %4779 = vmatpush1.bf16.msra.mxu1 %v10204_v1  ;;  %v10254_v63 = vld [vmem:[%s14111_s3 + $0x990] ss:$8 sps:$4 sm:$0xff]   ;;  %v10255_v1 = vld [vmem:[%s14111_s3 + $0x4a4] ss:$8 sps:$4 sm:$0xff]  }
 0x3d9   :  { %4727 = vmatprep.subr.bf16.mxu0 %v10205_v29  ;;  %4780 = vmatprep.subr.bf16.mxu1 %v10206_v44  ;;  %v10256_v29 = vld [vmem:[%s14111_s3 + $0x9a4] ss:$8 sps:$4 sm:$0xff]   ;;  %v10257_v44 = vld [vmem:[%s14111_s3 + $0x4a0] ss:$8 sps:$4 sm:$0xff]  }
 0x3dc   :  { %4728 = vmatpush1.bf16.msra.mxu0 %v10207_v51  ;;  %4781 = vmatpush1.bf16.msra.mxu1 %v10208_v2  ;;  %v10258_v51 = vld [vmem:[%s14111_s3 + $0x9a0] ss:$8 sps:$4 sm:$0xff]   ;;  %v10259_v2 = vld [vmem:[%s14111_s3 + $0x4b4] ss:$8 sps:$4 sm:$0xff]  }
 0x3dd   :  { %4729 = vmatprep.subr.bf16.mxu0 %v10209_v59  ;;  %4782 = vmatprep.subr.bf16.mxu1 %v10210_v27  ;;  %v10260_v59 = vld [vmem:[%s14111_s3 + $0x9b4] ss:$8 sps:$4 sm:$0xff]   ;;  %v10261_v27 = vld [vmem:[%s14111_s3 + $0x4b0] ss:$8 sps:$4 sm:$0xff]  }
 0x3e0   :  { %4730 = vmatpush1.bf16.msra.mxu0 %v10211_v5  ;;  %4783 = vmatpush1.bf16.msra.mxu1 %v10212_v6  ;;  %v10262_v5 = vld [vmem:[%s14111_s3 + $0x9b0] ss:$8 sps:$4 sm:$0xff]   ;;  %v10263_v6 = vld [vmem:[%s14111_s3 + $0x4c4] ss:$8 sps:$4 sm:$0xff]  }
 0x3e1   :  { %4823 = vmatprep.subr.bf16.mxu0 %v10213_v33  ;;  %4876 = vmatprep.subr.bf16.mxu1 %v10214_v19  ;;  %v10264_v33 = vld [vmem:[%s14111_s3 + $0x9c4] ss:$8 sps:$4 sm:$0xff]   ;;  %v10265_v19 = vld [vmem:[%s14111_s3 + $0x4c0] ss:$8 sps:$4 sm:$0xff]  }
 0x3e3   :  { %4732 = vmatmul.mubr.bf16.vlgmr.msra.gmra.mrb[56].mxu0 %v10215_v40  ;;  %4785 = vmatmul.mubr.bf16.vlgmr.msra.gmra.mrb[56].mxu1 %v10215_v40  ;;  %v10266_v40 = vld [vmem:[%s14111_s3 + $0x9c0] ss:$8 sps:$4 sm:$0xff]  }
 0x3e4   :  { %4741 = vmatprep.mubr.bf16.mxu0 %v12211_v9  ;;  %4794 = vmatprep.mubr.bf16.mxu1 %v12211_v9  ;;  %v10220_v9 = vld [vmem:[%s14111_s3 + $0x410] ss:$8 sps:$4 sm:$0xff]  }
 0x3e5   :  { %4824 = vmatpush1.bf16.msra.mxu0 %v10216_v57  ;;  %4877 = vmatpush1.bf16.msra.mxu1 %v10217_v41  ;;  %v10267_v57 = vld [vmem:[%s14111_s3 + $0x4d4] ss:$8 sps:$4 sm:$0xff]  }
 0x3e6   :  { %4825 = vmatprep.subr.bf16.mxu0 %v10218_v42  ;;  %4878 = vmatprep.subr.bf16.mxu1 %v10219_v43  ;;  %v10268_v41 = vld [vmem:[%s14111_s3 + $0x9d4] ss:$8 sps:$4 sm:$0xff]   ;;  %v10269_v42 = vld [vmem:[%s14111_s3 + $0x4d0] ss:$8 sps:$4 sm:$0xff]  }
 0x3e7   :  { %v10270_v43 = vld [vmem:[%s14111_s3 + $0x9d0] ss:$8 sps:$4 sm:$0xff]  }
 0x3e9   :  { %4826 = vmatpush1.bf16.msra.mxu0 %v10220_v9  ;;  %4879 = vmatpush1.bf16.msra.mxu1 %v10221_v35  ;;  %v10271_v9 = vld [vmem:[%s14111_s3 + $0x4e4] ss:$8 sps:$4 sm:$0xff]  }
 0x3ea   :  { %4827 = vmatprep.subr.bf16.mxu0 %v10222_v52  ;;  %4880 = vmatprep.subr.bf16.mxu1 %v10223_v62  ;;  %v10272_v35 = vld [vmem:[%s14111_s3 + $0x9e4] ss:$8 sps:$4 sm:$0xff]   ;;  %v10273_v52 = vld [vmem:[%s14111_s3 + $0x4e0] ss:$8 sps:$4 sm:$0xff]  }
 0x3eb   :  { %4742 = vmatmul.mubr.bf16.gmra.mrb[60].mxu0 %v12233_v15  ;;  %4795 = vmatmul.mubr.bf16.gmra.mrb[60].mxu1 %v12233_v15  ;;  %v10228_v15 = vld [vmem:[%s14111_s3 + $0x934] ss:$8 sps:$4 sm:$0xff]   ;;  %v10274_v62 = vld [vmem:[%s14111_s3 + $0x9e0] ss:$8 sps:$4 sm:$0xff]  }
 0x3ec   :  { %4855 = vmatprep.mubr.bf16.mxu0 %v10224_v47  ;;  %4908 = vmatprep.mubr.bf16.mxu1 %v10224_v47  ;;  %v10275_v47 = vld [vmem:[%s14111_s3 + $0x4f4] ss:$8 sps:$4 sm:$0xff]  }
 0x3ed   :  { %4828 = vmatpush1.bf16.msra.mxu0 %v10225_v18  ;;  %4881 = vmatpush1.bf16.msra.mxu1 %v10226_v3  ;;  %v10276_v18 = vld [vmem:[%s14111_s3 + $0x9f4] ss:$8 sps:$4 sm:$0xff]  }
 0x3ee   :  { %4829 = vmatprep.subr.bf16.mxu0 %v10227_v31  ;;  %4882 = vmatprep.subr.bf16.mxu1 %v10228_v15  ;;  %v9548_v3 = vld [vmem:[%s14114_s5 + $0x4] ss:$16 sps:$4 sm:$0xff]   ;;  %v9551_v31 = vld [vmem:[%s14114_s5 + $0xc] ss:$16 sps:$4 sm:$0xff]   ;;  %v10277_v15 = vld [vmem:[%s14111_s3 + $0x4f0] ss:$8 sps:$4 sm:$0xff]  }
 0x3f1   :  { %4830 = vmatpush1.bf16.msra.mxu0 %v10229_v26  ;;  %4883 = vmatpush1.bf16.msra.mxu1 %v10230_v30  ;;  %v10278_v26 = vld [vmem:[%s14111_s3 + $0x9f0] ss:$8 sps:$4 sm:$0xff]  }
 0x3f2   :  { %4831 = vmatprep.subr.bf16.mxu0 %v10231_v61  ;;  %4884 = vmatprep.subr.bf16.mxu1 %v10232_v0  ;;  %v9546_v30 = vld [vmem:[%s14114_s5] ss:$16 sps:$4 sm:$0xff]   ;;  %v9549_v61 = vld [vmem:[%s14114_s5 + $0x8] ss:$16 sps:$4 sm:$0xff]   ;;  %v9554_v0 = vld [vmem:[%s14114_s5 + $0x24] ss:$16 sps:$4 sm:$0xff]  }
 0x3f5   :  { %4832 = vmatpush1.bf16.msra.mxu0 %v10233_v32  ;;  %4885 = vmatpush1.bf16.msra.mxu1 %v10234_v46  ;;  %v9557_v32 = vld [vmem:[%s14114_s5 + $0x2c] ss:$16 sps:$4 sm:$0xff]   ;;  %v10279_v46 = vld [vmem:[#allocation2 + $0x40] sm:$0xff] }
 0x3f6   :  { %4833 = vmatprep.subr.bf16.mxu0 %v10235_v37  ;;  %4886 = vmatprep.subr.bf16.mxu1 %v10236_v38  ;;  %v4822_v37 = vld [vmem:[#allocation2 + $0x58] sm:$0xff]  ;;  %v9552_v38 = vld [vmem:[%s14114_s5 + $0x20] ss:$16 sps:$4 sm:$0xff]  }
 0x3f9   :  { %4834 = vmatpush1.bf16.msra.mxu0 %v10237_v20  ;;  %4887 = vmatpush1.bf16.msra.mxu1 %v10238_v48  ;;  %v9555_v20 = vld [vmem:[%s14114_s5 + $0x28] ss:$16 sps:$4 sm:$0xff]   ;;  %v9560_v48 = vld [vmem:[%s14114_s5 + $0x44] ss:$16 sps:$4 sm:$0xff]  }
 0x3fa   :  { %4835 = vmatprep.subr.bf16.mxu0 %v10239_v28  ;;  %4888 = vmatprep.subr.bf16.mxu1 %v10240_v12  ;;  %v9563_v28 = vld [vmem:[%s14114_s5 + $0x4c] ss:$16 sps:$4 sm:$0xff]   ;;  %v9558_v12 = vld [vmem:[%s14114_s5 + $0x40] ss:$16 sps:$4 sm:$0xff]  }
 0x3fd   :  { %4836 = vmatpush1.bf16.msra.mxu0 %v10241_v58  ;;  %4889 = vmatpush1.bf16.msra.mxu1 %v10242_v49  ;;  %v9561_v58 = vld [vmem:[%s14114_s5 + $0x48] ss:$16 sps:$4 sm:$0xff]   ;;  %v4821_v49 = vld [vmem:[#allocation2 + $0x50] sm:$0xff] }
 0x3fe   :  { %4837 = vmatprep.subr.bf16.mxu0 %v10243_v4  ;;  %4890 = vmatprep.subr.bf16.mxu1 %v10244_v53  ;;  %v9566_v4 = vld [vmem:[%s14114_s5 + $0x64] ss:$16 sps:$4 sm:$0xff]   ;;  %v9569_v53 = vld [vmem:[%s14114_s5 + $0x6c] ss:$16 sps:$4 sm:$0xff]  }
 0x401   :  { %4838 = vmatpush1.bf16.msra.mxu0 %v10245_v39  ;;  %4891 = vmatpush1.bf16.msra.mxu1 %v10246_v56  ;;  %v9564_v39 = vld [vmem:[%s14114_s5 + $0x60] ss:$16 sps:$4 sm:$0xff]   ;;  %v9567_v56 = vld [vmem:[%s14114_s5 + $0x68] ss:$16 sps:$4 sm:$0xff]  }
 0x402   :  { %4839 = vmatprep.subr.bf16.mxu0 %v10247_v7  ;;  %4892 = vmatprep.subr.bf16.mxu1 %v10248_v10  ;;  %v9572_v7 = vld [vmem:[%s14114_s5 + $0x84] ss:$16 sps:$4 sm:$0xff]   ;;  %v9575_v10 = vld [vmem:[%s14114_s5 + $0x8c] ss:$16 sps:$4 sm:$0xff]  }
 0x405   :  { %4840 = vmatpush1.bf16.msra.mxu0 %v10249_v36  ;;  %4893 = vmatpush1.bf16.msra.mxu1 %v10250_v8  ;;  %v9570_v36 = vld [vmem:[%s14114_s5 + $0x80] ss:$16 sps:$4 sm:$0xff]   ;;  %v9573_v8 = vld [vmem:[%s14114_s5 + $0x88] ss:$16 sps:$4 sm:$0xff]  }
 0x406   :  { %4841 = vmatprep.subr.bf16.mxu0 %v10251_v24  ;;  %4894 = vmatprep.subr.bf16.mxu1 %v10252_v21  ;;  %v9578_v24 = vld [vmem:[%s14114_s5 + $0xa4] ss:$16 sps:$4 sm:$0xff]   ;;  %v9581_v21 = vld [vmem:[%s14114_s5 + $0xac] ss:$16 sps:$4 sm:$0xff]  }
 0x409   :  { %4842 = vmatpush1.bf16.msra.mxu0 %v10253_v13  ;;  %4895 = vmatpush1.bf16.msra.mxu1 %v10254_v63  ;;  %v9576_v13 = vld [vmem:[%s14114_s5 + $0xa0] ss:$16 sps:$4 sm:$0xff]   ;;  %v9579_v63 = vld [vmem:[%s14114_s5 + $0xa8] ss:$16 sps:$4 sm:$0xff]  }
 0x40a   :  { %4843 = vmatprep.subr.bf16.mxu0 %v10255_v1  ;;  %4896 = vmatprep.subr.bf16.mxu1 %v10256_v29  ;;  %v9584_v1 = vld [vmem:[%s14114_s5 + $0xc4] ss:$16 sps:$4 sm:$0xff]   ;;  %v9587_v29 = vld [vmem:[%s14114_s5 + $0xcc] ss:$16 sps:$4 sm:$0xff]  }
 0x40d   :  { %4844 = vmatpush1.bf16.msra.mxu0 %v10257_v44  ;;  %4897 = vmatpush1.bf16.msra.mxu1 %v10258_v51  ;;  %v9582_v44 = vld [vmem:[%s14114_s5 + $0xc0] ss:$16 sps:$4 sm:$0xff]   ;;  %v9585_v51 = vld [vmem:[%s14114_s5 + $0xc8] ss:$16 sps:$4 sm:$0xff]  }
 0x40e   :  { %4845 = vmatprep.subr.bf16.mxu0 %v10259_v2  ;;  %4898 = vmatprep.subr.bf16.mxu1 %v10260_v59  ;;  %v9590_v2 = vld [vmem:[%s14114_s5 + $0xe4] ss:$16 sps:$4 sm:$0xff]   ;;  %v9593_v59 = vld [vmem:[%s14114_s5 + $0xec] ss:$16 sps:$4 sm:$0xff]  }
 0x411   :  { %4846 = vmatpush1.bf16.msra.mxu0 %v10261_v27  ;;  %4899 = vmatpush1.bf16.msra.mxu1 %v10262_v5  ;;  %v9588_v27 = vld [vmem:[%s14114_s5 + $0xe0] ss:$16 sps:$4 sm:$0xff]   ;;  %v9591_v5 = vld [vmem:[%s14114_s5 + $0xe8] ss:$16 sps:$4 sm:$0xff]  }
 0x412   :  { %4847 = vmatprep.subr.bf16.mxu0 %v10263_v6  ;;  %4900 = vmatprep.subr.bf16.mxu1 %v10264_v33  ;;  %v9596_v6 = vld [vmem:[%s14114_s5 + $0x104] ss:$16 sps:$4 sm:$0xff]   ;;  %v9599_v33 = vld [vmem:[%s14114_s5 + $0x10c] ss:$16 sps:$4 sm:$0xff]  }
 0x415   :  { %4848 = vmatpush1.bf16.msra.mxu0 %v10265_v19  ;;  %4901 = vmatpush1.bf16.msra.mxu1 %v10266_v40  ;;  %v9594_v19 = vld [vmem:[%s14114_s5 + $0x100] ss:$16 sps:$4 sm:$0xff]   ;;  %v9597_v40 = vld [vmem:[%s14114_s5 + $0x108] ss:$16 sps:$4 sm:$0xff]  }
 0x416   :  { %4849 = vmatprep.subr.bf16.mxu0 %v10267_v57  ;;  %4902 = vmatprep.subr.bf16.mxu1 %v10268_v41  ;;  %v9602_v57 = vld [vmem:[%s14114_s5 + $0x124] ss:$16 sps:$4 sm:$0xff]   ;;  %v9605_v41 = vld [vmem:[%s14114_s5 + $0x12c] ss:$16 sps:$4 sm:$0xff]  }
 0x419   :  { %4850 = vmatpush1.bf16.msra.mxu0 %v10269_v42  ;;  %4903 = vmatpush1.bf16.msra.mxu1 %v10270_v43  ;;  %v9600_v42 = vld [vmem:[%s14114_s5 + $0x120] ss:$16 sps:$4 sm:$0xff]   ;;  %v9603_v43 = vld [vmem:[%s14114_s5 + $0x128] ss:$16 sps:$4 sm:$0xff]  }
 0x41a   :  { %4851 = vmatprep.subr.bf16.mxu0 %v10271_v9  ;;  %4904 = vmatprep.subr.bf16.mxu1 %v10272_v35  ;;  %v9608_v9 = vld [vmem:[%s14114_s5 + $0x144] ss:$16 sps:$4 sm:$0xff]   ;;  %v9611_v35 = vld [vmem:[%s14114_s5 + $0x14c] ss:$16 sps:$4 sm:$0xff]  }
 0x41d   :  { %4852 = vmatpush1.bf16.msra.mxu0 %v10273_v52  ;;  %4905 = vmatpush1.bf16.msra.mxu1 %v10274_v62  ;;  %v9606_v52 = vld [vmem:[%s14114_s5 + $0x140] ss:$16 sps:$4 sm:$0xff]   ;;  %v9609_v62 = vld [vmem:[%s14114_s5 + $0x148] ss:$16 sps:$4 sm:$0xff]  }
 0x41e   :  { %4853 = vmatprep.subr.bf16.mxu0 %v10275_v47  ;;  %4906 = vmatprep.subr.bf16.mxu1 %v10276_v18  ;;  %v9614_v47 = vld [vmem:[%s14114_s5 + $0x164] ss:$16 sps:$4 sm:$0xff]   ;;  %v9617_v18 = vld [vmem:[%s14114_s5 + $0x16c] ss:$16 sps:$4 sm:$0xff]  }
 0x421   :  { %4854 = vmatpush1.bf16.msra.mxu0 %v10277_v15  ;;  %4907 = vmatpush1.bf16.msra.mxu1 %v10278_v26  ;;  %v9620_v15 = vld [vmem:[%s14114_s5 + $0x184] ss:$16 sps:$4 sm:$0xff]   ;;  %v9623_v26 = vld [vmem:[%s14114_s5 + $0x18c] ss:$16 sps:$4 sm:$0xff]  }
 0x422   :  { %5388 = vmatprep.subr.bf16.mxu0 %v9548_v3  ;;  %5429 = vmatprep.subr.bf16.mxu1 %v9551_v31  ;;  %v9612_v3 = vld [vmem:[%s14114_s5 + $0x160] ss:$16 sps:$4 sm:$0xff]   ;;  %v9615_v31 = vld [vmem:[%s14114_s5 + $0x168] ss:$16 sps:$4 sm:$0xff]  }
 0x424   :  { %4856 = vmatmul.mubr.bf16.vlgmr.msra.gmra.mrb[56].mxu0 %v10279_v46  ;;  %4909 = vmatmul.mubr.bf16.vlgmr.msra.gmra.mrb[56].mxu1 %v10279_v46  ;;  %v9624_v46 = vld [vmem:[%s14114_s5 + $0x1a0] ss:$16 sps:$4 sm:$0xff]  }
 0x425   :  { %4865 = vmatprep.mubr.bf16.mxu0 %v4822_v37  ;;  %4918 = vmatprep.mubr.bf16.mxu1 %v4822_v37  ;;  %v9627_v37 = vld [vmem:[%s14114_s5 + $0x1a8] ss:$16 sps:$4 sm:$0xff]  }
 0x426   :  { %5389 = vmatpush1.bf16.msra.mxu0 %v9546_v30  ;;  %5430 = vmatpush1.bf16.msra.mxu1 %v9549_v61  ;;  %v9618_v30 = vld [vmem:[%s14114_s5 + $0x180] ss:$16 sps:$4 sm:$0xff]   ;;  %v9621_v61 = vld [vmem:[%s14114_s5 + $0x188] ss:$16 sps:$4 sm:$0xff]  }
 0x427   :  { %5390 = vmatprep.subr.bf16.mxu0 %v9554_v0  ;;  %5431 = vmatprep.subr.bf16.mxu1 %v9557_v32  ;;  %v9626_v0 = vld [vmem:[%s14114_s5 + $0x1a4] ss:$16 sps:$4 sm:$0xff]   ;;  %v9629_v32 = vld [vmem:[%s14114_s5 + $0x1ac] ss:$16 sps:$4 sm:$0xff]  }
 0x42a   :  { %5391 = vmatpush1.bf16.msra.mxu0 %v9552_v38  ;;  %5432 = vmatpush1.bf16.msra.mxu1 %v9555_v20  ;;  %v9632_v38 = vld [vmem:[%s14114_s5 + $0x1c4] ss:$16 sps:$4 sm:$0xff]   ;;  %v9635_v20 = vld [vmem:[%s14114_s5 + $0x1cc] ss:$16 sps:$4 sm:$0xff]  }
 0x42b   :  { %5392 = vmatprep.subr.bf16.mxu0 %v9560_v48  ;;  %5433 = vmatprep.subr.bf16.mxu1 %v9563_v28  ;;  %v9630_v48 = vld [vmem:[%s14114_s5 + $0x1c0] ss:$16 sps:$4 sm:$0xff]   ;;  %v9633_v28 = vld [vmem:[%s14114_s5 + $0x1c8] ss:$16 sps:$4 sm:$0xff]  }
 0x42c   :  { %4866 = vmatmul.mubr.bf16.gmra.mrb[60].mxu0 %v4821_v49  ;;  %4919 = vmatmul.mubr.bf16.gmra.mrb[60].mxu1 %v4821_v49  ;;  %v9636_v49 = vld [vmem:[%s14114_s5 + $0x1e0] ss:$16 sps:$4 sm:$0xff]  }
 0x42e   :  { %5393 = vmatpush1.bf16.msra.mxu0 %v9558_v12  ;;  %5434 = vmatpush1.bf16.msra.mxu1 %v9561_v58  ;;  %v9638_v12 = vld [vmem:[%s14114_s5 + $0x1e4] ss:$16 sps:$4 sm:$0xff]   ;;  %v9641_v58 = vld [vmem:[%s14114_s5 + $0x1ec] ss:$16 sps:$4 sm:$0xff]  }
 0x42f   :  { %5394 = vmatprep.subr.bf16.mxu0 %v9566_v4  ;;  %5435 = vmatprep.subr.bf16.mxu1 %v9569_v53  ;;  %v9639_v4 = vld [vmem:[%s14114_s5 + $0x1e8] ss:$16 sps:$4 sm:$0xff]   ;;  %v9644_v53 = vld [vmem:[%s14114_s5 + $0x204] ss:$16 sps:$4 sm:$0xff]  }
 0x432   :  { %5395 = vmatpush1.bf16.msra.mxu0 %v9564_v39  ;;  %5436 = vmatpush1.bf16.msra.mxu1 %v9567_v56  ;;  %v9647_v39 = vld [vmem:[%s14114_s5 + $0x20c] ss:$16 sps:$4 sm:$0xff]  }
 0x433   :  { %5396 = vmatprep.subr.bf16.mxu0 %v9572_v7  ;;  %5437 = vmatprep.subr.bf16.mxu1 %v9575_v10 }
 0x436   :  { %5397 = vmatpush1.bf16.msra.mxu0 %v9570_v36  ;;  %5438 = vmatpush1.bf16.msra.mxu1 %v9573_v8 }
 0x437   :  { %5398 = vmatprep.subr.bf16.mxu0 %v9578_v24  ;;  %5439 = vmatprep.subr.bf16.mxu1 %v9581_v21 }
 0x43a   :  { %5399 = vmatpush1.bf16.msra.mxu0 %v9576_v13  ;;  %5440 = vmatpush1.bf16.msra.mxu1 %v9579_v63 }
 0x43b   :  { %5400 = vmatprep.subr.bf16.mxu0 %v9584_v1  ;;  %5441 = vmatprep.subr.bf16.mxu1 %v9587_v29 }
 0x43e   :  { %5401 = vmatpush1.bf16.msra.mxu0 %v9582_v44  ;;  %5442 = vmatpush1.bf16.msra.mxu1 %v9585_v51 }
 0x43f   :  { %5402 = vmatprep.subr.bf16.mxu0 %v9590_v2  ;;  %5443 = vmatprep.subr.bf16.mxu1 %v9593_v59 }
 0x442   :  { %5403 = vmatpush1.bf16.msra.mxu0 %v9588_v27  ;;  %5444 = vmatpush1.bf16.msra.mxu1 %v9591_v5 }
 0x443   :  { %5404 = vmatprep.subr.bf16.mxu0 %v9596_v6  ;;  %5445 = vmatprep.subr.bf16.mxu1 %v9599_v33 }
 0x446   :  { %5405 = vmatpush1.bf16.msra.mxu0 %v9594_v19  ;;  %5446 = vmatpush1.bf16.msra.mxu1 %v9597_v40 }
 0x447   :  { %5406 = vmatprep.subr.bf16.mxu0 %v9602_v57  ;;  %5447 = vmatprep.subr.bf16.mxu1 %v9605_v41 }
 0x44a   :  { %5407 = vmatpush1.bf16.msra.mxu0 %v9600_v42  ;;  %5448 = vmatpush1.bf16.msra.mxu1 %v9603_v43 }
 0x44b   :  { %5408 = vmatprep.subr.bf16.mxu0 %v9608_v9  ;;  %5449 = vmatprep.subr.bf16.mxu1 %v9611_v35 }
 0x44e   :  { %5409 = vmatpush1.bf16.msra.mxu0 %v9606_v52  ;;  %5450 = vmatpush1.bf16.msra.mxu1 %v9609_v62 }
 0x44f   :  { %5410 = vmatprep.subr.bf16.mxu0 %v9614_v47  ;;  %5451 = vmatprep.subr.bf16.mxu1 %v9617_v18 }
 0x452   :  { %5411 = vmatpush1.bf16.msra.mxu0 %v9612_v3  ;;  %5452 = vmatpush1.bf16.msra.mxu1 %v9615_v31 }
 0x453   :  { %5412 = vmatprep.subr.bf16.mxu0 %v9620_v15  ;;  %5453 = vmatprep.subr.bf16.mxu1 %v9623_v26 }
 0x456   :  { %5413 = vmatpush1.bf16.msra.mxu0 %v9618_v30  ;;  %5454 = vmatpush1.bf16.msra.mxu1 %v9621_v61 }
 0x457   :  { %5414 = vmatprep.subr.bf16.mxu0 %v9626_v0  ;;  %5455 = vmatprep.subr.bf16.mxu1 %v9629_v32 }
 0x45a   :  { %5415 = vmatpush1.bf16.msra.mxu0 %v9624_v46  ;;  %5456 = vmatpush1.bf16.msra.mxu1 %v9627_v37 }
 0x45b   :  { %5416 = vmatprep.subr.bf16.mxu0 %v9632_v38  ;;  %5457 = vmatprep.subr.bf16.mxu1 %v9635_v20 }
 0x45e   :  { %5417 = vmatpush1.bf16.msra.mxu0 %v9630_v48  ;;  %5458 = vmatpush1.bf16.msra.mxu1 %v9633_v28 }
 0x45f   :  { %5418 = vmatprep.subr.bf16.mxu0 %v9638_v12  ;;  %5459 = vmatprep.subr.bf16.mxu1 %v9641_v58 }
 0x462   :  { %5419 = vmatpush1.bf16.msra.mxu0 %v9636_v49  ;;  %5460 = vmatpush1.bf16.msra.mxu1 %v9639_v4 }
 0x463   :  { %5888 = vmatprep.subr.bf16.mxu0 %v9644_v53  ;;  %5929 = vmatprep.subr.bf16.mxu1 %v9647_v39 }
 0x4f7   :  { %v4857_v56 = vpop.f32.mrb[56].mxu0  ;;  %v4910_v7 = vpop.f32.mrb[56].mxu1 }
 0x4f8   :  { %v4945_v10 = vadd.f32 %v4857_v56, %v12837_v17  ;;  %v4961_v36 = vadd.f32 %v4910_v7, %v12837_v17  ;;  %v4859_v8 = vpop.f32.mrb[57].mxu0  ;;  %v4912_v24 = vpop.f32.mrb[57].mxu1 }
 0x4f9   :  { %v4946_v21 = vadd.f32 %v4859_v8, %v12842_v11  ;;  %v4962_v13 = vadd.f32 %v4912_v24, %v12842_v11  ;;  %v4861_v63 = vpop.f32.mrb[58].mxu0  ;;  %v4914_v1 = vpop.f32.mrb[58].mxu1 }
 0x4fa   :  { %v4953_v29 = vmax.f32 %v4945_v10, 0.0  ;;  %v4969_v44 = vmax.f32 %v4961_v36, 0.0  ;;  %v4947_v51 = vadd.f32 %v4861_v63, %v12837_v17  ;;  %v4963_v2 = vadd.f32 %v4914_v1, %v12837_v17  ;;  %v4863_v59 = vpop.f32.mrb[59].mxu0  ;;  %v4916_v27 = vpop.f32.mrb[59].mxu1 }
 0x4fb   :  { %v4954_v5 = vmax.f32 %v4946_v21, 0.0  ;;  %v4970_v6 = vmax.f32 %v4962_v13, 0.0  ;;  %v4948_v33 = vadd.f32 %v4863_v59, %v12842_v11  ;;  %v4964_v19 = vadd.f32 %v4916_v27, %v12842_v11  ;;  %v9653_v59 = vld [vmem:[%s14114_s5 + $0x22c] ss:$16 sps:$4 sm:$0xff]   ;;  %v9648_v27 = vld [vmem:[%s14114_s5 + $0x220] ss:$16 sps:$4 sm:$0xff]  }
 0x4fc   :  { %v4977_v40 = vmax.f32 %v4953_v29, %v4969_v44  ;;  %v4955_v57 = vmax.f32 %v4947_v51, 0.0  ;;  %v4971_v41 = vmax.f32 %v4963_v2, 0.0  ;;  %v9645_v44 = vld [vmem:[%s14114_s5 + $0x208] ss:$16 sps:$4 sm:$0xff]  }
 0x4fd   :  { %v4978_v42 = vmax.f32 %v4954_v5, %v4970_v6  ;;  %v4956_v43 = vmax.f32 %v4948_v33, 0.0  ;;  %v4972_v9 = vmax.f32 %v4964_v19, 0.0  ;;  %v9651_v5 = vld [vmem:[%s14114_s5 + $0x228] ss:$16 sps:$4 sm:$0xff]   ;;  %v9656_v6 = vld [vmem:[%s14114_s5 + $0x244] ss:$16 sps:$4 sm:$0xff]  }
 0x4fe   :  { %v4985_v35 = vmax.f32 %v12862_v50, %v4977_v40  ;;  %v4979_v52 = vmax.f32 %v4955_v57, %v4971_v41  ;;  %v9659_v33 = vld [vmem:[%s14114_s5 + $0x24c] ss:$16 sps:$4 sm:$0xff]   ;;  %v9654_v19 = vld [vmem:[%s14114_s5 + $0x240] ss:$16 sps:$4 sm:$0xff]   ;;  %v9657_v40 = vld [vmem:[%s14114_s5 + $0x248] ss:$16 sps:$4 sm:$0xff]  }
 0x4ff   :  { %v4986_v62 = vmax.f32 %v12864_v55, %v4978_v42  ;;  %v4980_v47 = vmax.f32 %v4956_v43, %v4972_v9  ;;  %v4867_v18 = vpop.f32.mrb[60].mxu0  ;;  %v4920_v3 = vpop.f32.mrb[60].mxu1  ;;  %v9662_v57 = vld [vmem:[%s14114_s5 + $0x264] ss:$16 sps:$4 sm:$0xff]   ;;  %v9665_v41 = vld [vmem:[%s14114_s5 + $0x26c] ss:$16 sps:$4 sm:$0xff]  }
 0x500   :  { %v4987_v31 = vmax.f32 %v12872_v14, %v4979_v52  ;;  %v4949_v15 = vadd.f32 %v4867_v18, %v12837_v17  ;;  %v4965_v26 = vadd.f32 %v4920_v3, %v12837_v17  ;;  %v4869_v30 = vpop.f32.mrb[61].mxu0  ;;  %v4922_v61 = vpop.f32.mrb[61].mxu1  ;;  %v9660_v42 = vld [vmem:[%s14114_s5 + $0x260] ss:$16 sps:$4 sm:$0xff]   ;;  %v9663_v43 = vld [vmem:[%s14114_s5 + $0x268] ss:$16 sps:$4 sm:$0xff]  }
 0x501   :  { %v4988_v0 = vmax.f32 %v12880_v60, %v4980_v47  ;;  %v4950_v32 = vadd.f32 %v4869_v30, %v12842_v11  ;;  %v4966_v50 = vadd.f32 %v4922_v61, %v12842_v11  ;;  %v4871_v46 = vpop.f32.mrb[62].mxu0  ;;  %v4924_v37 = vpop.f32.mrb[62].mxu1  ;;  %v9668_v9 = vld [vmem:[%s14114_s5 + $0x284] ss:$16 sps:$4 sm:$0xff]   ;;  %v9666_v52 = vld [vmem:[%s14114_s5 + $0x280] ss:$16 sps:$4 sm:$0xff]  }
 0x502   :  { %v4993_v55 = vpack.c.bf16 %v4987_v31, %v4985_v35  ;;  %v4957_v38 = vmax.f32 %v4949_v15, 0.0  ;;  %v4973_v20 = vmax.f32 %v4965_v26, 0.0  ;;  %v4951_v48 = vadd.f32 %v4871_v46, %v12837_v17  ;;  %v4873_v14 = vpop.f32.mrb[63].mxu0  ;;  %v4926_v28 = vpop.f32.mrb[63].mxu1  ;;  %v9671_v35 = vld [vmem:[%s14114_s5 + $0x28c] ss:$16 sps:$4 sm:$0xff]  }
 0x503   :  { %v4994_v12 = vpack.c.bf16 %v4988_v0, %v4986_v62  ;;  %v4958_v58 = vmax.f32 %v4950_v32, 0.0  ;;  %v4974_v49 = vmax.f32 %v4966_v50, 0.0  ;;  %v4967_v4 = vadd.f32 %v4924_v37, %v12837_v17  ;;  %v9669_v62 = vld [vmem:[%s14114_s5 + $0x288] ss:$16 sps:$4 sm:$0xff]   ;;  %v9674_v47 = vld [vmem:[%s14114_s5 + $0x2a4] ss:$16 sps:$4 sm:$0xff]  }
 0x504   :  { %4997 = vst [vmem:[#allocation3] sm:$0xff] %v4993_v55  ;;  %v4981_v60 = vmax.f32 %v4957_v38, %v4973_v20  ;;  %v4959_v53 = vmax.f32 %v4951_v48, 0.0  ;;  %v4952_v39 = vadd.f32 %v4873_v14, %v12842_v11  ;;  %v4968_v56 = vadd.f32 %v4926_v28, %v12842_v11  ;;  %v9642_v11 = vld [vmem:[%s14114_s5 + $0x200] ss:$16 sps:$4 sm:$0xff]   ;;  %v9677_v18 = vld [vmem:[%s14114_s5 + $0x2ac] ss:$16 sps:$4 sm:$0xff]  }
 0x505   :  { %4998 = vst [vmem:[#allocation3 + $0x8] sm:$0xff] %v4994_v12  ;;  %v4982_v7 = vmax.f32 %v4958_v58, %v4974_v49  ;;  %v4975_v10 = vmax.f32 %v4967_v4, 0.0  ;;  %v9672_v3 = vld [vmem:[%s14114_s5 + $0x2a0] ss:$16 sps:$4 sm:$0xff]   ;;  %v9675_v31 = vld [vmem:[%s14114_s5 + $0x2a8] ss:$16 sps:$4 sm:$0xff]  }
 0x506   :  { %v4989_v36 = vmax.f32 %v12902_v34, %v4981_v60  ;;  %v4960_v8 = vmax.f32 %v4952_v39, 0.0  ;;  %v4976_v24 = vmax.f32 %v4968_v56, 0.0  ;;  %v9680_v15 = vld [vmem:[%s14114_s5 + $0x2c4] ss:$16 sps:$4 sm:$0xff]   ;;  %v9683_v26 = vld [vmem:[%s14114_s5 + $0x2cc] ss:$16 sps:$4 sm:$0xff]  }
 0x507   :  { %v4990_v21 = vmax.f32 %v12904_v23, %v4982_v7  ;;  %v4983_v13 = vmax.f32 %v4959_v53, %v4975_v10  ;;  %v9650_v23 = vld [vmem:[%s14114_s5 + $0x224] ss:$16 sps:$4 sm:$0xff]   ;;  %v9678_v30 = vld [vmem:[%s14114_s5 + $0x2c0] ss:$16 sps:$4 sm:$0xff]   ;;  %v9681_v61 = vld [vmem:[%s14114_s5 + $0x2c8] ss:$16 sps:$4 sm:$0xff]  }
 0x508   :  { %v4984_v63 = vmax.f32 %v4960_v8, %v4976_v24  ;;  %v9686_v0 = vld [vmem:[%s14114_s5 + $0x2e4] ss:$16 sps:$4 sm:$0xff]   ;;  %v9689_v32 = vld [vmem:[%s14114_s5 + $0x2ec] ss:$16 sps:$4 sm:$0xff]   ;;  %v9684_v50 = vld [vmem:[%s14114_s5 + $0x2e0] ss:$16 sps:$4 sm:$0xff]  }
 0x509   :  { %v4991_v17 = vmax.f32 %v12912_v54, %v4983_v13  ;;  %v9687_v46 = vld [vmem:[%s14114_s5 + $0x2e8] ss:$16 sps:$4 sm:$0xff]   ;;  %v9692_v37 = vld [vmem:[%s14114_s5 + $0x304] ss:$16 sps:$4 sm:$0xff]   ;;  %v9695_v55 = vld [vmem:[%s14114_s5 + $0x30c] ss:$16 sps:$4 sm:$0xff]  }
 0x50a   :  { %v4992_v1 = vmax.f32 %v12920_v45, %v4984_v63  ;;  %v9690_v38 = vld [vmem:[%s14114_s5 + $0x300] ss:$16 sps:$4 sm:$0xff]   ;;  %v9693_v20 = vld [vmem:[%s14114_s5 + $0x308] ss:$16 sps:$4 sm:$0xff]   ;;  %v9698_v48 = vld [vmem:[%s14114_s5 + $0x324] ss:$16 sps:$4 sm:$0xff]  }
 0x50b   :  { %v4995_v29 = vpack.c.bf16 %v4991_v17, %v4989_v36  ;;  %v5002_v54 = vld [vmem:[#allocation3] sm:$0xf]  ;;  %v9701_v14 = vld [vmem:[%s14114_s5 + $0x32c] ss:$16 sps:$4 sm:$0xff]   ;;  %v9699_v12 = vld [vmem:[%s14114_s5 + $0x328] ss:$16 sps:$4 sm:$0xff]  }
 0x50c   :  { %v4996_v34 = vpack.c.bf16 %v4992_v1, %v4990_v21  ;;  %v5003_v51 = vld [vmem:[#allocation3 + $0x8] sm:$0xf]  ;;  %v5496_v2 = vld [vmem:[#allocation3 + $0x8] sm:$0xf0]  ;;  %v9696_v28 = vld [vmem:[%s14114_s5 + $0x320] ss:$16 sps:$4 sm:$0xff]  }
 0x50d   :  { %4999 = vst [vmem:[#allocation3 + $0x10] sm:$0xff] %v4995_v29  ;;  %5420 = vmatprep.mubr.bf16.mxu0 %v5003_v51  ;;  %5461 = vmatprep.mubr.bf16.mxu1 %v5003_v51  ;;  %v5565_v45 = vrot.slane %v5496_v2, 4  ;;  %v9704_v58 = vld [vmem:[%s14114_s5 + $0x344] ss:$16 sps:$4 sm:$0xff]   ;;  %v9707_v49 = vld [vmem:[%s14114_s5 + $0x34c] ss:$16 sps:$4 sm:$0xff]  }
 0x50e   :  { %5000 = vst [vmem:[#allocation3 + $0x18] sm:$0xff] %v4996_v34  ;;  %5421 = vmatmul.mubr.bf16.vlgmr.msra.gmra.mrb[64].mxu0 %v5002_v54  ;;  %5462 = vmatmul.mubr.bf16.vlgmr.msra.gmra.mrb[64].mxu1 %v5002_v54  ;;  %v9702_v4 = vld [vmem:[%s14114_s5 + $0x340] ss:$16 sps:$4 sm:$0xff]   ;;  %v9705_v60 = vld [vmem:[%s14114_s5 + $0x348] ss:$16 sps:$4 sm:$0xff]  }
 0x50f   :  { %5889 = vmatpush1.bf16.msra.mxu0 %v9642_v11  ;;  %5930 = vmatpush1.bf16.msra.mxu1 %v9645_v44  ;;  %v9710_v53 = vld [vmem:[%s14114_s5 + $0x364] ss:$16 sps:$4 sm:$0xff]   ;;  %v9713_v39 = vld [vmem:[%s14114_s5 + $0x36c] ss:$16 sps:$4 sm:$0xff]   ;;  %v9708_v56 = vld [vmem:[%s14114_s5 + $0x360] ss:$16 sps:$4 sm:$0xff]  }
 0x510   :  { %5920 = vmatprep.mubr.bf16.mxu0 %v5565_v45  ;;  %5961 = vmatprep.mubr.bf16.mxu1 %v5565_v45  ;;  %v9711_v7 = vld [vmem:[%s14114_s5 + $0x368] ss:$16 sps:$4 sm:$0xff]   ;;  %v9716_v10 = vld [vmem:[%s14114_s5 + $0x384] ss:$16 sps:$4 sm:$0xff]   ;;  %v9719_v36 = vld [vmem:[%s14114_s5 + $0x38c] ss:$16 sps:$4 sm:$0xff]  }
 0x511   :  { %5890 = vmatprep.subr.bf16.mxu0 %v9650_v23  ;;  %5931 = vmatprep.subr.bf16.mxu1 %v9653_v59  ;;  %v9714_v8 = vld [vmem:[%s14114_s5 + $0x380] ss:$16 sps:$4 sm:$0xff]   ;;  %v9717_v24 = vld [vmem:[%s14114_s5 + $0x388] ss:$16 sps:$4 sm:$0xff]   ;;  %v9722_v21 = vld [vmem:[%s14114_s5 + $0x3a4] ss:$16 sps:$4 sm:$0xff]  }
 0x512   :  { %v9725_v13 = vld [vmem:[%s14114_s5 + $0x3ac] ss:$16 sps:$4 sm:$0xff]   ;;  %v9720_v63 = vld [vmem:[%s14114_s5 + $0x3a0] ss:$16 sps:$4 sm:$0xff]   ;;  %v9723_v17 = vld [vmem:[%s14114_s5 + $0x3a8] ss:$16 sps:$4 sm:$0xff]  }
 0x513   :  { %5891 = vmatpush1.bf16.msra.mxu0 %v9648_v27  ;;  %5932 = vmatpush1.bf16.msra.mxu1 %v9651_v5  ;;  %v9728_v1 = vld [vmem:[%s14114_s5 + $0x3c4] ss:$16 sps:$4 sm:$0xff]   ;;  %v9731_v29 = vld [vmem:[%s14114_s5 + $0x3cc] ss:$16 sps:$4 sm:$0xff]   ;;  %v9726_v11 = vld [vmem:[%s14114_s5 + $0x3c0] ss:$16 sps:$4 sm:$0xff]  }
 0x514   :  { %5892 = vmatprep.subr.bf16.mxu0 %v9656_v6  ;;  %5933 = vmatprep.subr.bf16.mxu1 %v9659_v33  ;;  %v9729_v44 = vld [vmem:[%s14114_s5 + $0x3c8] ss:$16 sps:$4 sm:$0xff]   ;;  %v9734_v34 = vld [vmem:[%s14114_s5 + $0x3e4] ss:$16 sps:$4 sm:$0xff]   ;;  %v9737_v51 = vld [vmem:[%s14114_s5 + $0x3ec] ss:$16 sps:$4 sm:$0xff]  }
 0x515   :  { %v9732_v2 = vld [vmem:[%s14114_s5 + $0x3e0] ss:$16 sps:$4 sm:$0xff]   ;;  %v9735_v23 = vld [vmem:[%s14114_s5 + $0x3e8] ss:$16 sps:$4 sm:$0xff]   ;;  %v9740_v54 = vld [vmem:[%s14114_s5 + $0x404] ss:$16 sps:$4 sm:$0xff]  }
 0x516   :  { %v9743_v45 = vld [vmem:[%s14114_s5 + $0x40c] ss:$16 sps:$4 sm:$0xff]   ;;  %v5495_v59 = vld [vmem:[#allocation3] sm:$0xf0]  ;;  %v9738_v27 = vld [vmem:[%s14114_s5 + $0x400] ss:$16 sps:$4 sm:$0xff]  }
 0x517   :  { %5893 = vmatpush1.bf16.msra.mxu0 %v9654_v19  ;;  %5934 = vmatpush1.bf16.msra.mxu1 %v9657_v40  ;;  %v5564_v5 = vrot.slane %v5495_v59, 4  ;;  %v9741_v6 = vld [vmem:[%s14114_s5 + $0x408] ss:$16 sps:$4 sm:$0xff]   ;;  %v9746_v33 = vld [vmem:[%s14114_s5 + $0x424] ss:$16 sps:$4 sm:$0xff]  }
 0x518   :  { %5894 = vmatprep.subr.bf16.mxu0 %v9662_v57  ;;  %5935 = vmatprep.subr.bf16.mxu1 %v9665_v41  ;;  %v9749_v19 = vld [vmem:[%s14114_s5 + $0x42c] ss:$16 sps:$4 sm:$0xff]   ;;  %v5975_v40 = vld [vmem:[#allocation3 + $0x18] sm:$0xf]  ;;  %v9744_v57 = vld [vmem:[%s14114_s5 + $0x420] ss:$16 sps:$4 sm:$0xff]  }
 0x519   :  { %v9747_v41 = vld [vmem:[%s14114_s5 + $0x428] ss:$16 sps:$4 sm:$0xff]   ;;  %v9830_v59 = vld [vmem:[%s14114_s5 + $0x5e4] ss:$16 sps:$4 sm:$0xff]  }
 0x51b   :  { %5895 = vmatpush1.bf16.msra.mxu0 %v9660_v42  ;;  %5936 = vmatpush1.bf16.msra.mxu1 %v9663_v43  ;;  %v9752_v42 = vld [vmem:[%s14114_s5 + $0x444] ss:$16 sps:$4 sm:$0xff]   ;;  %v9755_v43 = vld [vmem:[%s14114_s5 + $0x44c] ss:$16 sps:$4 sm:$0xff]  }
 0x51c   :  { %5896 = vmatprep.subr.bf16.mxu0 %v9668_v9  ;;  %5937 = vmatprep.subr.bf16.mxu1 %v9671_v35  ;;  %v9750_v9 = vld [vmem:[%s14114_s5 + $0x440] ss:$16 sps:$4 sm:$0xff]   ;;  %v9753_v35 = vld [vmem:[%s14114_s5 + $0x448] ss:$16 sps:$4 sm:$0xff]  }
 0x51f   :  { %5897 = vmatpush1.bf16.msra.mxu0 %v9666_v52  ;;  %5938 = vmatpush1.bf16.msra.mxu1 %v9669_v62  ;;  %v9758_v52 = vld [vmem:[%s14114_s5 + $0x464] ss:$16 sps:$4 sm:$0xff]   ;;  %v9761_v62 = vld [vmem:[%s14114_s5 + $0x46c] ss:$16 sps:$4 sm:$0xff]  }
 0x520   :  { %5898 = vmatprep.subr.bf16.mxu0 %v9674_v47  ;;  %5939 = vmatprep.subr.bf16.mxu1 %v9677_v18  ;;  %v9756_v47 = vld [vmem:[%s14114_s5 + $0x460] ss:$16 sps:$4 sm:$0xff]   ;;  %v9759_v18 = vld [vmem:[%s14114_s5 + $0x468] ss:$16 sps:$4 sm:$0xff]  }
 0x523   :  { %5899 = vmatpush1.bf16.msra.mxu0 %v9672_v3  ;;  %5940 = vmatpush1.bf16.msra.mxu1 %v9675_v31  ;;  %v9764_v3 = vld [vmem:[%s14114_s5 + $0x484] ss:$16 sps:$4 sm:$0xff]   ;;  %v9767_v31 = vld [vmem:[%s14114_s5 + $0x48c] ss:$16 sps:$4 sm:$0xff]  }
 0x524   :  { %5900 = vmatprep.subr.bf16.mxu0 %v9680_v15  ;;  %5941 = vmatprep.subr.bf16.mxu1 %v9683_v26  ;;  %v9762_v15 = vld [vmem:[%s14114_s5 + $0x480] ss:$16 sps:$4 sm:$0xff]   ;;  %v9765_v26 = vld [vmem:[%s14114_s5 + $0x488] ss:$16 sps:$4 sm:$0xff]  }
 0x527   :  { %5901 = vmatpush1.bf16.msra.mxu0 %v9678_v30  ;;  %5942 = vmatpush1.bf16.msra.mxu1 %v9681_v61  ;;  %v9770_v30 = vld [vmem:[%s14114_s5 + $0x4a4] ss:$16 sps:$4 sm:$0xff]   ;;  %v9773_v61 = vld [vmem:[%s14114_s5 + $0x4ac] ss:$16 sps:$4 sm:$0xff]  }
 0x528   :  { %5902 = vmatprep.subr.bf16.mxu0 %v9686_v0  ;;  %5943 = vmatprep.subr.bf16.mxu1 %v9689_v32  ;;  %v9768_v0 = vld [vmem:[%s14114_s5 + $0x4a0] ss:$16 sps:$4 sm:$0xff]   ;;  %v9771_v32 = vld [vmem:[%s14114_s5 + $0x4a8] ss:$16 sps:$4 sm:$0xff]  }
 0x52b   :  { %5903 = vmatpush1.bf16.msra.mxu0 %v9684_v50  ;;  %5944 = vmatpush1.bf16.msra.mxu1 %v9687_v46  ;;  %v9776_v50 = vld [vmem:[%s14114_s5 + $0x4c4] ss:$16 sps:$4 sm:$0xff]   ;;  %v9779_v46 = vld [vmem:[%s14114_s5 + $0x4cc] ss:$16 sps:$4 sm:$0xff]  }
 0x52c   :  { %5904 = vmatprep.subr.bf16.mxu0 %v9692_v37  ;;  %5945 = vmatprep.subr.bf16.mxu1 %v9695_v55  ;;  %v9774_v37 = vld [vmem:[%s14114_s5 + $0x4c0] ss:$16 sps:$4 sm:$0xff]   ;;  %v9777_v55 = vld [vmem:[%s14114_s5 + $0x4c8] ss:$16 sps:$4 sm:$0xff]  }
 0x52f   :  { %5905 = vmatpush1.bf16.msra.mxu0 %v9690_v38  ;;  %5946 = vmatpush1.bf16.msra.mxu1 %v9693_v20  ;;  %v9782_v38 = vld [vmem:[%s14114_s5 + $0x4e4] ss:$16 sps:$4 sm:$0xff]   ;;  %v9780_v20 = vld [vmem:[%s14114_s5 + $0x4e0] ss:$16 sps:$4 sm:$0xff]  }
 0x530   :  { %5906 = vmatprep.subr.bf16.mxu0 %v9698_v48  ;;  %5947 = vmatprep.subr.bf16.mxu1 %v9701_v14  ;;  %v9785_v48 = vld [vmem:[%s14114_s5 + $0x4ec] ss:$16 sps:$4 sm:$0xff]   ;;  %v9783_v14 = vld [vmem:[%s14114_s5 + $0x4e8] ss:$16 sps:$4 sm:$0xff]  }
 0x533   :  { %5907 = vmatpush1.bf16.msra.mxu0 %v9696_v28  ;;  %5948 = vmatpush1.bf16.msra.mxu1 %v9699_v12  ;;  %v9788_v28 = vld [vmem:[%s14114_s5 + $0x504] ss:$16 sps:$4 sm:$0xff]   ;;  %v9791_v12 = vld [vmem:[%s14114_s5 + $0x50c] ss:$16 sps:$4 sm:$0xff]  }
 0x534   :  { %5908 = vmatprep.subr.bf16.mxu0 %v9704_v58  ;;  %5949 = vmatprep.subr.bf16.mxu1 %v9707_v49  ;;  %v9786_v58 = vld [vmem:[%s14114_s5 + $0x500] ss:$16 sps:$4 sm:$0xff]   ;;  %v9789_v49 = vld [vmem:[%s14114_s5 + $0x508] ss:$16 sps:$4 sm:$0xff]  }
 0x537   :  { %5909 = vmatpush1.bf16.msra.mxu0 %v9702_v4  ;;  %5950 = vmatpush1.bf16.msra.mxu1 %v9705_v60  ;;  %v9794_v4 = vld [vmem:[%s14114_s5 + $0x524] ss:$16 sps:$4 sm:$0xff]   ;;  %v9797_v60 = vld [vmem:[%s14114_s5 + $0x52c] ss:$16 sps:$4 sm:$0xff]  }
 0x538   :  { %5910 = vmatprep.subr.bf16.mxu0 %v9710_v53  ;;  %5951 = vmatprep.subr.bf16.mxu1 %v9713_v39  ;;  %v9792_v53 = vld [vmem:[%s14114_s5 + $0x520] ss:$16 sps:$4 sm:$0xff]   ;;  %v9795_v39 = vld [vmem:[%s14114_s5 + $0x528] ss:$16 sps:$4 sm:$0xff]  }
 0x53b   :  { %5911 = vmatpush1.bf16.msra.mxu0 %v9708_v56  ;;  %5952 = vmatpush1.bf16.msra.mxu1 %v9711_v7  ;;  %v9800_v56 = vld [vmem:[%s14114_s5 + $0x544] ss:$16 sps:$4 sm:$0xff]   ;;  %v9803_v7 = vld [vmem:[%s14114_s5 + $0x54c] ss:$16 sps:$4 sm:$0xff]  }
 0x53c   :  { %5912 = vmatprep.subr.bf16.mxu0 %v9716_v10  ;;  %5953 = vmatprep.subr.bf16.mxu1 %v9719_v36  ;;  %v9798_v10 = vld [vmem:[%s14114_s5 + $0x540] ss:$16 sps:$4 sm:$0xff]   ;;  %v9801_v36 = vld [vmem:[%s14114_s5 + $0x548] ss:$16 sps:$4 sm:$0xff]  }
 0x53f   :  { %5913 = vmatpush1.bf16.msra.mxu0 %v9714_v8  ;;  %5954 = vmatpush1.bf16.msra.mxu1 %v9717_v24  ;;  %v9806_v8 = vld [vmem:[%s14114_s5 + $0x564] ss:$16 sps:$4 sm:$0xff]   ;;  %v9809_v24 = vld [vmem:[%s14114_s5 + $0x56c] ss:$16 sps:$4 sm:$0xff]  }
 0x540   :  { %5914 = vmatprep.subr.bf16.mxu0 %v9722_v21  ;;  %5955 = vmatprep.subr.bf16.mxu1 %v9725_v13  ;;  %v9804_v21 = vld [vmem:[%s14114_s5 + $0x560] ss:$16 sps:$4 sm:$0xff]   ;;  %v9807_v13 = vld [vmem:[%s14114_s5 + $0x568] ss:$16 sps:$4 sm:$0xff]  }
 0x543   :  { %5915 = vmatpush1.bf16.msra.mxu0 %v9720_v63  ;;  %5956 = vmatpush1.bf16.msra.mxu1 %v9723_v17  ;;  %v9812_v63 = vld [vmem:[%s14114_s5 + $0x584] ss:$16 sps:$4 sm:$0xff]   ;;  %v9815_v17 = vld [vmem:[%s14114_s5 + $0x58c] ss:$16 sps:$4 sm:$0xff]  }
 0x544   :  { %5916 = vmatprep.subr.bf16.mxu0 %v9728_v1  ;;  %5957 = vmatprep.subr.bf16.mxu1 %v9731_v29  ;;  %v9810_v1 = vld [vmem:[%s14114_s5 + $0x580] ss:$16 sps:$4 sm:$0xff]   ;;  %v9813_v29 = vld [vmem:[%s14114_s5 + $0x588] ss:$16 sps:$4 sm:$0xff]  }
 0x547   :  { %5917 = vmatpush1.bf16.msra.mxu0 %v9726_v11  ;;  %5958 = vmatpush1.bf16.msra.mxu1 %v9729_v44  ;;  %v9818_v11 = vld [vmem:[%s14114_s5 + $0x5a4] ss:$16 sps:$4 sm:$0xff]   ;;  %v9821_v44 = vld [vmem:[%s14114_s5 + $0x5ac] ss:$16 sps:$4 sm:$0xff]  }
 0x548   :  { %5918 = vmatprep.subr.bf16.mxu0 %v9734_v34  ;;  %5959 = vmatprep.subr.bf16.mxu1 %v9737_v51  ;;  %v9816_v34 = vld [vmem:[%s14114_s5 + $0x5a0] ss:$16 sps:$4 sm:$0xff]   ;;  %v9819_v51 = vld [vmem:[%s14114_s5 + $0x5a8] ss:$16 sps:$4 sm:$0xff]  }
 0x54b   :  { %5919 = vmatpush1.bf16.msra.mxu0 %v9732_v2  ;;  %5960 = vmatpush1.bf16.msra.mxu1 %v9735_v23  ;;  %v9824_v2 = vld [vmem:[%s14114_s5 + $0x5c4] ss:$16 sps:$4 sm:$0xff]   ;;  %v9827_v23 = vld [vmem:[%s14114_s5 + $0x5cc] ss:$16 sps:$4 sm:$0xff]  }
 0x54c   :  { %6361 = vmatprep.subr.bf16.mxu0 %v9740_v54  ;;  %6402 = vmatprep.subr.bf16.mxu1 %v9743_v45  ;;  %v9822_v54 = vld [vmem:[%s14114_s5 + $0x5c0] ss:$16 sps:$4 sm:$0xff]   ;;  %v9825_v45 = vld [vmem:[%s14114_s5 + $0x5c8] ss:$16 sps:$4 sm:$0xff]  }
 0x54e   :  { %5921 = vmatmul.mubr.bf16.vlgmr.msra.gmra.mrb[64].mxu0 %v5564_v5  ;;  %5962 = vmatmul.mubr.bf16.vlgmr.msra.gmra.mrb[64].mxu1 %v5564_v5  ;;  %v9828_v5 = vld [vmem:[%s14114_s5 + $0x5e0] ss:$16 sps:$4 sm:$0xff]  }
 0x54f   :  { %6362 = vmatpush1.bf16.msra.mxu0 %v9738_v27  ;;  %6393 = vmatprep.mubr.bf16.mxu0 %v5975_v40  ;;  %v9833_v27 = vld [vmem:[%s14114_s5 + $0x5ec] ss:$16 sps:$4 sm:$0xff]  }
 0x550   :  { %6403 = vmatpush1.bf16.msra.mxu1 %v9741_v6  ;;  %6434 = vmatprep.mubr.bf16.mxu1 %v5975_v40  ;;  %v9831_v6 = vld [vmem:[%s14114_s5 + $0x5e8] ss:$16 sps:$4 sm:$0xff]   ;;  %v9834_v40 = vld [vmem:[%s14114_s5 + $0x600] ss:$16 sps:$4 sm:$0xff]  }
 0x551   :  { %6363 = vmatprep.subr.bf16.mxu0 %v9746_v33  ;;  %6404 = vmatprep.subr.bf16.mxu1 %v9749_v19  ;;  %v9836_v33 = vld [vmem:[%s14114_s5 + $0x604] ss:$16 sps:$4 sm:$0xff]   ;;  %v9839_v19 = vld [vmem:[%s14114_s5 + $0x60c] ss:$16 sps:$4 sm:$0xff]  }
 0x553   :  { %6364 = vmatpush1.bf16.msra.mxu0 %v9744_v57  ;;  %v6448_v57 = vld [vmem:[#allocation3 + $0x18] sm:$0xf0] }
 0x554   :  { %6405 = vmatpush1.bf16.msra.mxu1 %v9747_v41  ;;  %6365 = vmatprep.subr.bf16.mxu0 %v9752_v42  ;;  %v9837_v41 = vld [vmem:[%s14114_s5 + $0x608] ss:$16 sps:$4 sm:$0xff]   ;;  %v5974_v42 = vld [vmem:[#allocation3 + $0x10] sm:$0xf] }
 0x555   :  { %6406 = vmatprep.subr.bf16.mxu1 %v9755_v43  ;;  %v9842_v43 = vld [vmem:[%s14114_s5 + $0x624] ss:$16 sps:$4 sm:$0xff]  }
 0x557   :  { %6366 = vmatpush1.bf16.msra.mxu0 %v9750_v9  ;;  %v6517_v9 = vrot.slane %v6448_v57, 4  ;;  %v9929_v57 = vld [vmem:[%s14114_s5 + $0x7ec] ss:$16 sps:$4 sm:$0xff]  }
 0x558   :  { %6407 = vmatpush1.bf16.msra.mxu1 %v9753_v35  ;;  %6367 = vmatprep.subr.bf16.mxu0 %v9758_v52  ;;  %v9845_v35 = vld [vmem:[%s14114_s5 + $0x62c] ss:$16 sps:$4 sm:$0xff]   ;;  %v9840_v52 = vld [vmem:[%s14114_s5 + $0x620] ss:$16 sps:$4 sm:$0xff]  }
 0x559   :  { %6408 = vmatprep.subr.bf16.mxu1 %v9761_v62  ;;  %v9843_v62 = vld [vmem:[%s14114_s5 + $0x628] ss:$16 sps:$4 sm:$0xff]  }
 0x55b   :  { %6368 = vmatpush1.bf16.msra.mxu0 %v9756_v47  ;;  %v9848_v47 = vld [vmem:[%s14114_s5 + $0x644] ss:$16 sps:$4 sm:$0xff]  }
 0x55c   :  { %6409 = vmatpush1.bf16.msra.mxu1 %v9759_v18  ;;  %6369 = vmatprep.subr.bf16.mxu0 %v9764_v3  ;;  %v9851_v18 = vld [vmem:[%s14114_s5 + $0x64c] ss:$16 sps:$4 sm:$0xff]   ;;  %v9846_v3 = vld [vmem:[%s14114_s5 + $0x640] ss:$16 sps:$4 sm:$0xff]  }
 0x55d   :  { %6410 = vmatprep.subr.bf16.mxu1 %v9767_v31  ;;  %v9849_v31 = vld [vmem:[%s14114_s5 + $0x648] ss:$16 sps:$4 sm:$0xff]  }
 0x55f   :  { %6370 = vmatpush1.bf16.msra.mxu0 %v9762_v15  ;;  %v9854_v15 = vld [vmem:[%s14114_s5 + $0x664] ss:$16 sps:$4 sm:$0xff]  }
 0x560   :  { %6411 = vmatpush1.bf16.msra.mxu1 %v9765_v26  ;;  %6371 = vmatprep.subr.bf16.mxu0 %v9770_v30  ;;  %v9857_v26 = vld [vmem:[%s14114_s5 + $0x66c] ss:$16 sps:$4 sm:$0xff]   ;;  %v9852_v30 = vld [vmem:[%s14114_s5 + $0x660] ss:$16 sps:$4 sm:$0xff]  }
 0x561   :  { %6412 = vmatprep.subr.bf16.mxu1 %v9773_v61  ;;  %v9855_v61 = vld [vmem:[%s14114_s5 + $0x668] ss:$16 sps:$4 sm:$0xff]  }
 0x563   :  { %6372 = vmatpush1.bf16.msra.mxu0 %v9768_v0  ;;  %v9860_v0 = vld [vmem:[%s14114_s5 + $0x684] ss:$16 sps:$4 sm:$0xff]  }
 0x564   :  { %6413 = vmatpush1.bf16.msra.mxu1 %v9771_v32  ;;  %6373 = vmatprep.subr.bf16.mxu0 %v9776_v50  ;;  %v9863_v32 = vld [vmem:[%s14114_s5 + $0x68c] ss:$16 sps:$4 sm:$0xff]   ;;  %v9858_v50 = vld [vmem:[%s14114_s5 + $0x680] ss:$16 sps:$4 sm:$0xff]  }
 0x565   :  { %6414 = vmatprep.subr.bf16.mxu1 %v9779_v46  ;;  %v9861_v46 = vld [vmem:[%s14114_s5 + $0x688] ss:$16 sps:$4 sm:$0xff]  }
 0x567   :  { %6374 = vmatpush1.bf16.msra.mxu0 %v9774_v37  ;;  %v9866_v37 = vld [vmem:[%s14114_s5 + $0x6a4] ss:$16 sps:$4 sm:$0xff]  }
 0x568   :  { %6415 = vmatpush1.bf16.msra.mxu1 %v9777_v55  ;;  %6375 = vmatprep.subr.bf16.mxu0 %v9782_v38  ;;  %v9869_v55 = vld [vmem:[%s14114_s5 + $0x6ac] ss:$16 sps:$4 sm:$0xff]   ;;  %v9864_v38 = vld [vmem:[%s14114_s5 + $0x6a0] ss:$16 sps:$4 sm:$0xff]  }
 0x569   :  { %6416 = vmatprep.subr.bf16.mxu1 %v9785_v48  ;;  %v9872_v48 = vld [vmem:[%s14114_s5 + $0x6c4] ss:$16 sps:$4 sm:$0xff]  }
 0x56b   :  { %6376 = vmatpush1.bf16.msra.mxu0 %v9780_v20  ;;  %v9867_v20 = vld [vmem:[%s14114_s5 + $0x6a8] ss:$16 sps:$4 sm:$0xff]  }
 0x56c   :  { %6417 = vmatpush1.bf16.msra.mxu1 %v9783_v14  ;;  %6377 = vmatprep.subr.bf16.mxu0 %v9788_v28  ;;  %v9875_v14 = vld [vmem:[%s14114_s5 + $0x6cc] ss:$16 sps:$4 sm:$0xff]   ;;  %v9870_v28 = vld [vmem:[%s14114_s5 + $0x6c0] ss:$16 sps:$4 sm:$0xff]  }
 0x56d   :  { %6418 = vmatprep.subr.bf16.mxu1 %v9791_v12  ;;  %v9873_v12 = vld [vmem:[%s14114_s5 + $0x6c8] ss:$16 sps:$4 sm:$0xff]  }
 0x56f   :  { %6378 = vmatpush1.bf16.msra.mxu0 %v9786_v58  ;;  %v9878_v58 = vld [vmem:[%s14114_s5 + $0x6e4] ss:$16 sps:$4 sm:$0xff]  }
 0x570   :  { %6419 = vmatpush1.bf16.msra.mxu1 %v9789_v49  ;;  %6379 = vmatprep.subr.bf16.mxu0 %v9794_v4  ;;  %v9881_v49 = vld [vmem:[%s14114_s5 + $0x6ec] ss:$16 sps:$4 sm:$0xff]   ;;  %v9876_v4 = vld [vmem:[%s14114_s5 + $0x6e0] ss:$16 sps:$4 sm:$0xff]  }
 0x571   :  { %6420 = vmatprep.subr.bf16.mxu1 %v9797_v60  ;;  %v9879_v60 = vld [vmem:[%s14114_s5 + $0x6e8] ss:$16 sps:$4 sm:$0xff]  }
 0x573   :  { %6380 = vmatpush1.bf16.msra.mxu0 %v9792_v53  ;;  %v9884_v53 = vld [vmem:[%s14114_s5 + $0x704] ss:$16 sps:$4 sm:$0xff]  }
 0x574   :  { %6421 = vmatpush1.bf16.msra.mxu1 %v9795_v39  ;;  %6381 = vmatprep.subr.bf16.mxu0 %v9800_v56  ;;  %v9887_v39 = vld [vmem:[%s14114_s5 + $0x70c] ss:$16 sps:$4 sm:$0xff]   ;;  %v9882_v56 = vld [vmem:[%s14114_s5 + $0x700] ss:$16 sps:$4 sm:$0xff]  }
 0x575   :  { %6422 = vmatprep.subr.bf16.mxu1 %v9803_v7  ;;  %v9885_v7 = vld [vmem:[%s14114_s5 + $0x708] ss:$16 sps:$4 sm:$0xff]  }
 0x577   :  { %6382 = vmatpush1.bf16.msra.mxu0 %v9798_v10  ;;  %v9890_v10 = vld [vmem:[%s14114_s5 + $0x724] ss:$16 sps:$4 sm:$0xff]  }
 0x578   :  { %6423 = vmatpush1.bf16.msra.mxu1 %v9801_v36  ;;  %6383 = vmatprep.subr.bf16.mxu0 %v9806_v8  ;;  %v9893_v36 = vld [vmem:[%s14114_s5 + $0x72c] ss:$16 sps:$4 sm:$0xff]   ;;  %v9888_v8 = vld [vmem:[%s14114_s5 + $0x720] ss:$16 sps:$4 sm:$0xff]  }
 0x579   :  { %6424 = vmatprep.subr.bf16.mxu1 %v9809_v24  ;;  %v9891_v24 = vld [vmem:[%s14114_s5 + $0x728] ss:$16 sps:$4 sm:$0xff]  }
 0x57b   :  { %6384 = vmatpush1.bf16.msra.mxu0 %v9804_v21  ;;  %v9896_v21 = vld [vmem:[%s14114_s5 + $0x744] ss:$16 sps:$4 sm:$0xff]  }
 0x57c   :  { %6425 = vmatpush1.bf16.msra.mxu1 %v9807_v13  ;;  %6385 = vmatprep.subr.bf16.mxu0 %v9812_v63  ;;  %v9899_v13 = vld [vmem:[%s14114_s5 + $0x74c] ss:$16 sps:$4 sm:$0xff]   ;;  %v9894_v63 = vld [vmem:[%s14114_s5 + $0x740] ss:$16 sps:$4 sm:$0xff]  }
 0x57d   :  { %6426 = vmatprep.subr.bf16.mxu1 %v9815_v17  ;;  %v9897_v17 = vld [vmem:[%s14114_s5 + $0x748] ss:$16 sps:$4 sm:$0xff]  }
 0x57f   :  { %6386 = vmatpush1.bf16.msra.mxu0 %v9810_v1  ;;  %v9902_v1 = vld [vmem:[%s14114_s5 + $0x764] ss:$16 sps:$4 sm:$0xff]  }
 0x580   :  { %6427 = vmatpush1.bf16.msra.mxu1 %v9813_v29  ;;  %6387 = vmatprep.subr.bf16.mxu0 %v9818_v11  ;;  %v9905_v29 = vld [vmem:[%s14114_s5 + $0x76c] ss:$16 sps:$4 sm:$0xff]   ;;  %v9900_v11 = vld [vmem:[%s14114_s5 + $0x760] ss:$16 sps:$4 sm:$0xff]  }
 0x581   :  { %6428 = vmatprep.subr.bf16.mxu1 %v9821_v44  ;;  %v9903_v44 = vld [vmem:[%s14114_s5 + $0x768] ss:$16 sps:$4 sm:$0xff]  }
 0x583   :  { %6388 = vmatpush1.bf16.msra.mxu0 %v9816_v34  ;;  %v9908_v34 = vld [vmem:[%s14114_s5 + $0x784] ss:$16 sps:$4 sm:$0xff]  }
 0x584   :  { %6429 = vmatpush1.bf16.msra.mxu1 %v9819_v51  ;;  %6389 = vmatprep.subr.bf16.mxu0 %v9824_v2  ;;  %v9911_v51 = vld [vmem:[%s14114_s5 + $0x78c] ss:$16 sps:$4 sm:$0xff]   ;;  %v9906_v2 = vld [vmem:[%s14114_s5 + $0x780] ss:$16 sps:$4 sm:$0xff]  }
 0x585   :  { %6430 = vmatprep.subr.bf16.mxu1 %v9827_v23  ;;  %v9909_v23 = vld [vmem:[%s14114_s5 + $0x788] ss:$16 sps:$4 sm:$0xff]  }
 0x587   :  { %6390 = vmatpush1.bf16.msra.mxu0 %v9822_v54  ;;  %v9914_v54 = vld [vmem:[%s14114_s5 + $0x7a4] ss:$16 sps:$4 sm:$0xff]  }
 0x588   :  { %6431 = vmatpush1.bf16.msra.mxu1 %v9825_v45  ;;  %6391 = vmatprep.subr.bf16.mxu0 %v9830_v59  ;;  %v9917_v45 = vld [vmem:[%s14114_s5 + $0x7ac] ss:$16 sps:$4 sm:$0xff]   ;;  %v9912_v59 = vld [vmem:[%s14114_s5 + $0x7a0] ss:$16 sps:$4 sm:$0xff]  }
 0x589   :  { %6432 = vmatprep.subr.bf16.mxu1 %v9833_v27  ;;  %v9915_v27 = vld [vmem:[%s14114_s5 + $0x7a8] ss:$16 sps:$4 sm:$0xff]  }
 0x58b   :  { %6392 = vmatpush1.bf16.msra.mxu0 %v9828_v5  ;;  %v9920_v5 = vld [vmem:[%s14114_s5 + $0x7c4] ss:$16 sps:$4 sm:$0xff]  }
 0x58c   :  { %6433 = vmatpush1.bf16.msra.mxu1 %v9831_v6  ;;  %6840 = vmatprep.subr.bf16.mxu0 %v9836_v33  ;;  %v9923_v6 = vld [vmem:[%s14114_s5 + $0x7cc] ss:$16 sps:$4 sm:$0xff]   ;;  %v9918_v33 = vld [vmem:[%s14114_s5 + $0x7c0] ss:$16 sps:$4 sm:$0xff]  }
 0x58d   :  { %6881 = vmatprep.subr.bf16.mxu1 %v9839_v19  ;;  %v9921_v19 = vld [vmem:[%s14114_s5 + $0x7c8] ss:$16 sps:$4 sm:$0xff]  }
 0x58e   :  { %6394 = vmatmul.mubr.bf16.vlgmr.msra.gmra.mrb[64].mxu0 %v5974_v42 }
 0x58f   :  { %6435 = vmatmul.mubr.bf16.vlgmr.msra.gmra.mrb[64].mxu1 %v5974_v42  ;;  %6841 = vmatpush1.bf16.msra.mxu0 %v9834_v40  ;;  %v9926_v40 = vld [vmem:[%s14114_s5 + $0x7e4] ss:$16 sps:$4 sm:$0xff]   ;;  %v9927_v42 = vld [vmem:[%s14114_s5 + $0x7e8] ss:$16 sps:$4 sm:$0xff]  }
 0x590   :  { %6872 = vmatprep.mubr.bf16.mxu0 %v6517_v9  ;;  %6882 = vmatpush1.bf16.msra.mxu1 %v9837_v41  ;;  %v9924_v41 = vld [vmem:[%s14114_s5 + $0x7e0] ss:$16 sps:$4 sm:$0xff]  }
 0x591   :  { %6913 = vmatprep.mubr.bf16.mxu1 %v6517_v9  ;;  %6842 = vmatprep.subr.bf16.mxu0 %v9842_v43  ;;  %v9930_v43 = vld [vmem:[%s14115_s7 + $0x40] sm:$0xff]   ;;  %v6447_v9 = vld [vmem:[#allocation3 + $0x10] sm:$0xf0] }
 0x592   :  { %6883 = vmatprep.subr.bf16.mxu1 %v9845_v35  ;;  %v9931_v35 = vld [vmem:[%s14115_s7 + $0xc0] sm:$0xff]  }
 0x593   :  { %6843 = vmatpush1.bf16.msra.mxu0 %v9840_v52  ;;  %v9932_v52 = vld [vmem:[%s14115_s7] sm:$0xff]  }
 0x594   :  { %6884 = vmatpush1.bf16.msra.mxu1 %v9843_v62  ;;  %6844 = vmatprep.subr.bf16.mxu0 %v9848_v47  ;;  %v6516_v62 = vrot.slane %v6447_v9, 4  ;;  %v9933_v47 = vld [vmem:[%s14115_s7 + $0x80] sm:$0xff]  }
 0x595   :  { %6885 = vmatprep.subr.bf16.mxu1 %v9851_v18  ;;  %v9934_v18 = vld [vmem:[%s14115_s7 + $0x48] sm:$0xff]  }
 0x597   :  { %6845 = vmatpush1.bf16.msra.mxu0 %v9846_v3  ;;  %v9935_v3 = vld [vmem:[%s14115_s7 + $0xc8] sm:$0xff]  }
 0x598   :  { %6886 = vmatpush1.bf16.msra.mxu1 %v9849_v31  ;;  %6846 = vmatprep.subr.bf16.mxu0 %v9854_v15  ;;  %v9936_v31 = vld [vmem:[%s14115_s7 + $0x8] sm:$0xff]  }
 0x599   :  { %6887 = vmatprep.subr.bf16.mxu1 %v9857_v26  ;;  %v9937_v15 = vld [vmem:[%s14115_s7 + $0x88] sm:$0xff]   ;;  %v9938_v26 = vld [vmem:[%s14115_s7 + $0x50] sm:$0xff]  }
 0x59b   :  { %6847 = vmatpush1.bf16.msra.mxu0 %v9852_v30  ;;  %v9939_v30 = vld [vmem:[%s14115_s7 + $0xd0] sm:$0xff]  }
 0x59c   :  { %6888 = vmatpush1.bf16.msra.mxu1 %v9855_v61  ;;  %6848 = vmatprep.subr.bf16.mxu0 %v9860_v0  ;;  %v9940_v61 = vld [vmem:[%s14115_s7 + $0x10] sm:$0xff]  }
 0x59d   :  { %6889 = vmatprep.subr.bf16.mxu1 %v9863_v32  ;;  %v9941_v0 = vld [vmem:[%s14115_s7 + $0x90] sm:$0xff]   ;;  %v9942_v32 = vld [vmem:[%s14115_s7 + $0x58] sm:$0xff]  }
 0x59f   :  { %6849 = vmatpush1.bf16.msra.mxu0 %v9858_v50  ;;  %v9943_v50 = vld [vmem:[%s14115_s7 + $0xd8] sm:$0xff]  }
 0x5a0   :  { %6890 = vmatpush1.bf16.msra.mxu1 %v9861_v46  ;;  %6850 = vmatprep.subr.bf16.mxu0 %v9866_v37  ;;  %v9944_v46 = vld [vmem:[%s14115_s7 + $0x18] sm:$0xff]  }
 0x5a1   :  { %6891 = vmatprep.subr.bf16.mxu1 %v9869_v55  ;;  %v9945_v37 = vld [vmem:[%s14115_s7 + $0x98] sm:$0xff]   ;;  %v9946_v55 = vld [vmem:[%s14115_s7 + $0x60] sm:$0xff]  }
 0x5a3   :  { %6851 = vmatpush1.bf16.msra.mxu0 %v9864_v38  ;;  %v9947_v38 = vld [vmem:[%s14115_s7 + $0xe0] sm:$0xff]  }
 0x5a4   :  { %6892 = vmatpush1.bf16.msra.mxu1 %v9867_v20  ;;  %6852 = vmatprep.subr.bf16.mxu0 %v9872_v48  ;;  %v9948_v20 = vld [vmem:[%s14115_s7 + $0x20] sm:$0xff]  }
 0x5a5   :  { %6893 = vmatprep.subr.bf16.mxu1 %v9875_v14  ;;  %v9949_v48 = vld [vmem:[%s14115_s7 + $0xa0] sm:$0xff]   ;;  %v9950_v14 = vld [vmem:[%s14115_s7 + $0x68] sm:$0xff]  }
 0x5a7   :  { %6853 = vmatpush1.bf16.msra.mxu0 %v9870_v28  ;;  %v9951_v28 = vld [vmem:[%s14115_s7 + $0xe8] sm:$0xff]  }
 0x5a8   :  { %6894 = vmatpush1.bf16.msra.mxu1 %v9873_v12  ;;  %6854 = vmatprep.subr.bf16.mxu0 %v9878_v58  ;;  %v9952_v12 = vld [vmem:[%s14115_s7 + $0x28] sm:$0xff]  }
 0x5a9   :  { %6895 = vmatprep.subr.bf16.mxu1 %v9881_v49  ;;  %v9953_v58 = vld [vmem:[%s14115_s7 + $0xa8] sm:$0xff]   ;;  %v9954_v49 = vld [vmem:[%s14115_s7 + $0x70] sm:$0xff]  }
 0x5ab   :  { %6855 = vmatpush1.bf16.msra.mxu0 %v9876_v4  ;;  %v9955_v4 = vld [vmem:[%s14115_s7 + $0xf0] sm:$0xff]  }
 0x5ac   :  { %6896 = vmatpush1.bf16.msra.mxu1 %v9879_v60  ;;  %6856 = vmatprep.subr.bf16.mxu0 %v9884_v53  ;;  %v9956_v60 = vld [vmem:[%s14115_s7 + $0x30] sm:$0xff]  }
 0x5ad   :  { %6897 = vmatprep.subr.bf16.mxu1 %v9887_v39  ;;  %v9957_v53 = vld [vmem:[%s14115_s7 + $0xb0] sm:$0xff]   ;;  %v9958_v39 = vld [vmem:[%s14115_s7 + $0x78] sm:$0xff]  }
 0x5af   :  { %6857 = vmatpush1.bf16.msra.mxu0 %v9882_v56  ;;  %v9959_v56 = vld [vmem:[%s14115_s7 + $0xf8] sm:$0xff]  }
 0x5b0   :  { %6898 = vmatpush1.bf16.msra.mxu1 %v9885_v7  ;;  %6858 = vmatprep.subr.bf16.mxu0 %v9890_v10  ;;  %v9960_v7 = vld [vmem:[%s14115_s7 + $0x38] sm:$0xff]  }
 0x5b1   :  { %6899 = vmatprep.subr.bf16.mxu1 %v9893_v36  ;;  %v9961_v10 = vld [vmem:[%s14115_s7 + $0xb8] sm:$0xff]   ;;  %v5001_v36 = vld [vmem:[%s14116_s6] sm:$0xf] }
 0x5b3   :  { %6859 = vmatpush1.bf16.msra.mxu0 %v9888_v8  ;;  %v5481_v8 = vsub.s32 2, %v11038_v16 }
 0x5b4   :  { %6900 = vmatpush1.bf16.msra.mxu1 %v9891_v24  ;;  %6860 = vmatprep.subr.bf16.mxu0 %v9896_v21  ;;  %v5485_v24 = vsub.s32 3, %v11038_v16  ;;  %v5474_v21 = vrot.slane %v5001_v36, %v11056_v22 }
 0x5b5   :  { %6901 = vmatprep.subr.bf16.mxu1 %v9899_v13  ;;  %v5482_v13 = vrot.slane %v5001_v36, %v5481_v8 }
 0x5b7   :  { %6861 = vmatpush1.bf16.msra.mxu0 %v9894_v63  ;;  %v5478_v63 = vrot.slane %v5001_v36, %v11065_v25 }
 0x5b8   :  { %6902 = vmatpush1.bf16.msra.mxu1 %v9897_v17  ;;  %6862 = vmatprep.subr.bf16.mxu0 %v9902_v1  ;;  %v5486_v17 = vrot.slane %v5001_v36, %v5485_v24 }
 0x5b9   :  { %6903 = vmatprep.subr.bf16.mxu1 %v9905_v29 }
 0x5bb   :  { %6863 = vmatpush1.bf16.msra.mxu0 %v9900_v11 }
 0x5bc   :  { %6904 = vmatpush1.bf16.msra.mxu1 %v9903_v44  ;;  %6864 = vmatprep.subr.bf16.mxu0 %v9908_v34 }
 0x5bd   :  { %6905 = vmatprep.subr.bf16.mxu1 %v9911_v51 }
 0x5bf   :  { %6865 = vmatpush1.bf16.msra.mxu0 %v9906_v2 }
 0x5c0   :  { %6906 = vmatpush1.bf16.msra.mxu1 %v9909_v23  ;;  %6866 = vmatprep.subr.bf16.mxu0 %v9914_v54 }
 0x5c1   :  { %6907 = vmatprep.subr.bf16.mxu1 %v9917_v45 }
 0x5c3   :  { %6867 = vmatpush1.bf16.msra.mxu0 %v9912_v59 }
 0x5c4   :  { %6908 = vmatpush1.bf16.msra.mxu1 %v9915_v27  ;;  %6868 = vmatprep.subr.bf16.mxu0 %v9920_v5 }
 0x5c5   :  { %6909 = vmatprep.subr.bf16.mxu1 %v9923_v6 }
 0x5c7   :  { %6869 = vmatpush1.bf16.msra.mxu0 %v9918_v33 }
 0x5c8   :  { %6910 = vmatpush1.bf16.msra.mxu1 %v9921_v19  ;;  %6870 = vmatprep.subr.bf16.mxu0 %v9926_v40 }
 0x5c9   :  { %6911 = vmatprep.subr.bf16.mxu1 %v9929_v57 }
 0x5cb   :  { %6871 = vmatpush1.bf16.msra.mxu0 %v9924_v41 }
 0x5cc   :  { %6912 = vmatpush1.bf16.msra.mxu1 %v9927_v42  ;;  %8520 = vmatprep.subr.bf16.mxu0 %v9930_v43  ;;  %v8487_v42 = vld [vmem:[%s14117_s8] ss:$0 sm:$0xff] }
 0x5cd   :  { %8542 = vmatprep.subr.bf16.mxu1 %v9931_v35 }
 0x5ce   :  { %6873 = vmatmul.mubr.bf16.vlgmr.msra.gmra.mrb[64].mxu0 %v6516_v62 }
 0x5cf   :  { %6914 = vmatmul.mubr.bf16.vlgmr.msra.gmra.mrb[64].mxu1 %v6516_v62  ;;  %8521 = vmatpush3.bf16.msra.mxu0 %v9932_v52 }
 0x5d0   :  { %8543 = vmatpush3.bf16.msra.mxu1 %v9933_v47  ;;  %8522 = vmatprep.subr.bf16.mxu0 %v9934_v18 }
 0x5d1   :  { %8544 = vmatprep.subr.bf16.mxu1 %v9935_v3 }
 0x5d3   :  { %8523 = vmatpush3.bf16.msra.mxu0 %v9936_v31 }
 0x5d4   :  { %8545 = vmatpush3.bf16.msra.mxu1 %v9937_v15  ;;  %8524 = vmatprep.subr.bf16.mxu0 %v9938_v26 }
 0x5d5   :  { %8546 = vmatprep.subr.bf16.mxu1 %v9939_v30 }
 0x5d7   :  { %8525 = vmatpush3.bf16.msra.mxu0 %v9940_v61 }
 0x5d8   :  { %8547 = vmatpush3.bf16.msra.mxu1 %v9941_v0  ;;  %8526 = vmatprep.subr.bf16.mxu0 %v9942_v32 }
 0x5d9   :  { %8548 = vmatprep.subr.bf16.mxu1 %v9943_v50 }
 0x5db   :  { %8527 = vmatpush3.bf16.msra.mxu0 %v9944_v46 }
 0x5dc   :  { %8549 = vmatpush3.bf16.msra.mxu1 %v9945_v37  ;;  %8528 = vmatprep.subr.bf16.mxu0 %v9946_v55 }
 0x5dd   :  { %8550 = vmatprep.subr.bf16.mxu1 %v9947_v38 }
 0x5df   :  { %8529 = vmatpush3.bf16.msra.mxu0 %v9948_v20 }
 0x5e0   :  { %8551 = vmatpush3.bf16.msra.mxu1 %v9949_v48  ;;  %8530 = vmatprep.subr.bf16.mxu0 %v9950_v14 }
 0x5e1   :  { %8552 = vmatprep.subr.bf16.mxu1 %v9951_v28 }
 0x5e3   :  { %8531 = vmatpush3.bf16.msra.mxu0 %v9952_v12 }
 0x5e4   :  { %8553 = vmatpush3.bf16.msra.mxu1 %v9953_v58  ;;  %8532 = vmatprep.subr.bf16.mxu0 %v9954_v49 }
 0x5e5   :  { %8554 = vmatprep.subr.bf16.mxu1 %v9955_v4 }
 0x5e7   :  { %8533 = vmatpush3.bf16.msra.mxu0 %v9956_v60 }
 0x5e8   :  { %8555 = vmatpush3.bf16.msra.mxu1 %v9957_v53  ;;  %8534 = vmatprep.subr.bf16.mxu0 %v9958_v39 }
 0x5e9   :  { %8556 = vmatprep.subr.bf16.mxu1 %v9959_v56 }
 0x5eb   :  { %8535 = vmatpush3.bf16.msra.mxu0 %v9960_v7 }
 0x5ec   :  { %8557 = vmatpush3.bf16.msra.mxu1 %v9961_v10 }
 0x6a1   :  { %v6874_v1 = vpop.f32.mrb[64].mxu0 }
 0x6a2   :  { %v8660_v29 = vadd.f32 %v6874_v1, %v5474_v21  ;;  %v6915_v11 = vpop.f32.mrb[64].mxu1  ;;  %v6876_v44 = vpop.f32.mrb[65].mxu0 }
 0x6a3   :  { %v8662_v34 = vadd.f32 %v6915_v11, %v5482_v13  ;;  %v8661_v51 = vadd.f32 %v6876_v44, %v5478_v63  ;;  %v6917_v2 = vpop.f32.mrb[65].mxu1  ;;  %v6878_v23 = vpop.f32.mrb[66].mxu0 }
 0x6a4   :  { %v6926_v54 = vmax.f32 %v8660_v29, 0.0  ;;  %v8663_v45 = vadd.f32 %v6917_v2, %v5486_v17  ;;  %v6919_v59 = vpop.f32.mrb[66].mxu1  ;;  %v6879_v27 = vpop.f32.mrb[67].mxu0 }
 0x6a5   :  { %v6928_v5 = vmax.f32 %v8662_v34, 0.0  ;;  %v6927_v16 = vmax.f32 %v8661_v51, 0.0  ;;  %v6920_v6 = vpop.f32.mrb[67].mxu1 }
 0x6a6   :  { %v6929_v22 = vmax.f32 %v8663_v45, 0.0  ;;  %v6930_v19 = vpack.c.bf16 %v6926_v54, %v6926_v54 }
 0x6a7   :  { %v6931_v33 = vpack.c.bf16 %v6927_v16, %v6927_v16  ;;  %v6932_v40 = vpack.c.bf16 %v6928_v5, %v6928_v5 }
 0x6a8   :  { %v6933_v25 = vpack.c.bf16 %v6929_v22, %v6929_v22 }
 0x6a9   :  { %7229 = vmatprep.mubr.bf16.mxu0 %v6931_v33 }
 0x6aa   :  { %7269 = vmatprep.mubr.bf16.mxu1 %v6933_v25  ;;  %7230 = vmatmul.mubr.bf16.vlgmr.msra.gmra.mrb[68].mxu0 %v6930_v19 }
 0x6ab   :  { %7270 = vmatmul.mubr.bf16.vlgmr.msra.gmra.mrb[68].mxu1 %v6932_v40 }
 0x77d   :  { %v8536_v57 = vpop.f32.mrb[68].mxu0 }
 0x77e   :  { %v8558_v41 = vpop.f32.mrb[68].mxu1  ;;  %v8537_v43 = vpop.f32.mrb[69].mxu0 }
 0x77f   :  { %v8538_v9 = vadd.f32 %v8537_v43, %v8536_v57  ;;  %v8559_v35 = vpop.f32.mrb[69].mxu1  ;;  %v8539_v52 = vpop.f32.mrb[70].mxu0 }
 0x780   :  { %v8560_v62 = vadd.f32 %v8559_v35, %v8558_v41  ;;  %v8561_v47 = vpop.f32.mrb[70].mxu1  ;;  %v8540_v18 = vpop.f32.mrb[71].mxu0 }
 0x781   :  { %v7232_v3 = vadd.f32 %v8538_v9, %v8487_v42  ;;  %v8562_v31 = vpop.f32.mrb[71].mxu1 }
 0x783   :  { %v7272_v15 = vadd.f32 %v8560_v62, %v7232_v3 }
 0x785   :  { %7277 = vmax.xlane.f32.xlu0 %v7272_v15 }
 0x812   :  { %v7278_v26 = vpop.xlane.xlu0 %7277 }
 0x813   :  { %v7279_v30 = vsub.f32 %v7272_v15, %v7278_v26 }
 0x815   :  { %v7280_v61 = vmul.f32 1.442695, %v7279_v30 }
 0x817   :  { %9962 = vpow2.f32 %v7280_v61 }
 0x821   :  { %v9963_v0 = vpop.eup %9962 }
 0x822   :  { %7282 = vadd.xlane.f32.xlu0 %v9963_v0 }
 0x8af   :  { %v7283_v32 = vpop.xlane.xlu0 %7282 }
 0x8b0   :  { %9964 = vlog2.f32 %v7283_v32 }
 0x8ba   :  { %v9965_v50 = vpop.eup %9964 }
 0x8bb   :  { %v7285_v46 = vmul.f32 0.6931472, %v9965_v50 }
 0x8bd   :  { %v7286_v37 = vadd.f32 %v7285_v46, %v7278_v26 }
 0x8bf   :  { %v7287_v55 = vsub.f32 %v7272_v15, %v7286_v37 }
 0x8c1   :  { %7288 = vst [vmem:[%s14118_s9] sm:$0xff] %v7287_v55 }

</bundles_post_ra>
